<compile_context>
chip_gen: v7x
topology: tpu7x:2x2x1
jax: 0.10.0
libtpu: 0.0.40
codegen_flags: <defaults>
</compile_context>

<pallas_src>
import functools

import jax
import jax.numpy as jnp
from jax.experimental import pallas as pl
from jax.experimental.pallas import tpu as pltpu


_VMEM = pl.BlockSpec(memory_space=pltpu.MemorySpace.VMEM)


# ----------------------------------------------------------------------------
# Single fused kernel:
#   (Linear+ReLU) + L x (GCNConv, folded BN) + ReLU + Set2Set(3) + MLP head
# ----------------------------------------------------------------------------
def _gcnn_fused_kernel(*refs, n_layers, n_steps, n_mlp, hp):
    (x_ref, a_ref, lw_ref, lb_ref, cw_ref, cb_ref,
     bm_ref, wih_ref, whh_ref, lstmb_ref) = refs[:10]
    mlp_refs = refs[10:10 + 2 * n_mlp]
    out1_w_ref, out1_b_ref, out2_w_ref, out2_b_ref, o_ref = refs[10 + 2 * n_mlp:]

    # ---- initial Linear + ReLU (f32) ----
    h = jnp.dot(x_ref[...], lw_ref[...], preferred_element_type=jnp.float32)
    h = jnp.maximum(h + lb_ref[...], 0.0)                    # [N, Hp]

    # ---- L x GCNConv with eval-mode BN folded in: bf16 MXU, f32 epilogue ----
    a_bf = a_ref[...]                                         # [N, N] bf16
    for l in range(n_layers):                                 # static unroll (L = 5)
        hw = jnp.dot(h.astype(jnp.bfloat16), cw_ref[l],
                     preferred_element_type=jnp.float32)      # [N, Hp] f32
        h = jnp.dot(a_bf, hw.astype(jnp.bfloat16),
                    preferred_element_type=jnp.float32) + cb_ref[l]
    h = jnp.maximum(h, 0.0)                                   # final ReLU, f32

    # ---- Set2Set: n_steps x (LSTM cell + per-graph softmax attention), all f32 ----
    bm = bm_ref[...]                                          # [Gp, N] membership mask
    wih = wih_ref[...]                                        # [2*Hp, 4*Hp]
    whh = whh_ref[...]                                        # [Hp,   4*Hp]
    lb = lstmb_ref[...]                                       # [1,    4*Hp]
    gp = bm.shape[0]

    hs = jnp.zeros((gp, hp), jnp.float32)
    cs = jnp.zeros((gp, hp), jnp.float32)
    q_star = jnp.zeros((gp, 2 * hp), jnp.float32)

    for _ in range(n_steps):                                  # static unroll (3 steps)
        gates = (jnp.dot(q_star, wih, preferred_element_type=jnp.float32)
                 + jnp.dot(hs, whh, preferred_element_type=jnp.float32) + lb)
        # gate boundaries at 0, Hp, 2Hp, 3Hp -> 128-lane aligned slices
        i_g = jax.nn.sigmoid(gates[:, 0 * hp:1 * hp])
        f_g = jax.nn.sigmoid(gates[:, 1 * hp:2 * hp])
        g_g = jnp.tanh(gates[:, 2 * hp:3 * hp])
        o_g = jax.nn.sigmoid(gates[:, 3 * hp:4 * hp])
        cs = f_g * cs + i_g * g_g
        hs = o_g * jnp.tanh(cs)

        # per-graph softmax attention over nodes (contract last dims, no transpose)
        scores = jax.lax.dot_general(hs, h, (((1,), (1,)), ((), ())),
                                     preferred_element_type=jnp.float32)   # [Gp, N]
        scores = jnp.where(bm > 0, scores, -1e30)             # finite mask -> no NaN
        m = jnp.max(scores, axis=-1, keepdims=True)
        p = jnp.where(bm > 0, jnp.exp(scores - m), 0.0)
        denom = jnp.maximum(jnp.sum(p, axis=-1, keepdims=True), 1e-20)
        a = p * pl.reciprocal(denom, approx=False)            # exact reciprocal
        r = jnp.dot(a, h, preferred_element_type=jnp.float32)              # [Gp, Hp]
        q_star = jnp.concatenate([hs, r], axis=-1)                          # [Gp, 2Hp]

    # ---- Dropout (eval mode -> identity) + MLP head ----
    y = q_star
    for li in range(n_mlp):
        w = mlp_refs[2 * li][...]
        b = mlp_refs[2 * li + 1][...]
        y = jnp.maximum(jnp.dot(y, w, preferred_element_type=jnp.float32) + b, 0.0)
    y = jnp.maximum(jnp.dot(y, out1_w_ref[...], preferred_element_type=jnp.float32)
                    + out1_b_ref[...], 0.0)
    y = jnp.dot(y, out2_w_ref[...], preferred_element_type=jnp.float32) + out2_b_ref[...]
    o_ref[...] = y                                            # [Gp, OUT_PAD] lane-dense


def gcnn_fused(x, a_norm, bmask, p, *, n_steps=3):
    n, in_pad = x.shape
    gp = bmask.shape[0]
    n_layers, hp, _ = p["conv_w"].shape
    n_mlp = len(p["mlp"])
    out_pad = int(p["out2_w"].shape[1])

    operands = [x, a_norm, p["lin_w"], p["lin_b"], p["conv_w"], p["conv_b"],
                bmask, p["lstm_wih"], p["lstm_whh"], p["lstm_b"]]
    for w, b in p["mlp"]:
        operands += [w, b]
    operands += [p["out1_w"], p["out1_b"], p["out2_w"], p["out2_b"]]

    # advisory cost estimate
    flops = 2 * n * in_pad * hp
    flops += n_layers * (2 * n * hp * hp + 2 * n * n * hp)
    flops += n_steps * (2 * gp * (2 * hp) * (4 * hp) + 2 * gp * hp * (4 * hp)
                        + 4 * gp * n * hp)
    for w, _ in p["mlp"]:
        flops += 2 * gp * int(w.shape[0]) * int(w.shape[1])
    flops += 2 * gp * int(p["out1_w"].shape[0]) * int(p["out1_w"].shape[1])
    flops += 2 * gp * out_pad * int(p["out2_w"].shape[0])
    trans = n_steps * gp * (5 * hp + n)

    out_bytes = 4 * gp * out_pad
    in_bytes = sum(int(op.size) * int(op.dtype.itemsize) for op in operands)
    # explicit VMEM budget sized from the resident set (+ headroom)
    vmem_limit = int(min(max(2 * (in_bytes + out_bytes) + (1 << 20), 4 << 20), 128 << 20))

    return pl.pallas_call(
        functools.partial(_gcnn_fused_kernel, n_layers=n_layers, n_steps=n_steps,
                          n_mlp=n_mlp, hp=hp),
        out_shape=jax.ShapeDtypeStruct((gp, out_pad), jnp.float32),
        in_specs=[_VMEM] * len(operands),
        out_specs=_VMEM,
        compiler_params=pltpu.CompilerParams(vmem_limit_bytes=vmem_limit),
        cost_estimate=pl.CostEstimate(flops=flops, transcendentals=trans,
                                      bytes_accessed=in_bytes + out_bytes),
    )(*operands)


def gcnn_forward(p, x, a_norm, bmask, *, num_graphs):
    y = gcnn_fused(x, a_norm, bmask, p)
    # padded graph rows / padded output lanes are dropped here (plain XLA slice)
    return y[:num_graphs, 0].reshape(1, -1)


# ----------------------------------------------------------------------------
# One-time graph preprocessing (hoisted out of the per-call forward)
# ----------------------------------------------------------------------------
def build_graph_tensors(edge_index, edge_dist, batch, num_nodes, num_graphs_padded):
    # PyG GCNConv(improved=True): A_norm = D^-1/2 (A + 2I) D^-1/2, out[tgt] += w * x[src]
    src, tgt = edge_index[0], edge_index[1]
    adj = jnp.zeros((num_nodes, num_nodes), jnp.float32).at[tgt, src].add(edge_dist)
    adj = adj + 2.0 * jnp.eye(num_nodes, dtype=jnp.float32)
    deg = jnp.sum(adj, axis=1)
    dinv = jnp.where(deg > 0, jax.lax.rsqrt(deg), 0.0)
    a_norm = dinv[:, None] * adj * dinv[None, :]
    # membership mask padded to num_graphs_padded rows (padded rows are all-zero)
    bmask = (batch[None, :] == jnp.arange(num_graphs_padded, dtype=batch.dtype)[:, None]
             ).astype(jnp.float32)
    return a_norm, bmask


def pad_node_features(x, in_pad):
    n, d = x.shape
    return jnp.zeros((n, in_pad), jnp.float32).at[:, :d].set(x)


# ----------------------------------------------------------------------------
# One-time parameter preparation: fold eval-mode BN, pad features to 128 lanes,
# stack per-layer conv weights (bf16), re-layout LSTM gates to 128-aligned columns,
# pad the scalar output head to a lane-dense 128-column store.
# All padded rows/cols are zero, so padded activations stay exactly zero.
# ----------------------------------------------------------------------------
def _expand_qstar_rows(w, hidden, hp):
    # A matrix consuming q_star=[hs|r] (2H rows) re-indexed for padded [hs|0|r|0] (2Hp)
    out = jnp.zeros((2 * hp, w.shape[1]), jnp.float32)
    out = out.at[:hidden, :].set(w[:hidden, :])
    out = out.at[hp:hp + hidden, :].set(w[hidden:2 * hidden, :])
    return out


def prepare_params(raw, *, hidden=64, hp=128, in_pad=128, out_pad=128, eps=1e-5):
    H, Hp = hidden, hp
    in_dim = raw["lin_w"].shape[0]
    assert Hp >= H and Hp % 128 == 0 and in_pad >= in_dim

    # initial linear (pad input rows and output columns)
    lin_w = jnp.zeros((in_pad, Hp), jnp.float32).at[:in_dim, :H].set(raw["lin_w"])
    lin_b = jnp.zeros((1, Hp), jnp.float32).at[0, :H].set(raw["lin_b"])

    # fold the (shared) eval-mode BatchNorm into every conv layer, pad + stack, bf16
    scale = raw["bn_gamma"] * jax.lax.rsqrt(raw["bn_var"] + eps)
    shift = raw["bn_beta"] - raw["bn_mean"] * scale
    conv_w, conv_b = [], []
    for cw, cb in raw["convs"]:
        w_f = cw * scale[None, :]
        b_f = cb * scale + shift
        conv_w.append(jnp.zeros((Hp, Hp), jnp.float32).at[:H, :H].set(w_f))
        conv_b.append(jnp.zeros((1, Hp), jnp.float32).at[0, :H].set(b_f))
    conv_w = jnp.stack(conv_w).astype(jnp.bfloat16)   # [L, Hp, Hp] bf16 (MXU path)
    conv_b = jnp.stack(conv_b)                         # [L, 1, Hp]  f32

    # LSTM (i,f,g,o): pad hidden to Hp so every gate starts at a multiple of 128
    wih = jnp.zeros((2 * Hp, 4 * Hp), jnp.float32)
    whh = jnp.zeros((Hp, 4 * Hp), jnp.float32)
    lb = jnp.zeros((1, 4 * Hp), jnp.float32)
    for g in range(4):
        sc = slice(g * H, (g + 1) * H)                 # source gate columns
        dc = slice(g * Hp, g * Hp + H)                 # 128-aligned destination columns
        wih = wih.at[:H, dc].set(raw["lstm_wih"][:H, sc])              # hs part of q_star
        wih = wih.at[Hp:Hp + H, dc].set(raw["lstm_wih"][H:2 * H, sc])  # r part of q_star
        whh = whh.at[:H, dc].set(raw["lstm_whh"][:, sc])
        lb = lb.at[0, dc].set(raw["lstm_b"][sc])

    # MLP head: first matrix consuming q_star gets its rows re-indexed for the padding
    mlp = []
    consumed_qstar = False
    for mw, mb in raw["mlp_lin"]:
        wp = mw if consumed_qstar else _expand_qstar_rows(mw, H, Hp)
        consumed_qstar = True
        mlp.append((wp, mb.reshape(1, -1)))
    out1_w = raw["out1_w"] if consumed_qstar else _expand_qstar_rows(raw["out1_w"], H, Hp)

    # final 32 -> 1 projection padded to 128 output lanes (unmasked store; slice outside)
    out2_w = jnp.zeros((raw["out2_w"].shape[0], out_pad), jnp.float32
                       ).at[:, :raw["out2_w"].shape[1]].set(raw["out2_w"])
    out2_b = jnp.zeros((1, out_pad), jnp.float32
                       ).at[0, :raw["out2_b"].shape[0]].set(raw["out2_b"])

    return dict(lin_w=lin_w, lin_b=lin_b, conv_w=conv_w, conv_b=conv_b,
                lstm_wih=wih, lstm_whh=whh, lstm_b=lb, mlp=mlp,
                out1_w=out1_w, out1_b=raw["out1_b"].reshape(1, -1),
                out2_w=out2_w, out2_b=out2_b)


# ----------------------------------------------------------------------------
# Pure-JAX reference (original unpadded math).  conv_dtype=float32 is the exact
# original semantics; conv_dtype=bfloat16 emulates the kernel's bf16 MXU path for a
# tight structural cross-check.
# ----------------------------------------------------------------------------
def gcnn_reference(raw, x, a_norm, bmask, *, n_steps=3, eps=1e-5,
                   conv_dtype=jnp.float32):
    h = jnp.maximum(x @ raw["lin_w"] + raw["lin_b"], 0.0)
    scale = raw["bn_gamma"] / jnp.sqrt(raw["bn_var"] + eps)
    shift = raw["bn_beta"] - raw["bn_mean"] * scale
    a_c = a_norm.astype(conv_dtype)
    for cw, cb in raw["convs"]:
        # conv followed by eval-mode BN == conv with folded (scaled) weights
        w_f = (cw * scale[None, :]).astype(conv_dtype)
        b_f = cb * scale + shift
        hw = jnp.dot(h.astype(conv_dtype), w_f, preferred_element_type=jnp.float32)
        h = jnp.dot(a_c, hw.astype(conv_dtype),
                    preferred_element_type=jnp.float32) + b_f
    h = jnp.maximum(h, 0.0)
    G, H = bmask.shape[0], h.shape[1]
    hs = jnp.zeros((G, H)); cs = jnp.zeros((G, H)); q_star = jnp.zeros((G, 2 * H))
    for _ in range(n_steps):
        gates = q_star @ raw["lstm_wih"] + hs @ raw["lstm_whh"] + raw["lstm_b"]
        i = jax.nn.sigmoid(gates[:, :H]); f = jax.nn.sigmoid(gates[:, H:2 * H])
        g = jnp.tanh(gates[:, 2 * H:3 * H]); o = jax.nn.sigmoid(gates[:, 3 * H:4 * H])
        cs = f * cs + i * g
        hs = o * jnp.tanh(cs)
        sc = jnp.where(bmask > 0, hs @ h.T, -jnp.inf)
        m = jnp.max(sc, axis=-1, keepdims=True)
        pr = jnp.where(bmask > 0, jnp.exp(sc - m), 0.0)
        a = pr / jnp.sum(pr, axis=-1, keepdims=True)
        q_star = jnp.concatenate([hs, a @ h], axis=-1)
    y = q_star
    for mw, mb in raw["mlp_lin"]:
        y = jnp.maximum(y @ mw + mb, 0.0)
    y = jnp.maximum(y @ raw["out1_w"] + raw["out1_b"], 0.0)
    y = y @ raw["out2_w"] + raw["out2_b"]
    return y.reshape(1, -1)


# ----------------------------------------------------------------------------
# Deterministic parameter init (shapes follow GCNN.__init__ defaults)
# ----------------------------------------------------------------------------
def init_params(key, in_dim, hidden_dim=64, n_conv_layer=5, n_linear=1):
    keys = iter(jax.random.split(key, 32))

    def mat(fan_in, fan_out):
        return jax.random.normal(next(keys), (fan_in, fan_out), jnp.float32) * 0.1

    def vec(n):
        return jax.random.normal(next(keys), (n,), jnp.float32) * 0.1

    return {
        "lin_w": mat(in_dim, hidden_dim),
        "lin_b": vec(hidden_dim),
        "convs": [(mat(hidden_dim, hidden_dim), vec(hidden_dim))
                  for _ in range(n_conv_layer)],
        "bn_gamma": jnp.ones((hidden_dim,), jnp.float32),
        "bn_beta": jnp.zeros((hidden_dim,), jnp.float32),
        "bn_mean": jnp.zeros((hidden_dim,), jnp.float32),
        "bn_var": jnp.ones((hidden_dim,), jnp.float32),
        # LSTM(in=2H, hidden=H): weights stored transposed, biases combined (b_ih+b_hh)
        "lstm_wih": mat(2 * hidden_dim, 4 * hidden_dim),
        "lstm_whh": mat(hidden_dim, 4 * hidden_dim),
        "lstm_b": vec(4 * hidden_dim),
        "mlp_lin": [(mat(2 * hidden_dim, 2 * hidden_dim), vec(2 * hidden_dim))
                    for _ in range(n_linear)],
        "out1_w": mat(2 * hidden_dim, 32),
        "out1_b": vec(32),
        "out2_w": mat(32, 1),
        "out2_b": vec(1),
    }


if __name__ == "__main__":
    key = jax.random.PRNGKey(0)
    kx, kd, kp = jax.random.split(key, 3)

    in_dim, hidden_dim, hp = 4, 64, 128
    in_pad, out_pad, g_pad = 128, 128, 8
    nodes_per_graph, num_graphs = 8, 2
    n_nodes = nodes_per_graph * num_graphs

    # node features
    x = jax.random.normal(kx, (n_nodes, in_dim), jnp.float32)

    # bidirectional ring graph within each of the 2 graphs
    src, dst = [], []
    for gi in range(num_graphs):
        off = gi * nodes_per_graph
        for i in range(nodes_per_graph):
            a, b = off + i, off + (i + 1) % nodes_per_graph
            src += [a, b]
            dst += [b, a]
    edge_index = jnp.array([src, dst], dtype=jnp.int32)            # [2, 32]
    edge_dist = jax.random.uniform(kd, (edge_index.shape[1],), jnp.float32,
                                   minval=0.5, maxval=1.5)
    batch = jnp.repeat(jnp.arange(num_graphs, dtype=jnp.int32), nodes_per_graph)

    raw_params = init_params(kp, in_dim, hidden_dim)

    # one-time preprocessing: adjacency / membership mask and folded+padded params
    a_norm_f32, bmask = build_graph_tensors(edge_index, edge_dist, batch,
                                            n_nodes, g_pad)
    a_norm = a_norm_f32.astype(jnp.bfloat16)          # bf16 MXU operand for the kernel
    params = prepare_params(raw_params, hidden=hidden_dim, hp=hp,
                            in_pad=in_pad, out_pad=out_pad)
    x_pad = pad_node_features(x, in_pad)

    fwd = jax.jit(functools.partial(gcnn_forward, num_graphs=num_graphs))
    out = fwd(params, x_pad, a_norm, bmask)
    jax.block_until_ready(out)

    assert out.shape == (1, num_graphs), out.shape
    assert bool(jnp.all(jnp.isfinite(out)))

    # 1) tight structural check vs. a reference that emulates the kernel's bf16 conv path
    ref_emul = gcnn_reference(raw_params, x, a_norm_f32, bmask[:num_graphs],
                              conv_dtype=jnp.bfloat16)
    err_emul = float(jnp.max(jnp.abs(out - ref_emul)))
    tol_emul = 2e-3 + 2e-3 * float(jnp.max(jnp.abs(ref_emul)))
    assert err_emul <= tol_emul, (err_emul, tol_emul)

    # 2) precision-budget check vs. the full-f32 original math (bf16 MXU matmul budget)
    ref_f32 = gcnn_reference(raw_params, x, a_norm_f32, bmask[:num_graphs])
    err_f32 = float(jnp.max(jnp.abs(out - ref_f32)))
    tol_f32 = 2e-2 + 5e-2 * float(jnp.max(jnp.abs(ref_f32)))
    assert err_f32 <= tol_f32, (err_f32, tol_f32)

    print("KERNEL_OK")
</pallas_src>

<mosaic_0001>
module attributes {stable_mosaic.version = 11 : i64} {
  func.func @_gcnn_fused_kernel(%arg0: memref<16x128xf32, #tpu.memory_space<vmem>>, %arg1: memref<16x16xbf16, #tpu.memory_space<vmem>>, %arg2: memref<128x128xf32, #tpu.memory_space<vmem>>, %arg3: memref<1x128xf32, #tpu.memory_space<vmem>>, %arg4: memref<5x128x128xbf16, #tpu.memory_space<vmem>>, %arg5: memref<5x1x128xf32, #tpu.memory_space<vmem>>, %arg6: memref<8x16xf32, #tpu.memory_space<vmem>>, %arg7: memref<256x512xf32, #tpu.memory_space<vmem>>, %arg8: memref<128x512xf32, #tpu.memory_space<vmem>>, %arg9: memref<1x512xf32, #tpu.memory_space<vmem>>, %arg10: memref<256x128xf32, #tpu.memory_space<vmem>>, %arg11: memref<1x128xf32, #tpu.memory_space<vmem>>, %arg12: memref<128x32xf32, #tpu.memory_space<vmem>>, %arg13: memref<1x32xf32, #tpu.memory_space<vmem>>, %arg14: memref<32x128xf32, #tpu.memory_space<vmem>>, %arg15: memref<1x128xf32, #tpu.memory_space<vmem>>, %arg16: memref<8x128xf32, #tpu.memory_space<vmem>>) attributes {dimension_semantics = [], scalar_prefetch = 0 : i64, scratch_operands = 0 : i64, tpu.core_type = #tpu.core_type<tc>} {
    %c0 = arith.constant 0 : index
    %c0_0 = arith.constant 0 : index
    %0 = vector.load %arg0[%c0, %c0_0] : memref<16x128xf32, #tpu.memory_space<vmem>>, vector<16x128xf32>
    %c0_1 = arith.constant 0 : index
    %c0_2 = arith.constant 0 : index
    %1 = vector.load %arg2[%c0_1, %c0_2] : memref<128x128xf32, #tpu.memory_space<vmem>>, vector<128x128xf32>
    %cst = arith.constant dense<0.000000e+00> : vector<16x128xf32>
    %2 = tpu.matmul %0, %1, %cst {dimension_numbers = #tpu.dot_dimension_numbers<[1], [0], [0], [1], [0, 0, 1, 1], [], []>} : vector<16x128xf32>, vector<128x128xf32>, vector<16x128xf32> -> vector<16x128xf32>
    %c0_3 = arith.constant 0 : index
    %c0_4 = arith.constant 0 : index
    %3 = vector.load %arg3[%c0_3, %c0_4] : memref<1x128xf32, #tpu.memory_space<vmem>>, vector<1x128xf32>
    %4 = vector.broadcast %3 : vector<1x128xf32> to vector<16x128xf32>
    %5 = arith.addf %2, %4 : vector<16x128xf32>
    %cst_5 = arith.constant 0.000000e+00 : f32
    %6 = vector.broadcast %cst_5 : f32 to vector<16x128xf32>
    %7 = arith.maximumf %5, %6 : vector<16x128xf32>
    %c0_6 = arith.constant 0 : index
    %c0_7 = arith.constant 0 : index
    %8 = vector.load %arg1[%c0_6, %c0_7] : memref<16x16xbf16, #tpu.memory_space<vmem>>, vector<16x16xbf16>
    %9 = arith.truncf %7 : vector<16x128xf32> to vector<16x128xbf16>
    %c0_8 = arith.constant 0 : index
    %c0_9 = arith.constant 0 : index
    %c0_10 = arith.constant 0 : index
    %10 = vector.load %arg4[%c0_8, %c0_9, %c0_10] : memref<5x128x128xbf16, #tpu.memory_space<vmem>>, vector<1x128x128xbf16>
    %11 = vector.shape_cast %10 : vector<1x128x128xbf16> to vector<128x128xbf16>
    %cst_11 = arith.constant dense<0.000000e+00> : vector<16x128xf32>
    %12 = tpu.matmul %9, %11, %cst_11 {dimension_numbers = #tpu.dot_dimension_numbers<[1], [0], [0], [1], [0, 0, 1, 1], [], []>} : vector<16x128xbf16>, vector<128x128xbf16>, vector<16x128xf32> -> vector<16x128xf32>
    %13 = arith.truncf %12 : vector<16x128xf32> to vector<16x128xbf16>
    %cst_12 = arith.constant dense<0.000000e+00> : vector<16x128xf32>
    %14 = tpu.matmul %8, %13, %cst_12 {dimension_numbers = #tpu.dot_dimension_numbers<[1], [0], [0], [1], [0, 0, 1, 1], [], []>} : vector<16x16xbf16>, vector<16x128xbf16>, vector<16x128xf32> -> vector<16x128xf32>
    %c0_13 = arith.constant 0 : index
    %c0_14 = arith.constant 0 : index
    %c0_15 = arith.constant 0 : index
    %15 = vector.load %arg5[%c0_13, %c0_14, %c0_15] : memref<5x1x128xf32, #tpu.memory_space<vmem>>, vector<1x1x128xf32>
    %16 = vector.shape_cast %15 : vector<1x1x128xf32> to vector<1x128xf32>
    %17 = vector.broadcast %16 : vector<1x128xf32> to vector<16x128xf32>
    %18 = arith.addf %14, %17 : vector<16x128xf32>
    %19 = arith.truncf %18 : vector<16x128xf32> to vector<16x128xbf16>
    %c1 = arith.constant 1 : index
    %c0_16 = arith.constant 0 : index
    %c0_17 = arith.constant 0 : index
    %20 = vector.load %arg4[%c1, %c0_16, %c0_17] : memref<5x128x128xbf16, #tpu.memory_space<vmem>>, vector<1x128x128xbf16>
    %21 = vector.shape_cast %20 : vector<1x128x128xbf16> to vector<128x128xbf16>
    %cst_18 = arith.constant dense<0.000000e+00> : vector<16x128xf32>
    %22 = tpu.matmul %19, %21, %cst_18 {dimension_numbers = #tpu.dot_dimension_numbers<[1], [0], [0], [1], [0, 0, 1, 1], [], []>} : vector<16x128xbf16>, vector<128x128xbf16>, vector<16x128xf32> -> vector<16x128xf32>
    %23 = arith.truncf %22 : vector<16x128xf32> to vector<16x128xbf16>
    %cst_19 = arith.constant dense<0.000000e+00> : vector<16x128xf32>
    %24 = tpu.matmul %8, %23, %cst_19 {dimension_numbers = #tpu.dot_dimension_numbers<[1], [0], [0], [1], [0, 0, 1, 1], [], []>} : vector<16x16xbf16>, vector<16x128xbf16>, vector<16x128xf32> -> vector<16x128xf32>
    %c1_20 = arith.constant 1 : index
    %c0_21 = arith.constant 0 : index
    %c0_22 = arith.constant 0 : index
    %25 = vector.load %arg5[%c1_20, %c0_21, %c0_22] : memref<5x1x128xf32, #tpu.memory_space<vmem>>, vector<1x1x128xf32>
    %26 = vector.shape_cast %25 : vector<1x1x128xf32> to vector<1x128xf32>
    %27 = vector.broadcast %26 : vector<1x128xf32> to vector<16x128xf32>
    %28 = arith.addf %24, %27 : vector<16x128xf32>
    %29 = arith.truncf %28 : vector<16x128xf32> to vector<16x128xbf16>
    %c2 = arith.constant 2 : index
    %c0_23 = arith.constant 0 : index
    %c0_24 = arith.constant 0 : index
    %30 = vector.load %arg4[%c2, %c0_23, %c0_24] : memref<5x128x128xbf16, #tpu.memory_space<vmem>>, vector<1x128x128xbf16>
    %31 = vector.shape_cast %30 : vector<1x128x128xbf16> to vector<128x128xbf16>
    %cst_25 = arith.constant dense<0.000000e+00> : vector<16x128xf32>
    %32 = tpu.matmul %29, %31, %cst_25 {dimension_numbers = #tpu.dot_dimension_numbers<[1], [0], [0], [1], [0, 0, 1, 1], [], []>} : vector<16x128xbf16>, vector<128x128xbf16>, vector<16x128xf32> -> vector<16x128xf32>
    %33 = arith.truncf %32 : vector<16x128xf32> to vector<16x128xbf16>
    %cst_26 = arith.constant dense<0.000000e+00> : vector<16x128xf32>
    %34 = tpu.matmul %8, %33, %cst_26 {dimension_numbers = #tpu.dot_dimension_numbers<[1], [0], [0], [1], [0, 0, 1, 1], [], []>} : vector<16x16xbf16>, vector<16x128xbf16>, vector<16x128xf32> -> vector<16x128xf32>
    %c2_27 = arith.constant 2 : index
    %c0_28 = arith.constant 0 : index
    %c0_29 = arith.constant 0 : index
    %35 = vector.load %arg5[%c2_27, %c0_28, %c0_29] : memref<5x1x128xf32, #tpu.memory_space<vmem>>, vector<1x1x128xf32>
    %36 = vector.shape_cast %35 : vector<1x1x128xf32> to vector<1x128xf32>
    %37 = vector.broadcast %36 : vector<1x128xf32> to vector<16x128xf32>
    %38 = arith.addf %34, %37 : vector<16x128xf32>
    %39 = arith.truncf %38 : vector<16x128xf32> to vector<16x128xbf16>
    %c3 = arith.constant 3 : index
    %c0_30 = arith.constant 0 : index
    %c0_31 = arith.constant 0 : index
    %40 = vector.load %arg4[%c3, %c0_30, %c0_31] : memref<5x128x128xbf16, #tpu.memory_space<vmem>>, vector<1x128x128xbf16>
    %41 = vector.shape_cast %40 : vector<1x128x128xbf16> to vector<128x128xbf16>
    %cst_32 = arith.constant dense<0.000000e+00> : vector<16x128xf32>
    %42 = tpu.matmul %39, %41, %cst_32 {dimension_numbers = #tpu.dot_dimension_numbers<[1], [0], [0], [1], [0, 0, 1, 1], [], []>} : vector<16x128xbf16>, vector<128x128xbf16>, vector<16x128xf32> -> vector<16x128xf32>
    %43 = arith.truncf %42 : vector<16x128xf32> to vector<16x128xbf16>
    %cst_33 = arith.constant dense<0.000000e+00> : vector<16x128xf32>
    %44 = tpu.matmul %8, %43, %cst_33 {dimension_numbers = #tpu.dot_dimension_numbers<[1], [0], [0], [1], [0, 0, 1, 1], [], []>} : vector<16x16xbf16>, vector<16x128xbf16>, vector<16x128xf32> -> vector<16x128xf32>
    %c3_34 = arith.constant 3 : index
    %c0_35 = arith.constant 0 : index
    %c0_36 = arith.constant 0 : index
    %45 = vector.load %arg5[%c3_34, %c0_35, %c0_36] : memref<5x1x128xf32, #tpu.memory_space<vmem>>, vector<1x1x128xf32>
    %46 = vector.shape_cast %45 : vector<1x1x128xf32> to vector<1x128xf32>
    %47 = vector.broadcast %46 : vector<1x128xf32> to vector<16x128xf32>
    %48 = arith.addf %44, %47 : vector<16x128xf32>
    %49 = arith.truncf %48 : vector<16x128xf32> to vector<16x128xbf16>
    %c4 = arith.constant 4 : index
    %c0_37 = arith.constant 0 : index
    %c0_38 = arith.constant 0 : index
    %50 = vector.load %arg4[%c4, %c0_37, %c0_38] : memref<5x128x128xbf16, #tpu.memory_space<vmem>>, vector<1x128x128xbf16>
    %51 = vector.shape_cast %50 : vector<1x128x128xbf16> to vector<128x128xbf16>
    %cst_39 = arith.constant dense<0.000000e+00> : vector<16x128xf32>
    %52 = tpu.matmul %49, %51, %cst_39 {dimension_numbers = #tpu.dot_dimension_numbers<[1], [0], [0], [1], [0, 0, 1, 1], [], []>} : vector<16x128xbf16>, vector<128x128xbf16>, vector<16x128xf32> -> vector<16x128xf32>
    %53 = arith.truncf %52 : vector<16x128xf32> to vector<16x128xbf16>
    %cst_40 = arith.constant dense<0.000000e+00> : vector<16x128xf32>
    %54 = tpu.matmul %8, %53, %cst_40 {dimension_numbers = #tpu.dot_dimension_numbers<[1], [0], [0], [1], [0, 0, 1, 1], [], []>} : vector<16x16xbf16>, vector<16x128xbf16>, vector<16x128xf32> -> vector<16x128xf32>
    %c4_41 = arith.constant 4 : index
    %c0_42 = arith.constant 0 : index
    %c0_43 = arith.constant 0 : index
    %55 = vector.load %arg5[%c4_41, %c0_42, %c0_43] : memref<5x1x128xf32, #tpu.memory_space<vmem>>, vector<1x1x128xf32>
    %56 = vector.shape_cast %55 : vector<1x1x128xf32> to vector<1x128xf32>
    %57 = vector.broadcast %56 : vector<1x128xf32> to vector<16x128xf32>
    %58 = arith.addf %54, %57 : vector<16x128xf32>
    %cst_44 = arith.constant 0.000000e+00 : f32
    %59 = vector.broadcast %cst_44 : f32 to vector<16x128xf32>
    %60 = arith.maximumf %58, %59 : vector<16x128xf32>
    %c0_45 = arith.constant 0 : index
    %c0_46 = arith.constant 0 : index
    %61 = vector.load %arg6[%c0_45, %c0_46] : memref<8x16xf32, #tpu.memory_space<vmem>>, vector<8x16xf32>
    %c0_47 = arith.constant 0 : index
    %c0_48 = arith.constant 0 : index
    %62 = vector.load %arg7[%c0_47, %c0_48] : memref<256x512xf32, #tpu.memory_space<vmem>>, vector<256x512xf32>
    %c0_49 = arith.constant 0 : index
    %c0_50 = arith.constant 0 : index
    %63 = vector.load %arg8[%c0_49, %c0_50] : memref<128x512xf32, #tpu.memory_space<vmem>>, vector<128x512xf32>
    %c0_51 = arith.constant 0 : index
    %c0_52 = arith.constant 0 : index
    %64 = vector.load %arg9[%c0_51, %c0_52] : memref<1x512xf32, #tpu.memory_space<vmem>>, vector<1x512xf32>
    %cst_53 = arith.constant 0.000000e+00 : f32
    %65 = vector.broadcast %cst_53 : f32 to vector<8x128xf32>
    %cst_54 = arith.constant 0.000000e+00 : f32
    %66 = vector.broadcast %cst_54 : f32 to vector<8x128xf32>
    %cst_55 = arith.constant 0.000000e+00 : f32
    %67 = vector.broadcast %cst_55 : f32 to vector<8x256xf32>
    %cst_56 = arith.constant dense<0.000000e+00> : vector<8x512xf32>
    %68 = tpu.matmul %67, %62, %cst_56 {dimension_numbers = #tpu.dot_dimension_numbers<[1], [0], [0], [1], [0, 0, 1, 1], [], []>} : vector<8x256xf32>, vector<256x512xf32>, vector<8x512xf32> -> vector<8x512xf32>
    %cst_57 = arith.constant dense<0.000000e+00> : vector<8x512xf32>
    %69 = tpu.matmul %65, %63, %cst_57 {dimension_numbers = #tpu.dot_dimension_numbers<[1], [0], [0], [1], [0, 0, 1, 1], [], []>} : vector<8x128xf32>, vector<128x512xf32>, vector<8x512xf32> -> vector<8x512xf32>
    %70 = arith.addf %68, %69 : vector<8x512xf32>
    %71 = vector.broadcast %64 : vector<1x512xf32> to vector<8x512xf32>
    %72 = arith.addf %70, %71 : vector<8x512xf32>
    %73 = vector.extract_strided_slice %72 {offsets = [0, 0], sizes = [8, 128], strides = [1, 1]} : vector<8x512xf32> to vector<8x128xf32>
    %74 = arith.negf %73 : vector<8x128xf32>
    %75 = math.exp %74 : vector<8x128xf32>
    %cst_58 = arith.constant 1.000000e+00 : f32
    %76 = vector.broadcast %cst_58 : f32 to vector<8x128xf32>
    %77 = arith.addf %76, %75 : vector<8x128xf32>
    %78 = arith.divf %76, %77 : vector<8x128xf32>
    %79 = vector.extract_strided_slice %72 {offsets = [0, 128], sizes = [8, 128], strides = [1, 1]} : vector<8x512xf32> to vector<8x128xf32>
    %80 = arith.negf %79 : vector<8x128xf32>
    %81 = math.exp %80 : vector<8x128xf32>
    %cst_59 = arith.constant 1.000000e+00 : f32
    %82 = vector.broadcast %cst_59 : f32 to vector<8x128xf32>
    %83 = arith.addf %82, %81 : vector<8x128xf32>
    %84 = arith.divf %82, %83 : vector<8x128xf32>
    %85 = vector.extract_strided_slice %72 {offsets = [0, 256], sizes = [8, 128], strides = [1, 1]} : vector<8x512xf32> to vector<8x128xf32>
    %86 = math.tanh %85 : vector<8x128xf32>
    %87 = vector.extract_strided_slice %72 {offsets = [0, 384], sizes = [8, 128], strides = [1, 1]} : vector<8x512xf32> to vector<8x128xf32>
    %88 = arith.negf %87 : vector<8x128xf32>
    %89 = math.exp %88 : vector<8x128xf32>
    %cst_60 = arith.constant 1.000000e+00 : f32
    %90 = vector.broadcast %cst_60 : f32 to vector<8x128xf32>
    %91 = arith.addf %90, %89 : vector<8x128xf32>
    %92 = arith.divf %90, %91 : vector<8x128xf32>
    %93 = arith.mulf %84, %66 : vector<8x128xf32>
    %94 = arith.mulf %78, %86 : vector<8x128xf32>
    %95 = arith.addf %93, %94 : vector<8x128xf32>
    %96 = math.tanh %95 : vector<8x128xf32>
    %97 = arith.mulf %92, %96 : vector<8x128xf32>
    %cst_61 = arith.constant dense<0.000000e+00> : vector<8x16xf32>
    %98 = tpu.matmul %97, %60, %cst_61 {dimension_numbers = #tpu.dot_dimension_numbers<[1], [1], [0], [0], [0, 0, 1, 0], [], []>} : vector<8x128xf32>, vector<16x128xf32>, vector<8x16xf32> -> vector<8x16xf32>
    %cst_62 = arith.constant 0.000000e+00 : f32
    %99 = vector.broadcast %cst_62 : f32 to vector<8x16xf32>
    %100 = arith.cmpf ogt, %61, %99 : vector<8x16xf32>
    %cst_63 = arith.constant -1.000000e+30 : f32
    %101 = vector.broadcast %cst_63 : f32 to vector<8x16xf32>
    %102 = arith.select %100, %98, %101 : vector<8x16xi1>, vector<8x16xf32>
    %cst_64 = arith.constant dense<0xFF800000> : vector<8xf32>
    %103 = vector.multi_reduction <maximumf>, %102, %cst_64 [1] : vector<8x16xf32> to vector<8xf32>
    %104 = vector.shape_cast %103 : vector<8xf32> to vector<8x1xf32>
    %cst_65 = arith.constant 0.000000e+00 : f32
    %105 = vector.broadcast %cst_65 : f32 to vector<8x16xf32>
    %106 = arith.cmpf ogt, %61, %105 : vector<8x16xf32>
    %107 = vector.broadcast %104 : vector<8x1xf32> to vector<8x16xf32>
    %108 = arith.subf %102, %107 : vector<8x16xf32>
    %109 = math.exp %108 : vector<8x16xf32>
    %cst_66 = arith.constant 0.000000e+00 : f32
    %110 = vector.broadcast %cst_66 : f32 to vector<8x16xf32>
    %111 = arith.select %106, %109, %110 : vector<8x16xi1>, vector<8x16xf32>
    %cst_67 = arith.constant dense<0.000000e+00> : vector<8xf32>
    %112 = vector.multi_reduction <add>, %111, %cst_67 [1] : vector<8x16xf32> to vector<8xf32>
    %113 = vector.shape_cast %112 : vector<8xf32> to vector<8x1xf32>
    %cst_68 = arith.constant 9.99999968E-21 : f32
    %114 = vector.broadcast %cst_68 : f32 to vector<8x1xf32>
    %115 = arith.maximumf %113, %114 : vector<8x1xf32>
    %116 = tpu.reciprocal %115 : vector<8x1xf32> -> vector<8x1xf32>
    %117 = vector.broadcast %116 : vector<8x1xf32> to vector<8x16xf32>
    %118 = arith.mulf %111, %117 : vector<8x16xf32>
    %cst_69 = arith.constant dense<0.000000e+00> : vector<8x128xf32>
    %119 = tpu.matmul %118, %60, %cst_69 {dimension_numbers = #tpu.dot_dimension_numbers<[1], [0], [0], [1], [0, 0, 1, 1], [], []>} : vector<8x16xf32>, vector<16x128xf32>, vector<8x128xf32> -> vector<8x128xf32>
    %120 = tpu.concatenate %97, %119 in 1 : vector<8x128xf32>, vector<8x128xf32> -> vector<8x256xf32>
    %cst_70 = arith.constant dense<0.000000e+00> : vector<8x512xf32>
    %121 = tpu.matmul %120, %62, %cst_70 {dimension_numbers = #tpu.dot_dimension_numbers<[1], [0], [0], [1], [0, 0, 1, 1], [], []>} : vector<8x256xf32>, vector<256x512xf32>, vector<8x512xf32> -> vector<8x512xf32>
    %cst_71 = arith.constant dense<0.000000e+00> : vector<8x512xf32>
    %122 = tpu.matmul %97, %63, %cst_71 {dimension_numbers = #tpu.dot_dimension_numbers<[1], [0], [0], [1], [0, 0, 1, 1], [], []>} : vector<8x128xf32>, vector<128x512xf32>, vector<8x512xf32> -> vector<8x512xf32>
    %123 = arith.addf %121, %122 : vector<8x512xf32>
    %124 = vector.broadcast %64 : vector<1x512xf32> to vector<8x512xf32>
    %125 = arith.addf %123, %124 : vector<8x512xf32>
    %126 = vector.extract_strided_slice %125 {offsets = [0, 0], sizes = [8, 128], strides = [1, 1]} : vector<8x512xf32> to vector<8x128xf32>
    %127 = arith.negf %126 : vector<8x128xf32>
    %128 = math.exp %127 : vector<8x128xf32>
    %cst_72 = arith.constant 1.000000e+00 : f32
    %129 = vector.broadcast %cst_72 : f32 to vector<8x128xf32>
    %130 = arith.addf %129, %128 : vector<8x128xf32>
    %131 = arith.divf %129, %130 : vector<8x128xf32>
    %132 = vector.extract_strided_slice %125 {offsets = [0, 128], sizes = [8, 128], strides = [1, 1]} : vector<8x512xf32> to vector<8x128xf32>
    %133 = arith.negf %132 : vector<8x128xf32>
    %134 = math.exp %133 : vector<8x128xf32>
    %cst_73 = arith.constant 1.000000e+00 : f32
    %135 = vector.broadcast %cst_73 : f32 to vector<8x128xf32>
    %136 = arith.addf %135, %134 : vector<8x128xf32>
    %137 = arith.divf %135, %136 : vector<8x128xf32>
    %138 = vector.extract_strided_slice %125 {offsets = [0, 256], sizes = [8, 128], strides = [1, 1]} : vector<8x512xf32> to vector<8x128xf32>
    %139 = math.tanh %138 : vector<8x128xf32>
    %140 = vector.extract_strided_slice %125 {offsets = [0, 384], sizes = [8, 128], strides = [1, 1]} : vector<8x512xf32> to vector<8x128xf32>
    %141 = arith.negf %140 : vector<8x128xf32>
    %142 = math.exp %141 : vector<8x128xf32>
    %cst_74 = arith.constant 1.000000e+00 : f32
    %143 = vector.broadcast %cst_74 : f32 to vector<8x128xf32>
    %144 = arith.addf %143, %142 : vector<8x128xf32>
    %145 = arith.divf %143, %144 : vector<8x128xf32>
    %146 = arith.mulf %137, %95 : vector<8x128xf32>
    %147 = arith.mulf %131, %139 : vector<8x128xf32>
    %148 = arith.addf %146, %147 : vector<8x128xf32>
    %149 = math.tanh %148 : vector<8x128xf32>
    %150 = arith.mulf %145, %149 : vector<8x128xf32>
    %cst_75 = arith.constant dense<0.000000e+00> : vector<8x16xf32>
    %151 = tpu.matmul %150, %60, %cst_75 {dimension_numbers = #tpu.dot_dimension_numbers<[1], [1], [0], [0], [0, 0, 1, 0], [], []>} : vector<8x128xf32>, vector<16x128xf32>, vector<8x16xf32> -> vector<8x16xf32>
    %cst_76 = arith.constant 0.000000e+00 : f32
    %152 = vector.broadcast %cst_76 : f32 to vector<8x16xf32>
    %153 = arith.cmpf ogt, %61, %152 : vector<8x16xf32>
    %cst_77 = arith.constant -1.000000e+30 : f32
    %154 = vector.broadcast %cst_77 : f32 to vector<8x16xf32>
    %155 = arith.select %153, %151, %154 : vector<8x16xi1>, vector<8x16xf32>
    %cst_78 = arith.constant dense<0xFF800000> : vector<8xf32>
    %156 = vector.multi_reduction <maximumf>, %155, %cst_78 [1] : vector<8x16xf32> to vector<8xf32>
    %157 = vector.shape_cast %156 : vector<8xf32> to vector<8x1xf32>
    %cst_79 = arith.constant 0.000000e+00 : f32
    %158 = vector.broadcast %cst_79 : f32 to vector<8x16xf32>
    %159 = arith.cmpf ogt, %61, %158 : vector<8x16xf32>
    %160 = vector.broadcast %157 : vector<8x1xf32> to vector<8x16xf32>
    %161 = arith.subf %155, %160 : vector<8x16xf32>
    %162 = math.exp %161 : vector<8x16xf32>
    %cst_80 = arith.constant 0.000000e+00 : f32
    %163 = vector.broadcast %cst_80 : f32 to vector<8x16xf32>
    %164 = arith.select %159, %162, %163 : vector<8x16xi1>, vector<8x16xf32>
    %cst_81 = arith.constant dense<0.000000e+00> : vector<8xf32>
    %165 = vector.multi_reduction <add>, %164, %cst_81 [1] : vector<8x16xf32> to vector<8xf32>
    %166 = vector.shape_cast %165 : vector<8xf32> to vector<8x1xf32>
    %cst_82 = arith.constant 9.99999968E-21 : f32
    %167 = vector.broadcast %cst_82 : f32 to vector<8x1xf32>
    %168 = arith.maximumf %166, %167 : vector<8x1xf32>
    %169 = tpu.reciprocal %168 : vector<8x1xf32> -> vector<8x1xf32>
    %170 = vector.broadcast %169 : vector<8x1xf32> to vector<8x16xf32>
    %171 = arith.mulf %164, %170 : vector<8x16xf32>
    %cst_83 = arith.constant dense<0.000000e+00> : vector<8x128xf32>
    %172 = tpu.matmul %171, %60, %cst_83 {dimension_numbers = #tpu.dot_dimension_numbers<[1], [0], [0], [1], [0, 0, 1, 1], [], []>} : vector<8x16xf32>, vector<16x128xf32>, vector<8x128xf32> -> vector<8x128xf32>
    %173 = tpu.concatenate %150, %172 in 1 : vector<8x128xf32>, vector<8x128xf32> -> vector<8x256xf32>
    %cst_84 = arith.constant dense<0.000000e+00> : vector<8x512xf32>
    %174 = tpu.matmul %173, %62, %cst_84 {dimension_numbers = #tpu.dot_dimension_numbers<[1], [0], [0], [1], [0, 0, 1, 1], [], []>} : vector<8x256xf32>, vector<256x512xf32>, vector<8x512xf32> -> vector<8x512xf32>
    %cst_85 = arith.constant dense<0.000000e+00> : vector<8x512xf32>
    %175 = tpu.matmul %150, %63, %cst_85 {dimension_numbers = #tpu.dot_dimension_numbers<[1], [0], [0], [1], [0, 0, 1, 1], [], []>} : vector<8x128xf32>, vector<128x512xf32>, vector<8x512xf32> -> vector<8x512xf32>
    %176 = arith.addf %174, %175 : vector<8x512xf32>
    %177 = vector.broadcast %64 : vector<1x512xf32> to vector<8x512xf32>
    %178 = arith.addf %176, %177 : vector<8x512xf32>
    %179 = vector.extract_strided_slice %178 {offsets = [0, 0], sizes = [8, 128], strides = [1, 1]} : vector<8x512xf32> to vector<8x128xf32>
    %180 = arith.negf %179 : vector<8x128xf32>
    %181 = math.exp %180 : vector<8x128xf32>
    %cst_86 = arith.constant 1.000000e+00 : f32
    %182 = vector.broadcast %cst_86 : f32 to vector<8x128xf32>
    %183 = arith.addf %182, %181 : vector<8x128xf32>
    %184 = arith.divf %182, %183 : vector<8x128xf32>
    %185 = vector.extract_strided_slice %178 {offsets = [0, 128], sizes = [8, 128], strides = [1, 1]} : vector<8x512xf32> to vector<8x128xf32>
    %186 = arith.negf %185 : vector<8x128xf32>
    %187 = math.exp %186 : vector<8x128xf32>
    %cst_87 = arith.constant 1.000000e+00 : f32
    %188 = vector.broadcast %cst_87 : f32 to vector<8x128xf32>
    %189 = arith.addf %188, %187 : vector<8x128xf32>
    %190 = arith.divf %188, %189 : vector<8x128xf32>
    %191 = vector.extract_strided_slice %178 {offsets = [0, 256], sizes = [8, 128], strides = [1, 1]} : vector<8x512xf32> to vector<8x128xf32>
    %192 = math.tanh %191 : vector<8x128xf32>
    %193 = vector.extract_strided_slice %178 {offsets = [0, 384], sizes = [8, 128], strides = [1, 1]} : vector<8x512xf32> to vector<8x128xf32>
    %194 = arith.negf %193 : vector<8x128xf32>
    %195 = math.exp %194 : vector<8x128xf32>
    %cst_88 = arith.constant 1.000000e+00 : f32
    %196 = vector.broadcast %cst_88 : f32 to vector<8x128xf32>
    %197 = arith.addf %196, %195 : vector<8x128xf32>
    %198 = arith.divf %196, %197 : vector<8x128xf32>
    %199 = arith.mulf %190, %148 : vector<8x128xf32>
    %200 = arith.mulf %184, %192 : vector<8x128xf32>
    %201 = arith.addf %199, %200 : vector<8x128xf32>
    %202 = math.tanh %201 : vector<8x128xf32>
    %203 = arith.mulf %198, %202 : vector<8x128xf32>
    %cst_89 = arith.constant dense<0.000000e+00> : vector<8x16xf32>
    %204 = tpu.matmul %203, %60, %cst_89 {dimension_numbers = #tpu.dot_dimension_numbers<[1], [1], [0], [0], [0, 0, 1, 0], [], []>} : vector<8x128xf32>, vector<16x128xf32>, vector<8x16xf32> -> vector<8x16xf32>
    %cst_90 = arith.constant 0.000000e+00 : f32
    %205 = vector.broadcast %cst_90 : f32 to vector<8x16xf32>
    %206 = arith.cmpf ogt, %61, %205 : vector<8x16xf32>
    %cst_91 = arith.constant -1.000000e+30 : f32
    %207 = vector.broadcast %cst_91 : f32 to vector<8x16xf32>
    %208 = arith.select %206, %204, %207 : vector<8x16xi1>, vector<8x16xf32>
    %cst_92 = arith.constant dense<0xFF800000> : vector<8xf32>
    %209 = vector.multi_reduction <maximumf>, %208, %cst_92 [1] : vector<8x16xf32> to vector<8xf32>
    %210 = vector.shape_cast %209 : vector<8xf32> to vector<8x1xf32>
    %cst_93 = arith.constant 0.000000e+00 : f32
    %211 = vector.broadcast %cst_93 : f32 to vector<8x16xf32>
    %212 = arith.cmpf ogt, %61, %211 : vector<8x16xf32>
    %213 = vector.broadcast %210 : vector<8x1xf32> to vector<8x16xf32>
    %214 = arith.subf %208, %213 : vector<8x16xf32>
    %215 = math.exp %214 : vector<8x16xf32>
    %cst_94 = arith.constant 0.000000e+00 : f32
    %216 = vector.broadcast %cst_94 : f32 to vector<8x16xf32>
    %217 = arith.select %212, %215, %216 : vector<8x16xi1>, vector<8x16xf32>
    %cst_95 = arith.constant dense<0.000000e+00> : vector<8xf32>
    %218 = vector.multi_reduction <add>, %217, %cst_95 [1] : vector<8x16xf32> to vector<8xf32>
    %219 = vector.shape_cast %218 : vector<8xf32> to vector<8x1xf32>
    %cst_96 = arith.constant 9.99999968E-21 : f32
    %220 = vector.broadcast %cst_96 : f32 to vector<8x1xf32>
    %221 = arith.maximumf %219, %220 : vector<8x1xf32>
    %222 = tpu.reciprocal %221 : vector<8x1xf32> -> vector<8x1xf32>
    %223 = vector.broadcast %222 : vector<8x1xf32> to vector<8x16xf32>
    %224 = arith.mulf %217, %223 : vector<8x16xf32>
    %cst_97 = arith.constant dense<0.000000e+00> : vector<8x128xf32>
    %225 = tpu.matmul %224, %60, %cst_97 {dimension_numbers = #tpu.dot_dimension_numbers<[1], [0], [0], [1], [0, 0, 1, 1], [], []>} : vector<8x16xf32>, vector<16x128xf32>, vector<8x128xf32> -> vector<8x128xf32>
    %226 = tpu.concatenate %203, %225 in 1 : vector<8x128xf32>, vector<8x128xf32> -> vector<8x256xf32>
    %c0_98 = arith.constant 0 : index
    %c0_99 = arith.constant 0 : index
    %227 = vector.load %arg10[%c0_98, %c0_99] : memref<256x128xf32, #tpu.memory_space<vmem>>, vector<256x128xf32>
    %c0_100 = arith.constant 0 : index
    %c0_101 = arith.constant 0 : index
    %228 = vector.load %arg11[%c0_100, %c0_101] : memref<1x128xf32, #tpu.memory_space<vmem>>, vector<1x128xf32>
    %cst_102 = arith.constant dense<0.000000e+00> : vector<8x128xf32>
    %229 = tpu.matmul %226, %227, %cst_102 {dimension_numbers = #tpu.dot_dimension_numbers<[1], [0], [0], [1], [0, 0, 1, 1], [], []>} : vector<8x256xf32>, vector<256x128xf32>, vector<8x128xf32> -> vector<8x128xf32>
    %230 = vector.broadcast %228 : vector<1x128xf32> to vector<8x128xf32>
    %231 = arith.addf %229, %230 : vector<8x128xf32>
    %cst_103 = arith.constant 0.000000e+00 : f32
    %232 = vector.broadcast %cst_103 : f32 to vector<8x128xf32>
    %233 = arith.maximumf %231, %232 : vector<8x128xf32>
    %c0_104 = arith.constant 0 : index
    %c0_105 = arith.constant 0 : index
    %234 = vector.load %arg12[%c0_104, %c0_105] : memref<128x32xf32, #tpu.memory_space<vmem>>, vector<128x32xf32>
    %cst_106 = arith.constant dense<0.000000e+00> : vector<8x32xf32>
    %235 = tpu.matmul %233, %234, %cst_106 {dimension_numbers = #tpu.dot_dimension_numbers<[1], [0], [0], [1], [0, 0, 1, 1], [], []>} : vector<8x128xf32>, vector<128x32xf32>, vector<8x32xf32> -> vector<8x32xf32>
    %c0_107 = arith.constant 0 : index
    %c0_108 = arith.constant 0 : index
    %236 = vector.load %arg13[%c0_107, %c0_108] : memref<1x32xf32, #tpu.memory_space<vmem>>, vector<1x32xf32>
    %237 = vector.broadcast %236 : vector<1x32xf32> to vector<8x32xf32>
    %238 = arith.addf %235, %237 : vector<8x32xf32>
    %cst_109 = arith.constant 0.000000e+00 : f32
    %239 = vector.broadcast %cst_109 : f32 to vector<8x32xf32>
    %240 = arith.maximumf %238, %239 : vector<8x32xf32>
    %c0_110 = arith.constant 0 : index
    %c0_111 = arith.constant 0 : index
    %241 = vector.load %arg14[%c0_110, %c0_111] : memref<32x128xf32, #tpu.memory_space<vmem>>, vector<32x128xf32>
    %cst_112 = arith.constant dense<0.000000e+00> : vector<8x128xf32>
    %242 = tpu.matmul %240, %241, %cst_112 {dimension_numbers = #tpu.dot_dimension_numbers<[1], [0], [0], [1], [0, 0, 1, 1], [], []>} : vector<8x32xf32>, vector<32x128xf32>, vector<8x128xf32> -> vector<8x128xf32>
    %c0_113 = arith.constant 0 : index
    %c0_114 = arith.constant 0 : index
    %243 = vector.load %arg15[%c0_113, %c0_114] : memref<1x128xf32, #tpu.memory_space<vmem>>, vector<1x128xf32>
    %244 = vector.broadcast %243 : vector<1x128xf32> to vector<8x128xf32>
    %245 = arith.addf %242, %244 : vector<8x128xf32>
    %c0_115 = arith.constant 0 : index
    %c0_116 = arith.constant 0 : index
    %246 = vector.load %arg16[%c0_115, %c0_116] : memref<8x128xf32, #tpu.memory_space<vmem>>, vector<8x128xf32>
    tpu.vector_store %arg16[%c0_115, %c0_116], %245 {strides = array<i32>} : memref<8x128xf32, #tpu.memory_space<vmem>>, vector<8x128xf32>,
    return
  }
}

</mosaic_0001>

<bundles_post_ra>
// kernel: gcnn_forward.1
= control target key start
LH: loop header
LB: loop body
LE: loop exit
PB: predicated region body
PF: predicated region fallthrough
CT: control target
= control target key end

     0   :  { %s5633_s0 = inlined_call_operand.vmem [shape: f32[16,128], index: 0, kind: input, shape index: {}]   ;;  %s5634_s1 = inlined_call_operand.hbm [shape: bf16[16,16], index: 1, kind: input, shape index: {}]   ;;  %s5635_s2 = inlined_call_operand.vmem [shape: f32[128,128], index: 2, kind: input, shape index: {}]   ;;  %s5636_s3 = inlined_call_operand.hbm [shape: f32[1,128], index: 3, kind: input, shape index: {}]   ;;  %s5637_s4 = inlined_call_operand.hbm [shape: bf16[5,128,128], index: 4, kind: input, shape index: {}]   ;;  %s5638_s5 = inlined_call_operand.hbm [shape: f32[5,1,128], index: 5, kind: input, shape index: {}]   ;;  %s5639_s6 = inlined_call_operand.vmem [shape: f32[8,16], index: 6, kind: input, shape index: {}]   ;;  %s5640_s7 = inlined_call_operand.hbm [shape: f32[256,512], index: 7, kind: input, shape index: {}]   ;;  %s5641_s8 = inlined_call_operand.hbm [shape: f32[128,512], index: 8, kind: input, shape index: {}]   ;;  %s5642_s9 = inlined_call_operand.hbm [shape: f32[1,512], index: 9, kind: input, shape index: {}]   ;;  %s5643_s10 = inlined_call_operand.hbm [shape: f32[256,128], index: 10, kind: input, shape index: {}]   ;;  %s5644_s11 = inlined_call_operand.hbm [shape: f32[1,128], index: 11, kind: input, shape index: {}]   ;;  %s5645_s12 = inlined_call_operand.vmem [shape: f32[128,32], index: 12, kind: input, shape index: {}]   ;;  %s5646_s13 = inlined_call_operand.hbm [shape: f32[1,32], index: 13, kind: input, shape index: {}]   ;;  %s5647_s14 = inlined_call_operand.vmem [shape: f32[32,128], index: 14, kind: input, shape index: {}]   ;;  %s5648_s15 = inlined_call_operand.hbm [shape: f32[1,128], index: 15, kind: input, shape index: {}]   ;;  %s5649_s16 = inlined_call_operand.vmem [shape: f32[8,128], index: 16, kind: output, shape index: {}]  }
   0x1   :  { %5785 = sst [smem:[#allocation114_spill]] %s5633_s0 }
   0x2   :  { %21 = vsyncpa [#allocation3], 0 }
   0x3   :  { %22 = vsyncpa [#allocation5], 0 }
   0x4   :  { %23 = vsyncpa [#allocation8], 0 }
   0x5   :  { %24 = vsyncpa [#allocation11], 0 }
   0x6   :  { %25 = vsyncpa [#allocation14], 0 }
   0x7   :  { %26 = vsyncpa [#allocation17], 0  ;;  %s4560_s21 = smov [#allocation4]   ;;  %s4561_s23 = smov [#allocation7]  }
   0x8   :  { %s49_s22 = sshll.u32 %s4560_s21, 4  ;;  %s70_s24 = sshll.u32 %s4561_s23, 4  ;;  %s50_s22 = int_to_ptr.vmem [resolvable:$true] %s49_s22  ;;  %s4667_s24 = int_to_ptr.vmem [resolvable:$true] %s70_s24 }
   0x9   :  { %s4306_s27 = scalar_lea.hbm %s5636_s3, 16 }
   0xa   :  { %p4307_p0 = scmp.ne.s32.totalorder %s5636_s3, %s4306_s27  ;;  %p4310_p1 = scmp.lt.u32.totalorder %s4306_s27, %s5636_s3 }
   0xc   :  { %p4312_p2 = pnand %p4310_p1, %p4307_p0 }
   0xe   :  { %4315 = shalt.err (!%p4312_p2)
}
   0xf   :  { %s4316_s17 = scalar_lea.vmem %s50_s22, 16  ;;  %s4320_s18 = scalar_lea.vmem %s50_s22, 32 }
  0x10   :  { %p4317_p3 = scmp.ne.s32.totalorder %s50_s22, %s4316_s17  ;;  %p4321_p4 = scmp.lt.s32.totalorder %s50_s22, %s50_s22 }
  0x11   :  { %p4322_p5 = scmp.lt.s32.totalorder %s4320_s18, %s4316_s17 }
  0x13   :  { %p4323_p6 = por %p4322_p5, %p4321_p4 }
  0x15   :  { %p4324_p7 = pnand %p4323_p6, %p4317_p3 }
  0x17   :  { %4327 = shalt.err (!%p4324_p7)
}
  0x18   :  { %52 = dma.hbm_to_vmem [thread:$0]  %s5636_s3, 16, %s50_s22, [#allocation5]  }
  0x19   :  { %s4328_s25 = scalar_lea.hbm %s5638_s5, 80 }
  0x1a   :  { %p4329_p8 = scmp.ne.s32.totalorder %s5638_s5, %s4328_s25  ;;  %p4332_p9 = scmp.lt.u32.totalorder %s4328_s25, %s5638_s5 }
  0x1c   :  { %p4334_p10 = pnand %p4332_p9, %p4329_p8 }
  0x1e   :  { %4337 = shalt.err (!%p4334_p10)
}
  0x1f   :  { %s4338_s30 = scalar_lea.vmem %s4667_s24, 80  ;;  %s4342_s3 = scalar_lea.vmem %s4667_s24, 96 }
  0x20   :  { %p4339_p11 = scmp.ne.s32.totalorder %s4667_s24, %s4338_s30  ;;  %p4343_p12 = scmp.lt.s32.totalorder %s4667_s24, %s4667_s24 }
  0x21   :  { %p4344_p13 = scmp.lt.s32.totalorder %s4342_s3, %s4338_s30 }
  0x23   :  { %p4345_p0 = por %p4344_p13, %p4343_p12 }
  0x25   :  { %p4346_p1 = pnand %p4345_p0, %p4339_p11 }
  0x27   :  { %4349 = shalt.err (!%p4346_p1)
}
  0x28   :  { %s4562_s22 = smov 16   ;;  %s4563_s0 = smov 1  }
  0x29   :  { %76 = dma.hbm_to_vmem [thread:$0]  %s5638_s5, 80, %s4667_s24, [#allocation8], %s4562_s22, %s4562_s22, %s4563_s0  }
  0x2a   :  { %s4564_s19 = smov [#allocation10]   ;;  %s4565_s21 = smov [#allocation13]  }
  0x2b   :  { %s96_s20 = sshll.u32 %s4564_s19, 4  ;;  %s118_s23 = sshll.u32 %s4565_s21, 4  ;;  %s97_s20 = int_to_ptr.vmem [resolvable:$true] %s96_s20  ;;  %s4699_s23 = int_to_ptr.vmem [resolvable:$true] %s118_s23 }
  0x2c   :  { %s4350_s27 = scalar_lea.hbm %s5641_s8, 8192 }
  0x2d   :  { %p4351_p2 = scmp.ne.s32.totalorder %s5641_s8, %s4350_s27  ;;  %p4354_p3 = scmp.lt.u32.totalorder %s4350_s27, %s5641_s8 }
  0x2f   :  { %p4356_p4 = pnand %p4354_p3, %p4351_p2 }
  0x31   :  { %4359 = shalt.err (!%p4356_p4)
}
  0x32   :  { %s4360_s5 = scalar_lea.vmem %s97_s20, 8192  ;;  %p4365_p6 = scmp.lt.s32.totalorder %s97_s20, %s97_s20 }
  0x33   :  { %p4361_p5 = scmp.ne.s32.totalorder %s97_s20, %s4360_s5  ;;  %p4366_p7 = scmp.lt.s32.totalorder %s4360_s5, %s4360_s5 }
  0x35   :  { %p4367_p8 = por %p4366_p7, %p4365_p6 }
  0x37   :  { %p4368_p9 = pnand %p4367_p8, %p4361_p5 }
  0x39   :  { %4371 = shalt.err (!%p4368_p9)
}
  0x3a   :  { %s4566_s24 = smov 512   ;;  %s4567_s22 = smov 32  }
  0x3b   :  { %102 = dma.hbm_to_vmem [thread:$0]  %s5641_s8, 8192, %s97_s20, [#allocation11], %s4566_s24, %s4566_s24, %s4567_s22  }
  0x3c   :  { %s4372_s21 = scalar_lea.hbm %s5643_s10, 4096 }
  0x3d   :  { %p4373_p10 = scmp.ne.s32.totalorder %s5643_s10, %s4372_s21  ;;  %p4376_p11 = scmp.lt.u32.totalorder %s4372_s21, %s5643_s10 }
  0x3f   :  { %p4378_p12 = pnand %p4376_p11, %p4373_p10 }
  0x41   :  { %4381 = shalt.err (!%p4378_p12)
}
  0x42   :  { %s4382_s29 = scalar_lea.vmem %s4699_s23, 4096  ;;  %p4387_p0 = scmp.lt.s32.totalorder %s4699_s23, %s4699_s23 }
  0x43   :  { %p4383_p13 = scmp.ne.s32.totalorder %s4699_s23, %s4382_s29  ;;  %p4388_p1 = scmp.lt.s32.totalorder %s4382_s29, %s4382_s29 }
  0x45   :  { %p4389_p2 = por %p4388_p1, %p4387_p0 }
  0x47   :  { %p4390_p3 = pnand %p4389_p2, %p4383_p13 }
  0x49   :  { %4393 = shalt.err (!%p4390_p3)
}
  0x4a   :  { %s4568_s8 = smov 128   ;;  %s4569_s20 = smov 8  }
  0x4b   :  { %124 = dma.hbm_to_vmem [thread:$0]  %s5643_s10, 4096, %s4699_s23, [#allocation14], %s4568_s8, %s4568_s8, %s4569_s20  }
  0x4c   :  { %s4570_s5 = smov [#allocation16]   ;;  %s4571_s17 = smov [#allocation2]  }
  0x4d   :  { %s143_s0 = sshll.u32 %s4570_s5, 4  ;;  %s34_s18 = sshll.u32 %s4571_s17, 4  ;;  %s144_s0 = int_to_ptr.vmem [resolvable:$true] %s143_s0  ;;  %s4733_s18 = int_to_ptr.vmem [resolvable:$true] %s34_s18 }
  0x4e   :  { %s4394_s25 = scalar_lea.hbm %s5646_s13, 16 }
  0x4f   :  { %p4395_p4 = scmp.ne.s32.totalorder %s5646_s13, %s4394_s25  ;;  %p4398_p5 = scmp.lt.u32.totalorder %s4394_s25, %s5646_s13 }
  0x51   :  { %p4400_p6 = pnand %p4398_p5, %p4395_p4 }
  0x53   :  { %4403 = shalt.err (!%p4400_p6)
}
  0x54   :  { %s4404_s10 = scalar_lea.vmem %s144_s0, 16  ;;  %s4408_s23 = scalar_lea.vmem %s144_s0, 32 }
  0x55   :  { %p4405_p7 = scmp.ne.s32.totalorder %s144_s0, %s4404_s10  ;;  %p4409_p8 = scmp.lt.s32.totalorder %s144_s0, %s144_s0 }
  0x56   :  { %p4410_p9 = scmp.lt.s32.totalorder %s4408_s23, %s4404_s10 }
  0x58   :  { %p4411_p10 = por %p4410_p9, %p4409_p8 }
  0x5a   :  { %p4412_p11 = pnand %p4411_p10, %p4405_p7 }
  0x5c   :  { %4415 = shalt.err (!%p4412_p11)
}
  0x5d   :  { %146 = dma.hbm_to_vmem [thread:$0]  %s5646_s13, 16, %s144_s0, [#allocation17]  }
  0x5e   :  { %s4416_s5 = scalar_lea.hbm %s5634_s1, 128 }
  0x5f   :  { %p4417_p12 = scmp.ne.s32.totalorder %s5634_s1, %s4416_s5  ;;  %p4420_p13 = scmp.lt.u32.totalorder %s4416_s5, %s5634_s1 }
  0x61   :  { %p4422_p0 = pnand %p4420_p13, %p4417_p12 }
  0x63   :  { %4425 = shalt.err (!%p4422_p0)
}
  0x64   :  { %s4426_s26 = scalar_lea.vmem %s4733_s18, 128  ;;  %p4431_p2 = scmp.lt.s32.totalorder %s4733_s18, %s4733_s18 }
  0x65   :  { %p4427_p1 = scmp.ne.s32.totalorder %s4733_s18, %s4426_s26  ;;  %p4432_p3 = scmp.lt.s32.totalorder %s4426_s26, %s4426_s26 }
  0x67   :  { %p4433_p4 = por %p4432_p3, %p4431_p2 }
  0x69   :  { %p4434_p5 = pnand %p4433_p4, %p4427_p1 }
  0x6b   :  { %4437 = shalt.err (!%p4434_p5)
}
  0x6c   :  { %s4572_s13 = smov 64   ;;  %s4573_s0 = smov 4  }
  0x6d   :  { %40 = dma.hbm_to_vmem [thread:$0]  %s5634_s1, 128, %s4733_s18, [#allocation3], %s4572_s13, %s4572_s13, %s4573_s0  }
  0x6e   :  { %s4574_s29 = smov [#allocation6]   ;;  %s4575_s23 = smov [#allocation9]  }
  0x6f   :  { %s58_s10 = sshll.u32 %s4574_s29, 4  ;;  %s84_s8 = sshll.u32 %s4575_s23, 4  ;;  %s59_s10 = int_to_ptr.vmem [resolvable:$true] %s58_s10  ;;  %s4764_s8 = int_to_ptr.vmem [resolvable:$true] %s84_s8 }
  0x70   :  { %s4438_s3 = scalar_lea.hbm %s5637_s4, 5120 }
  0x71   :  { %p4439_p6 = scmp.ne.s32.totalorder %s5637_s4, %s4438_s3  ;;  %p4442_p7 = scmp.lt.u32.totalorder %s4438_s3, %s5637_s4 }
  0x73   :  { %p4444_p8 = pnand %p4442_p7, %p4439_p6 }
  0x75   :  { %4447 = shalt.err (!%p4444_p8)
}
  0x76   :  { %s4448_s1 = scalar_lea.vmem %s59_s10, 5120  ;;  %p4453_p10 = scmp.lt.s32.totalorder %s59_s10, %s59_s10 }
  0x77   :  { %p4449_p9 = scmp.ne.s32.totalorder %s59_s10, %s4448_s1  ;;  %p4454_p11 = scmp.lt.s32.totalorder %s4448_s1, %s4448_s1 }
  0x79   :  { %p4455_p12 = por %p4454_p11, %p4453_p10 }
  0x7b   :  { %p4456_p13 = pnand %p4455_p12, %p4449_p9 }
  0x7d   :  { %4459 = shalt.err (!%p4456_p13)
}
  0x7e   :  { %64 = dma.hbm_to_vmem [thread:$0]  %s5637_s4, 5120, %s59_s10, [#allocation5], %s4572_s13, %s4572_s13, %s4573_s0  }
  0x7f   :  { %s4460_s28 = scalar_lea.hbm %s5640_s7, 16384 }
  0x80   :  { %p4461_p0 = scmp.ne.s32.totalorder %s5640_s7, %s4460_s28  ;;  %p4464_p1 = scmp.lt.u32.totalorder %s4460_s28, %s5640_s7 }
  0x82   :  { %p4466_p2 = pnand %p4464_p1, %p4461_p0 }
  0x84   :  { %4469 = shalt.err (!%p4466_p2)
}
  0x85   :  { %s4470_s3 = scalar_lea.vmem %s4764_s8, 16384  ;;  %p4475_p4 = scmp.lt.s32.totalorder %s4764_s8, %s4764_s8 }
  0x86   :  { %p4471_p3 = scmp.ne.s32.totalorder %s4764_s8, %s4470_s3  ;;  %p4476_p5 = scmp.lt.s32.totalorder %s4470_s3, %s4470_s3 }
  0x88   :  { %p4477_p6 = por %p4476_p5, %p4475_p4 }
  0x8a   :  { %p4478_p7 = pnand %p4477_p6, %p4471_p3 }
  0x8c   :  { %4481 = shalt.err (!%p4478_p7)
}
  0x8d   :  { %90 = dma.hbm_to_vmem [thread:$0]  %s5640_s7, 16384, %s4764_s8, [#allocation8], %s4566_s24, %s4566_s24, %s4567_s22  }
  0x8e   :  { %s4576_s0 = smov [#allocation12]   ;;  %s4577_s5 = smov [#allocation15]  }
  0x8f   :  { %s109_s10 = sshll.u32 %s4576_s0, 4  ;;  %s131_s17 = sshll.u32 %s4577_s5, 4  ;;  %s110_s10 = int_to_ptr.vmem [resolvable:$true] %s109_s10  ;;  %s132_s17 = int_to_ptr.vmem [resolvable:$true] %s131_s17 }
  0x90   :  { %s4482_s1 = scalar_lea.hbm %s5642_s9, 64 }
  0x91   :  { %p4483_p8 = scmp.ne.s32.totalorder %s5642_s9, %s4482_s1  ;;  %p4486_p9 = scmp.lt.u32.totalorder %s4482_s1, %s5642_s9 }
  0x93   :  { %p4488_p10 = pnand %p4486_p9, %p4483_p8 }
  0x95   :  { %4491 = shalt.err (!%p4488_p10)
}
  0x96   :  { %s4492_s7 = scalar_lea.vmem %s110_s10, 64  ;;  %p4497_p12 = scmp.lt.s32.totalorder %s110_s10, %s110_s10 }
  0x97   :  { %p4493_p11 = scmp.ne.s32.totalorder %s110_s10, %s4492_s7  ;;  %p4498_p13 = scmp.lt.s32.totalorder %s4492_s7, %s4492_s7 }
  0x99   :  { %p4499_p0 = por %p4498_p13, %p4497_p12 }
  0x9b   :  { %p4500_p1 = pnand %p4499_p0, %p4493_p11 }
  0x9d   :  { %4503 = shalt.err (!%p4500_p1)
}
  0x9e   :  { %112 = dma.hbm_to_vmem [thread:$0]  %s5642_s9, 64, %s110_s10, [#allocation11]  }
  0x9f   :  { %s4504_s29 = scalar_lea.hbm %s5644_s11, 16 }
  0xa0   :  { %p4505_p2 = scmp.ne.s32.totalorder %s5644_s11, %s4504_s29  ;;  %p4508_p3 = scmp.lt.u32.totalorder %s4504_s29, %s5644_s11 }
  0xa2   :  { %p4510_p4 = pnand %p4508_p3, %p4505_p2 }
  0xa4   :  { %4513 = shalt.err (!%p4510_p4)
}
  0xa5   :  { %s4514_s4 = scalar_lea.vmem %s132_s17, 16  ;;  %s4518_s13 = scalar_lea.vmem %s132_s17, 32 }
  0xa6   :  { %p4515_p5 = scmp.ne.s32.totalorder %s132_s17, %s4514_s4  ;;  %p4519_p6 = scmp.lt.s32.totalorder %s132_s17, %s132_s17 }
  0xa7   :  { %p4520_p7 = scmp.lt.s32.totalorder %s4518_s13, %s4514_s4 }
  0xa9   :  { %p4521_p8 = por %p4520_p7, %p4519_p6 }
  0xab   :  { %p4522_p9 = pnand %p4521_p8, %p4515_p5 }
  0xad   :  { %4525 = shalt.err (!%p4522_p9)
}
  0xae   :  { %134 = dma.hbm_to_vmem [thread:$0]  %s5644_s11, 16, %s132_s17, [#allocation14]  }
  0xaf   :  { %s4578_s10 = smov [#allocation18]   ;;  %s4526_s1 = scalar_lea.hbm %s5648_s15, 16 }
  0xb0   :  { %s155_s5 = sshll.u32 %s4578_s10, 4  ;;  %p4527_p10 = scmp.ne.s32.totalorder %s5648_s15, %s4526_s1  ;;  %s156_s5 = int_to_ptr.vmem [resolvable:$true] %s155_s5 }
  0xb1   :  { %p4530_p11 = scmp.lt.u32.totalorder %s4526_s1, %s5648_s15 }
  0xb3   :  { %p4532_p12 = pnand %p4530_p11, %p4527_p10 }
  0xb5   :  { %4535 = shalt.err (!%p4532_p12)
}
  0xb6   :  { %s4536_s7 = scalar_lea.vmem %s156_s5, 16  ;;  %s4540_s11 = scalar_lea.vmem %s156_s5, 32 }
  0xb7   :  { %p4537_p13 = scmp.ne.s32.totalorder %s156_s5, %s4536_s7  ;;  %p4541_p0 = scmp.lt.s32.totalorder %s156_s5, %s156_s5 }
  0xb8   :  { %p4542_p1 = scmp.lt.s32.totalorder %s4540_s11, %s4536_s7 }
  0xba   :  { %p4543_p2 = por %p4542_p1, %p4541_p0 }
  0xbc   :  { %p4544_p3 = pnand %p4543_p2, %p4537_p13 }
  0xbe   :  { %4547 = shalt.err (!%p4544_p3)
}
  0xbf   :  { %158 = dma.hbm_to_vmem [thread:$0]  %s5648_s15, 16, %s156_s5, [#allocation17]  }
  0xc0   :  { %4548 = dma.done.wait [#allocation3], 128  }
  0xc1   :  { %4549 = vsyncadd [#allocation3], 4294967168 }
  0xc2   :  { %4550 = dma.done.wait [#allocation5], 5136  }
  0xc3   :  { %4551 = vsyncadd [#allocation5], 4294962160 }
  0xc4   :  { %4552 = dma.done.wait [#allocation8], 16464  }
  0xc5   :  { %4553 = vsyncadd [#allocation8], 4294950832 }
  0xc6   :  { %4554 = dma.done.wait [#allocation11], 8256  }
  0xc7   :  { %4555 = vsyncadd [#allocation11], 4294959040 }
  0xc8   :  { %4556 = dma.done.wait [#allocation14], 4112  }
  0xc9   :  { %4557 = vsyncadd [#allocation14], 4294963184 }
  0xca   :  { %4558 = dma.done.wait [#allocation17], 32  }
  0xcb   :  { %4559 = vsyncadd [#allocation17], 4294967264  ;;  %v5655_v0 = vmov 0.0   ;;  %v195_v1 = vld [vmem:[%s5635_s2] sm:$0xff]  ;;  %v196_v2 = vld [vmem:[%s5635_s2 + $0x8] sm:$0xff]  ;;  %s5786_s18 = sld [smem:[#allocation114_spill]] }
  0xcc   :  { %3265 = vmatprep.subr.bf16.mxu1 %v5655_v0  ;;  %v197_v3 = vld [vmem:[%s5635_s2 + $0x10] sm:$0xff]  ;;  %v3483_v4 = vpack.c.bf16 %v196_v2, %v195_v1  ;;  %v198_v5 = vld [vmem:[%s5635_s2 + $0x18] sm:$0xff]  ;;  %v199_v7 = vld [vmem:[%s5635_s2 + $0x20] sm:$0xff]  ;;  %vm4580_vm0 = vmmov 0   ;;  %vm416_vm1 = vcmask 130048   ;;  %vm2929_vm3 = vcmask 261120  }
  0xcd   :  { %v3487_v6 = vpack.c.bf16 %v198_v5, %v197_v3  ;;  %v200_v8 = vld [vmem:[%s5635_s2 + $0x28] sm:$0xff]  ;;  %v201_v10 = vld [vmem:[%s5635_s2 + $0x30] sm:$0xff]  ;;  %v202_v11 = vld [vmem:[%s5635_s2 + $0x38] sm:$0xff]  ;;  %3281 = vmatprep.mubr.msk.bf16.mxu1 %vm4580_vm0, %v5655_v0 }
  0xce   :  { %3484 = vmatprep.subr.bf16.mxu0 %v3483_v4  ;;  %v3491_v9 = vpack.c.bf16 %v200_v8, %v199_v7  ;;  %v4205_v13 = vld [vmem:[#allocation6] sm:$0xff]   ;;  %v4206_v14 = vld [vmem:[#allocation6 + $0x8] sm:$0xff]   ;;  %v3495_v15 = vpack.c.bf16 %v202_v11, %v201_v10  ;;  %v203_v16 = vld [vmem:[%s5635_s2 + $0x40] sm:$0xff] }
  0xcf   :  { %3486 = vmatpush3.bf16.msra.mxu0 %v3483_v4  ;;  %3266 = vmatpush3.bf16.msra.mxu1 %v4205_v13  ;;  %v204_v17 = vld [vmem:[%s5635_s2 + $0x48] sm:$0xff]  ;;  %v4207_v18 = vld [vmem:[#allocation6 + $0x10] sm:$0xff]   ;;  %v205_v19 = vld [vmem:[%s5635_s2 + $0x50] sm:$0xff] }
  0xd0   :  { %3488 = vmatprep.subr.bf16.mxu0 %v3487_v6  ;;  %3267 = vmatprep.subr.bf16.mxu1 %v5655_v0  ;;  %v206_v20 = vld [vmem:[%s5635_s2 + $0x58] sm:$0xff]  ;;  %v3499_v21 = vpack.c.bf16 %v204_v17, %v203_v16  ;;  %v4208_v22 = vld [vmem:[#allocation6 + $0x18] sm:$0xff]   ;;  %v4209_v26 = vld [vmem:[#allocation6 + $0x20] sm:$0xff]  }
  0xd1   :  { %v193_v12 = vld [vmem:[%s5786_s18] sm:$0xff]  ;;  %v208_v24 = vld [vmem:[%s5635_s2 + $0x68] sm:$0xff]  ;;  %v3503_v25 = vpack.c.bf16 %v206_v20, %v205_v19  ;;  %v209_v27 = vld [vmem:[%s5635_s2 + $0x70] sm:$0xff] }
  0xd2   :  { %3262 = vmatprep.mubr.f32.mxu0 %v193_v12  ;;  %v207_v23 = vld [vmem:[%s5635_s2 + $0x60] sm:$0xff]  ;;  %v210_v28 = vld [vmem:[%s5635_s2 + $0x78] sm:$0xff]  ;;  %v194_v32 = vld [vmem:[%s5786_s18 + $0x8] sm:$0xff] }
  0xd3   :  { %3490 = vmatpush3.bf16.msra.mxu0 %v3487_v6  ;;  %3268 = vmatpush3.bf16.msra.mxu1 %v4206_v14  ;;  %v3507_v29 = vpack.c.bf16 %v208_v24, %v207_v23  ;;  %v4210_v30 = vld [vmem:[#allocation6 + $0x28] sm:$0xff]   ;;  %v3511_v31 = vpack.c.bf16 %v210_v28, %v209_v27  ;;  %v4211_v33 = vld [vmem:[#allocation6 + $0x30] sm:$0xff]   ;;  %v4212_v34 = vld [vmem:[#allocation6 + $0x38] sm:$0xff]  }
  0xd4   :  { %3492 = vmatprep.subr.bf16.mxu0 %v3491_v9  ;;  %3269 = vmatprep.subr.bf16.mxu1 %v5655_v0  ;;  %v3014_v35 = vld [vmem:[#allocation4] ss:$0 sm:$0xff]  ;;  %v4214_v43 = vld [vmem:[#allocation6 + $0x40] sm:$0xff]   ;;  %v4215_v44 = vld [vmem:[#allocation6 + $0x48] sm:$0xff]  }
  0xd5   :  { %v4216_v45 = vld [vmem:[#allocation6 + $0x50] sm:$0xff]   ;;  %v4217_v46 = vld [vmem:[#allocation6 + $0x58] sm:$0xff]   ;;  %v4218_v47 = vld [vmem:[#allocation6 + $0x60] sm:$0xff]  }
  0xd6   :  { %v4219_v48 = vld [vmem:[#allocation6 + $0x68] sm:$0xff]   ;;  %v4910_v54 = vld [vmem:[#allocation2] sm:$0xff]   ;;  %v3023_v57 = vld [vmem:[#allocation7] ss:$0 sm:$0xff] }
  0xd7   :  { %3494 = vmatpush3.bf16.msra.mxu0 %v3491_v9  ;;  %3270 = vmatpush3.bf16.msra.mxu1 %v4207_v18  ;;  %v4220_v55 = vld [vmem:[#allocation6 + $0x70] sm:$0xff]   ;;  %v4221_v56 = vld [vmem:[#allocation6 + $0x78] sm:$0xff]   ;;  %v4222_v7 = vld [vmem:[#allocation6 + $0x80] sm:$0xff]  }
  0xd8   :  { %3496 = vmatprep.subr.bf16.mxu0 %v3495_v15  ;;  %3271 = vmatprep.subr.bf16.mxu1 %v5655_v0  ;;  %v4223_v8 = vld [vmem:[#allocation6 + $0x88] sm:$0xff]   ;;  %v4224_v9 = vld [vmem:[#allocation6 + $0x90] sm:$0xff]   ;;  %v4225_v10 = vld [vmem:[#allocation6 + $0x98] sm:$0xff]  }
  0xd9   :  { %v4226_v11 = vld [vmem:[#allocation6 + $0xa0] sm:$0xff]   ;;  %v4227_v12 = vld [vmem:[#allocation6 + $0xa8] sm:$0xff]   ;;  %v4228_v13 = vld [vmem:[#allocation6 + $0xb0] sm:$0xff]  }
  0xda   :  { %v4229_v14 = vld [vmem:[#allocation6 + $0xb8] sm:$0xff]   ;;  %v4230_v28 = vld [vmem:[#allocation6 + $0xc0] sm:$0xff]  }
  0xdb   :  { %3498 = vmatpush3.bf16.msra.mxu0 %v3495_v15  ;;  %3272 = vmatpush3.bf16.msra.mxu1 %v4208_v22  ;;  %v3034_v15 = vld [vmem:[#allocation7 + $0x1] ss:$0 sm:$0xff] }
  0xdc   :  { %3500 = vmatprep.subr.bf16.mxu0 %v3499_v21  ;;  %3273 = vmatprep.subr.bf16.mxu1 %v5655_v0 }
  0xdf   :  { %3502 = vmatpush3.bf16.msra.mxu0 %v3499_v21  ;;  %3274 = vmatpush3.bf16.msra.mxu1 %v4209_v26 }
  0xe0   :  { %3504 = vmatprep.subr.bf16.mxu0 %v3503_v25  ;;  %3275 = vmatprep.subr.bf16.mxu1 %v5655_v0 }
  0xe3   :  { %3506 = vmatpush3.bf16.msra.mxu0 %v3503_v25  ;;  %3276 = vmatpush3.bf16.msra.mxu1 %v4210_v30  ;;  %v4232_v30 = vld [vmem:[#allocation6 + $0xd0] sm:$0xff]  }
  0xe4   :  { %3508 = vmatprep.subr.bf16.mxu0 %v3507_v29  ;;  %3277 = vmatprep.subr.bf16.mxu1 %v5655_v0 }
  0xe7   :  { %3510 = vmatpush3.bf16.msra.mxu0 %v3507_v29  ;;  %3278 = vmatpush3.bf16.msra.mxu1 %v4211_v33  ;;  %v4231_v29 = vld [vmem:[#allocation6 + $0xc8] sm:$0xff]  }
  0xe8   :  { %3512 = vmatprep.subr.bf16.mxu0 %v3511_v31  ;;  %3279 = vmatprep.subr.bf16.mxu1 %v5655_v0  ;;  %v4235_v33 = vld [vmem:[#allocation6 + $0xe8] sm:$0xff]  }
  0xeb   :  { %3514 = vmatpush3.bf16.msra.mxu0 %v3511_v31  ;;  %3280 = vmatpush3.bf16.msra.mxu1 %v4212_v34  ;;  %v4233_v31 = vld [vmem:[#allocation6 + $0xd8] sm:$0xff]   ;;  %v4236_v34 = vld [vmem:[#allocation6 + $0xf0] sm:$0xff]  }
  0xec   :  { %3285 = vmatprep.subr.bf16.mxu0 %v5655_v0  ;;  %3291 = vmatprep.subr.bf16.mxu1 %v5655_v0 }
  0xee   :  { %3263 = vmatmul.mubr.f32.vlgmr.msra.gmra.mrb[0].mxu0 %v194_v32  ;;  %v4234_v32 = vld [vmem:[#allocation6 + $0xe0] sm:$0xff]  }
  0xef   :  { %3287 = vmatprep.mubr.msk.bf16.mxu0 %vm4580_vm0, %v5655_v0 }
 0x1c1   :  { %v3264_v36 = vpop.f32.mrb[0].mxu0 }
 0x1c2   :  { %v290_v37 = vadd.f32 %v3264_v36, %v3014_v35  ;;  %v284_v38 = vpop.f32.mrb[1].mxu0  ;;  %v3044_v36 = vld [vmem:[#allocation7 + $0x2] ss:$0 sm:$0xff] }
 0x1c3   :  { %v285_v39 = vadd.f32 %v3014_v35, %v284_v38  ;;  %v4237_v35 = vld [vmem:[#allocation6 + $0xf8] sm:$0xff]  }
 0x1c4   :  { %v294_v40 = vmax.f32 %v290_v37, 0.0 }
 0x1c5   :  { %v293_v41 = vmax.f32 %v285_v39, 0.0 }
 0x1c7   :  { %v297_v42 = vpack.c.bf16 %v294_v40, %v293_v41 }
 0x1c9   :  { %3282 = vmatmul.mubr.bf16.vlgmr.msra.gmra.mrb[0].mxu1 %v297_v42 }
 0x1ca   :  { %3307 = vmatprep.mubr.msk.bf16.mxu1 %vm4580_vm0, %v5655_v0  ;;  %3292 = vmatpush3.bf16.msra.mxu1 %v4214_v43 }
 0x1cb   :  { %3293 = vmatprep.subr.bf16.mxu1 %v5655_v0 }
 0x1ce   :  { %3294 = vmatpush3.bf16.msra.mxu1 %v4215_v44 }
 0x1cf   :  { %3295 = vmatprep.subr.bf16.mxu1 %v5655_v0 }
 0x1d2   :  { %3296 = vmatpush3.bf16.msra.mxu1 %v4216_v45 }
 0x1d3   :  { %3297 = vmatprep.subr.bf16.mxu1 %v5655_v0 }
 0x1d6   :  { %3298 = vmatpush3.bf16.msra.mxu1 %v4217_v46 }
 0x1d7   :  { %3299 = vmatprep.subr.bf16.mxu1 %v5655_v0 }
 0x1da   :  { %3300 = vmatpush3.bf16.msra.mxu1 %v4218_v47 }
 0x1db   :  { %3301 = vmatprep.subr.bf16.mxu1 %v5655_v0 }
 0x1de   :  { %3302 = vmatpush3.bf16.msra.mxu1 %v4219_v48 }
 0x1df   :  { %3303 = vmatprep.subr.bf16.mxu1 %v5655_v0 }
 0x1e2   :  { %3304 = vmatpush3.bf16.msra.mxu1 %v4220_v55  ;;  %v4243_v55 = vld [vmem:[#allocation6 + $0x128] sm:$0xff]  }
 0x1e3   :  { %3305 = vmatprep.subr.bf16.mxu1 %v5655_v0 }
 0x1e6   :  { %3306 = vmatpush3.bf16.msra.mxu1 %v4221_v56  ;;  %v4244_v56 = vld [vmem:[#allocation6 + $0x130] sm:$0xff]  }
 0x1e7   :  { %3337 = vmatprep.subr.bf16.mxu1 %v5655_v0 }
 0x29c   :  { %v396_v49 = vpop.f32.mrb[0].mxu1 }
 0x29d   :  { %v3283_v50 = vpop.f32.mrb[1].mxu1 }
 0x29e   :  { %v399_v51 = vpop.f32.mrb[2].mxu1  ;;  %v4239_v50 = vld [vmem:[#allocation6 + $0x108] sm:$0xff]  }
 0x29f   :  { %v403_v52 = vpack.c.bf16 %v399_v51, %v396_v49  ;;  %v3284_v53 = vpop.f32.mrb[3].mxu1  ;;  %v4238_v49 = vld [vmem:[#allocation6 + $0x100] sm:$0xff]   ;;  %v4240_v51 = vld [vmem:[#allocation6 + $0x110] sm:$0xff]  }
 0x2a0   :  { %v4242_v53 = vld [vmem:[#allocation6 + $0x120] sm:$0xff]  }
 0x2a1   :  { %3286 = vmatpush3.bf16.msra.mxu0 %v403_v52  ;;  %v4241_v52 = vld [vmem:[#allocation6 + $0x118] sm:$0xff]  }
 0x2a2   :  { %3311 = vmatprep.subr.bf16.mxu0 %v5655_v0 }
 0x2a4   :  { %3288 = vmatmul.mubr.msk.bf16.vlgmr.msra.gmra.mrb[4].mxu0 %vm416_vm1, %v4910_v54 }
 0x2a5   :  { %3313 = vmatprep.mubr.msk.bf16.mxu0 %vm4580_vm0, %v5655_v0 }
 0x377   :  { %v454_v58 = vpop.f32.mrb[4].mxu0 }
 0x378   :  { %v3289_v59 = vpop.f32.mrb[5].mxu0  ;;  %v455_v61 = vadd.f32 %v3023_v57, %v454_v58  ;;  %v1223_v58 = vld [vmem:[#allocation10 + $0x18] sm:$0xff] }
 0x379   :  { %v457_v60 = vpop.f32.mrb[6].mxu0  ;;  %v1227_v59 = vld [vmem:[#allocation10 + $0x38] sm:$0xff] }
 0x37a   :  { %v458_v62 = vadd.f32 %v3023_v57, %v457_v60  ;;  %v3290_v63 = vpop.f32.mrb[7].mxu0  ;;  %v4245_v57 = vld [vmem:[#allocation6 + $0x138] sm:$0xff]   ;;  %v4963_v60 = vpack.c.bf16 %v1227_v59, %v1223_v58 }
 0x37b   :  { %v1103_v58 = vld [vmem:[#allocation9 + $0x58] sm:$0xff] }
 0x37c   :  { %v461_v1 = vpack.c.bf16 %v458_v62, %v455_v61  ;;  %v3054_v61 = vld [vmem:[#allocation7 + $0x3] ss:$0 sm:$0xff] }
 0x37d   :  { %v1107_v59 = vld [vmem:[#allocation9 + $0x78] sm:$0xff] }
 0x37e   :  { %3308 = vmatmul.mubr.bf16.vlgmr.msra.gmra.mrb[4].mxu1 %v461_v1  ;;  %v1222_v1 = vld [vmem:[#allocation10 + $0x10] sm:$0xff] }
 0x37f   :  { %3339 = vmatprep.mubr.msk.bf16.mxu1 %vm4580_vm0, %v5655_v0 }
 0x451   :  { %v561_v2 = vpop.f32.mrb[4].mxu1 }
 0x452   :  { %v3309_v3 = vpop.f32.mrb[5].mxu1 }
 0x453   :  { %v564_v4 = vpop.f32.mrb[6].mxu1 }
 0x454   :  { %v568_v5 = vpack.c.bf16 %v564_v4, %v561_v2  ;;  %v3310_v6 = vpop.f32.mrb[7].mxu1  ;;  %v1226_v2 = vld [vmem:[#allocation10 + $0x30] sm:$0xff]  ;;  %v1231_v4 = vld [vmem:[#allocation10 + $0x58] sm:$0xff] }
 0x456   :  { %3312 = vmatpush3.bf16.msra.mxu0 %v568_v5  ;;  %v1235_v5 = vld [vmem:[#allocation10 + $0x78] sm:$0xff] }
 0x457   :  { %3317 = vmatprep.subr.bf16.mxu0 %v5655_v0 }
 0x459   :  { %3314 = vmatmul.mubr.msk.bf16.vlgmr.msra.gmra.mrb[8].mxu0 %vm416_vm1, %v4910_v54 }
 0x45a   :  { %3318 = vmatpush3.bf16.msra.mxu0 %v4222_v7  ;;  %3333 = vmatprep.mubr.msk.bf16.mxu0 %vm4580_vm0, %v5655_v0 }
 0x45b   :  { %3319 = vmatprep.subr.bf16.mxu0 %v5655_v0 }
 0x45e   :  { %3320 = vmatpush3.bf16.msra.mxu0 %v4223_v8 }
 0x45f   :  { %3321 = vmatprep.subr.bf16.mxu0 %v5655_v0 }
 0x462   :  { %3322 = vmatpush3.bf16.msra.mxu0 %v4224_v9  ;;  %v4966_v9 = vpack.c.bf16 %v1226_v2, %v1222_v1  ;;  %v1111_v2 = vld [vmem:[#allocation9 + $0x98] sm:$0xff] }
 0x463   :  { %3323 = vmatprep.subr.bf16.mxu0 %v5655_v0 }
 0x466   :  { %3324 = vmatpush3.bf16.msra.mxu0 %v4225_v10 }
 0x467   :  { %3325 = vmatprep.subr.bf16.mxu0 %v5655_v0 }
 0x46a   :  { %3326 = vmatpush3.bf16.msra.mxu0 %v4226_v11  ;;  %v4968_v11 = vpack.c.bf16 %v1235_v5, %v1231_v4  ;;  %v1110_v5 = vld [vmem:[#allocation9 + $0x90] sm:$0xff] }
 0x46b   :  { %3327 = vmatprep.subr.bf16.mxu0 %v5655_v0 }
 0x46e   :  { %3328 = vmatpush3.bf16.msra.mxu0 %v4227_v12  ;;  %v1230_v12 = vld [vmem:[#allocation10 + $0x50] sm:$0xff] }
 0x46f   :  { %3329 = vmatprep.subr.bf16.mxu0 %v5655_v0 }
 0x472   :  { %3330 = vmatpush3.bf16.msra.mxu0 %v4228_v13  ;;  %v1234_v13 = vld [vmem:[#allocation10 + $0x70] sm:$0xff] }
 0x473   :  { %3331 = vmatprep.subr.bf16.mxu0 %v5655_v0 }
 0x476   :  { %3332 = vmatpush3.bf16.msra.mxu0 %v4229_v14  ;;  %v1239_v14 = vld [vmem:[#allocation10 + $0x98] sm:$0xff] }
 0x477   :  { %3363 = vmatprep.subr.bf16.mxu0 %v5655_v0 }
 0x52c   :  { %v611_v16 = vpop.f32.mrb[8].mxu0 }
 0x52d   :  { %v3315_v17 = vpop.f32.mrb[9].mxu0  ;;  %v612_v19 = vadd.f32 %v3034_v15, %v611_v16  ;;  %v4971_v16 = vpack.c.bf16 %v1234_v13, %v1230_v12  ;;  %v1118_v13 = vld [vmem:[#allocation9 + $0xd0] sm:$0xff] }
 0x52e   :  { %v614_v18 = vpop.f32.mrb[10].mxu0 }
 0x52f   :  { %v615_v20 = vadd.f32 %v3034_v15, %v614_v18  ;;  %v3316_v21 = vpop.f32.mrb[11].mxu0  ;;  %v1243_v15 = vld [vmem:[#allocation10 + $0xb8] sm:$0xff]  ;;  %v1238_v18 = vld [vmem:[#allocation10 + $0x90] sm:$0xff] }
 0x530   :  { %v4975_v17 = vpack.c.bf16 %v1243_v15, %v1239_v14  ;;  %v1251_v21 = vld [vmem:[#allocation10 + $0xf8] sm:$0xff]  ;;  %v1122_v14 = vld [vmem:[#allocation9 + $0xf0] sm:$0xff] }
 0x531   :  { %v618_v22 = vpack.c.bf16 %v615_v20, %v612_v19  ;;  %v1242_v19 = vld [vmem:[#allocation10 + $0xb0] sm:$0xff]  ;;  %v1247_v20 = vld [vmem:[#allocation10 + $0xd8] sm:$0xff]  ;;  %v5034_v15 = vpack.c.bf16 %v1122_v14, %v1118_v13 }
 0x532   :  { %v1175_v13 = vld [vmem:[#allocation9 + $0x298] sm:$0xff] }
 0x533   :  { %3334 = vmatmul.mubr.bf16.vlgmr.msra.gmra.mrb[12].mxu0 %v618_v22  ;;  %v4978_v22 = vpack.c.bf16 %v1242_v19, %v1238_v18  ;;  %5800 = vst [vmem:[#allocation38_spill] sm:$0xff] %v5034_v15  ;;  %v1127_v18 = vld [vmem:[#allocation9 + $0x118] sm:$0xff] }
 0x534   :  { %3365 = vmatprep.mubr.msk.bf16.mxu0 %vm4580_vm0, %v5655_v0  ;;  %v1131_v19 = vld [vmem:[#allocation9 + $0x138] sm:$0xff] }
 0x535   :  { %v1179_v14 = vld [vmem:[#allocation9 + $0x2b8] sm:$0xff] }
 0x606   :  { %v718_v23 = vpop.f32.mrb[12].mxu0 }
 0x607   :  { %v3335_v24 = vpop.f32.mrb[13].mxu0 }
 0x608   :  { %v721_v25 = vpop.f32.mrb[14].mxu0  ;;  %v1246_v24 = vld [vmem:[#allocation10 + $0xd0] sm:$0xff] }
 0x609   :  { %v725_v26 = vpack.c.bf16 %v721_v25, %v718_v23  ;;  %v3336_v27 = vpop.f32.mrb[15].mxu0  ;;  %v4981_v23 = vpack.c.bf16 %v1251_v21, %v1247_v20  ;;  %v1250_v25 = vld [vmem:[#allocation10 + $0xf0] sm:$0xff]  ;;  %v5038_v20 = vpack.c.bf16 %v1131_v19, %v1127_v18  ;;  %v5074_v18 = vpack.c.bf16 %v1179_v14, %v1175_v13 }
 0x60a   :  { %v1259_v27 = vld [vmem:[#allocation10 + $0x138] sm:$0xff]  ;;  %v1126_v21 = vld [vmem:[#allocation9 + $0x110] sm:$0xff] }
 0x60b   :  { %3338 = vmatpush3.bf16.msra.mxu1 %v725_v26  ;;  %v1255_v26 = vld [vmem:[#allocation10 + $0x118] sm:$0xff]  ;;  %5801 = vst [vmem:[#allocation39_spill] sm:$0xff] %v5038_v20  ;;  %5813 = vst [vmem:[#allocation51_spill] sm:$0xff] %v5074_v18  ;;  %v1174_v19 = vld [vmem:[#allocation9 + $0x290] sm:$0xff] }
 0x60c   :  { %3343 = vmatprep.subr.bf16.mxu1 %v5655_v0  ;;  %v1206_v14 = vld [vmem:[#allocation9 + $0x390] sm:$0xff] }
 0x60e   :  { %3340 = vmatmul.mubr.msk.bf16.vlgmr.msra.gmra.mrb[8].mxu1 %vm416_vm1, %v4910_v54 }
 0x60f   :  { %3344 = vmatpush3.bf16.msra.mxu1 %v4230_v28  ;;  %3359 = vmatprep.mubr.msk.bf16.mxu1 %vm4580_vm0, %v5655_v0  ;;  %v4984_v28 = vpack.c.bf16 %v1250_v25, %v1246_v24  ;;  %v1130_v24 = vld [vmem:[#allocation9 + $0x130] sm:$0xff] }
 0x610   :  { %3345 = vmatprep.subr.bf16.mxu1 %v5655_v0  ;;  %v5041_v25 = vpack.c.bf16 %v1130_v24, %v1126_v21  ;;  %v1178_v21 = vld [vmem:[#allocation9 + $0x2b0] sm:$0xff] }
 0x611   :  { %v5077_v24 = vpack.c.bf16 %v1178_v21, %v1174_v19  ;;  %v1210_v19 = vld [vmem:[#allocation9 + $0x3b0] sm:$0xff] }
 0x612   :  { %5802 = vst [vmem:[#allocation40_spill] sm:$0xff] %v5041_v25  ;;  %v5101_v21 = vpack.c.bf16 %v1210_v19, %v1206_v14  ;;  %v1228_v19 = vld [vmem:[#allocation10 + $0x40] sm:$0xff] }
 0x613   :  { %3346 = vmatpush3.bf16.msra.mxu1 %v4231_v29  ;;  %v4987_v29 = vpack.c.bf16 %v1259_v27, %v1255_v26  ;;  %v1135_v26 = vld [vmem:[#allocation9 + $0x158] sm:$0xff]  ;;  %5814 = vst [vmem:[#allocation52_spill] sm:$0xff] %v5077_v24 }
 0x614   :  { %3347 = vmatprep.subr.bf16.mxu1 %v5655_v0  ;;  %v1139_v27 = vld [vmem:[#allocation9 + $0x178] sm:$0xff]  ;;  %5822 = vst [vmem:[#allocation60_spill] sm:$0xff] %v5101_v21 }
 0x617   :  { %3348 = vmatpush3.bf16.msra.mxu1 %v4232_v30  ;;  %v1254_v30 = vld [vmem:[#allocation10 + $0x110] sm:$0xff] }
 0x618   :  { %3349 = vmatprep.subr.bf16.mxu1 %v5655_v0 }
 0x61b   :  { %3350 = vmatpush3.bf16.msra.mxu1 %v4233_v31  ;;  %v1258_v31 = vld [vmem:[#allocation10 + $0x130] sm:$0xff] }
 0x61c   :  { %3351 = vmatprep.subr.bf16.mxu1 %v5655_v0 }
 0x61f   :  { %3352 = vmatpush3.bf16.msra.mxu1 %v4234_v32  ;;  %v1263_v32 = vld [vmem:[#allocation10 + $0x158] sm:$0xff] }
 0x620   :  { %3353 = vmatprep.subr.bf16.mxu1 %v5655_v0 }
 0x623   :  { %3354 = vmatpush3.bf16.msra.mxu1 %v4235_v33  ;;  %v1267_v33 = vld [vmem:[#allocation10 + $0x178] sm:$0xff] }
 0x624   :  { %3355 = vmatprep.subr.bf16.mxu1 %v5655_v0 }
 0x627   :  { %3356 = vmatpush3.bf16.msra.mxu1 %v4236_v34  ;;  %v4990_v34 = vpack.c.bf16 %v1258_v31, %v1254_v30  ;;  %v5044_v30 = vpack.c.bf16 %v1139_v27, %v1135_v26  ;;  %v1134_v31 = vld [vmem:[#allocation9 + $0x150] sm:$0xff]  ;;  %v1183_v26 = vld [vmem:[#allocation9 + $0x2d8] sm:$0xff] }
 0x628   :  { %3357 = vmatprep.subr.bf16.mxu1 %v5655_v0  ;;  %v1187_v27 = vld [vmem:[#allocation9 + $0x2f8] sm:$0xff] }
 0x629   :  { %5803 = vst [vmem:[#allocation41_spill] sm:$0xff] %v5044_v30 }
 0x62b   :  { %3358 = vmatpush3.bf16.msra.mxu1 %v4237_v35  ;;  %v4993_v35 = vpack.c.bf16 %v1267_v33, %v1263_v32  ;;  %v1138_v32 = vld [vmem:[#allocation9 + $0x170] sm:$0xff] }
 0x62c   :  { %3389 = vmatprep.subr.bf16.mxu1 %v5655_v0  ;;  %v5047_v33 = vpack.c.bf16 %v1138_v32, %v1134_v31  ;;  %v5080_v31 = vpack.c.bf16 %v1187_v27, %v1183_v26  ;;  %v1182_v32 = vld [vmem:[#allocation9 + $0x2d0] sm:$0xff]  ;;  %v1215_v26 = vld [vmem:[#allocation9 + $0x3d8] sm:$0xff] }
 0x62d   :  { %5787 = vst [vmem:[#allocation25_spill] sm:$0xff] %v4993_v35  ;;  %v1219_v27 = vld [vmem:[#allocation9 + $0x3f8] sm:$0xff] }
 0x62e   :  { %5804 = vst [vmem:[#allocation42_spill] sm:$0xff] %v5047_v33  ;;  %5815 = vst [vmem:[#allocation53_spill] sm:$0xff] %v5080_v31 }
 0x6e1   :  { %v768_v37 = vpop.f32.mrb[8].mxu1 }
 0x6e2   :  { %v3341_v38 = vpop.f32.mrb[9].mxu1  ;;  %v769_v40 = vadd.f32 %v3044_v36, %v768_v37  ;;  %v1266_v37 = vld [vmem:[#allocation10 + $0x170] sm:$0xff] }
 0x6e3   :  { %v771_v39 = vpop.f32.mrb[10].mxu1  ;;  %v1271_v38 = vld [vmem:[#allocation10 + $0x198] sm:$0xff] }
 0x6e4   :  { %v772_v41 = vadd.f32 %v3044_v36, %v771_v39  ;;  %v3342_v42 = vpop.f32.mrb[11].mxu1  ;;  %v1262_v36 = vld [vmem:[#allocation10 + $0x150] sm:$0xff]  ;;  %v1275_v39 = vld [vmem:[#allocation10 + $0x1b8] sm:$0xff] }
 0x6e5   :  { %v1270_v42 = vld [vmem:[#allocation10 + $0x190] sm:$0xff] }
 0x6e6   :  { %v775_v43 = vpack.c.bf16 %v772_v41, %v769_v40  ;;  %v4996_v40 = vpack.c.bf16 %v1266_v37, %v1262_v36  ;;  %v4999_v41 = vpack.c.bf16 %v1275_v39, %v1271_v38  ;;  %v1143_v36 = vld [vmem:[#allocation9 + $0x198] sm:$0xff]  ;;  %v1142_v39 = vld [vmem:[#allocation9 + $0x190] sm:$0xff] }
 0x6e7   :  { %v1147_v37 = vld [vmem:[#allocation9 + $0x1b8] sm:$0xff] }
 0x6e8   :  { %3360 = vmatmul.mubr.bf16.vlgmr.msra.gmra.mrb[12].mxu1 %v775_v43  ;;  %5788 = vst [vmem:[#allocation26_spill] sm:$0xff] %v4996_v40  ;;  %5789 = vst [vmem:[#allocation27_spill] sm:$0xff] %v4999_v41  ;;  %v1274_v43 = vld [vmem:[#allocation10 + $0x1b0] sm:$0xff]  ;;  %v5050_v38 = vpack.c.bf16 %v1147_v37, %v1143_v36 }
 0x6e9   :  { %3391 = vmatprep.mubr.msk.bf16.mxu1 %vm4580_vm0, %v5655_v0  ;;  %v1186_v36 = vld [vmem:[#allocation9 + $0x2f0] sm:$0xff] }
 0x6ea   :  { %5805 = vst [vmem:[#allocation43_spill] sm:$0xff] %v5050_v38  ;;  %v5083_v37 = vpack.c.bf16 %v1186_v36, %v1182_v32  ;;  %v1221_v32 = vld [vmem:[#allocation10 + $0x8] sm:$0xff] }
 0x6eb   :  { %v1225_v36 = vld [vmem:[#allocation10 + $0x28] sm:$0xff] }
 0x6ec   :  { %5816 = vst [vmem:[#allocation54_spill] sm:$0xff] %v5083_v37 }
 0x7bb   :  { %v875_v44 = vpop.f32.mrb[12].mxu1 }
 0x7bc   :  { %v3361_v45 = vpop.f32.mrb[13].mxu1 }
 0x7bd   :  { %v878_v46 = vpop.f32.mrb[14].mxu1  ;;  %v1283_v45 = vld [vmem:[#allocation10 + $0x1f8] sm:$0xff] }
 0x7be   :  { %v882_v47 = vpack.c.bf16 %v878_v46, %v875_v44  ;;  %v3362_v48 = vpop.f32.mrb[15].mxu1  ;;  %v1279_v44 = vld [vmem:[#allocation10 + $0x1d8] sm:$0xff]  ;;  %v5002_v46 = vpack.c.bf16 %v1274_v43, %v1270_v42  ;;  %v1146_v42 = vld [vmem:[#allocation9 + $0x1b0] sm:$0xff] }
 0x7bf   :  { %v1278_v48 = vld [vmem:[#allocation10 + $0x1d0] sm:$0xff]  ;;  %v5053_v43 = vpack.c.bf16 %v1146_v42, %v1142_v39  ;;  %v1191_v39 = vld [vmem:[#allocation9 + $0x318] sm:$0xff] }
 0x7c0   :  { %3364 = vmatpush3.bf16.msra.mxu0 %v882_v47  ;;  %5790 = vst [vmem:[#allocation28_spill] sm:$0xff] %v5002_v46  ;;  %v5005_v47 = vpack.c.bf16 %v1283_v45, %v1279_v44  ;;  %v1151_v44 = vld [vmem:[#allocation9 + $0x1d8] sm:$0xff] }
 0x7c1   :  { %3369 = vmatprep.subr.bf16.mxu0 %v5655_v0  ;;  %5806 = vst [vmem:[#allocation44_spill] sm:$0xff] %v5053_v43  ;;  %v1155_v45 = vld [vmem:[#allocation9 + $0x1f8] sm:$0xff] }
 0x7c2   :  { %5791 = vst [vmem:[#allocation29_spill] sm:$0xff] %v5005_v47  ;;  %v1195_v42 = vld [vmem:[#allocation9 + $0x338] sm:$0xff] }
 0x7c3   :  { %3366 = vmatmul.mubr.msk.bf16.vlgmr.msra.gmra.mrb[16].mxu0 %vm416_vm1, %v4910_v54 }
 0x7c4   :  { %3370 = vmatpush3.bf16.msra.mxu0 %v4238_v49  ;;  %3385 = vmatprep.mubr.msk.bf16.mxu0 %vm4580_vm0, %v5655_v0  ;;  %v1282_v49 = vld [vmem:[#allocation10 + $0x1f0] sm:$0xff] }
 0x7c5   :  { %3371 = vmatprep.subr.bf16.mxu0 %v5655_v0 }
 0x7c8   :  { %3372 = vmatpush3.bf16.msra.mxu0 %v4239_v50  ;;  %v1095_v50 = vld [vmem:[#allocation9 + $0x18] sm:$0xff] }
 0x7c9   :  { %3373 = vmatprep.subr.bf16.mxu0 %v5655_v0 }
 0x7cc   :  { %3374 = vmatpush3.bf16.msra.mxu0 %v4240_v51  ;;  %v1099_v51 = vld [vmem:[#allocation9 + $0x38] sm:$0xff] }
 0x7cd   :  { %3375 = vmatprep.subr.bf16.mxu0 %v5655_v0 }
 0x7d0   :  { %3376 = vmatpush3.bf16.msra.mxu0 %v4241_v52  ;;  %v5008_v52 = vpack.c.bf16 %v1282_v49, %v1278_v48  ;;  %v5056_v48 = vpack.c.bf16 %v1155_v45, %v1151_v44  ;;  %v1150_v49 = vld [vmem:[#allocation9 + $0x1d0] sm:$0xff]  ;;  %v5086_v44 = vpack.c.bf16 %v1195_v42, %v1191_v39  ;;  %v5104_v39 = vpack.c.bf16 %v1219_v27, %v1215_v26  ;;  %v1232_v26 = vld [vmem:[#allocation10 + $0x60] sm:$0xff]  ;;  %v1237_v27 = vld [vmem:[#allocation10 + $0x88] sm:$0xff] }
 0x7d1   :  { %3377 = vmatprep.subr.bf16.mxu0 %v5655_v0  ;;  %v1190_v45 = vld [vmem:[#allocation9 + $0x310] sm:$0xff] }
 0x7d2   :  { %5792 = vst [vmem:[#allocation30_spill] sm:$0xff] %v5008_v52  ;;  %5807 = vst [vmem:[#allocation45_spill] sm:$0xff] %v5056_v48  ;;  %v1214_v42 = vld [vmem:[#allocation9 + $0x3d0] sm:$0xff] }
 0x7d3   :  { %5817 = vst [vmem:[#allocation55_spill] sm:$0xff] %v5086_v44  ;;  %5823 = vst [vmem:[#allocation61_spill] sm:$0xff] %v5104_v39 }
 0x7d4   :  { %3378 = vmatpush3.bf16.msra.mxu0 %v4242_v53  ;;  %v5011_v53 = vpack.c.bf16 %v1099_v51, %v1095_v50  ;;  %v1154_v50 = vld [vmem:[#allocation9 + $0x1f0] sm:$0xff] }
 0x7d5   :  { %3379 = vmatprep.subr.bf16.mxu0 %v5655_v0  ;;  %v5059_v51 = vpack.c.bf16 %v1154_v50, %v1150_v49  ;;  %v1194_v49 = vld [vmem:[#allocation9 + $0x330] sm:$0xff] }
 0x7d6   :  { %5793 = vst [vmem:[#allocation31_spill] sm:$0xff] %v5011_v53  ;;  %v5089_v50 = vpack.c.bf16 %v1194_v49, %v1190_v45  ;;  %v1218_v45 = vld [vmem:[#allocation9 + $0x3f0] sm:$0xff] }
 0x7d7   :  { %5808 = vst [vmem:[#allocation46_spill] sm:$0xff] %v5059_v51  ;;  %v5107_v49 = vpack.c.bf16 %v1218_v45, %v1214_v42  ;;  %v1241_v42 = vld [vmem:[#allocation10 + $0xa8] sm:$0xff]  ;;  %v1236_v45 = vld [vmem:[#allocation10 + $0x80] sm:$0xff] }
 0x7d8   :  { %3380 = vmatpush3.bf16.msra.mxu0 %v4243_v55  ;;  %v1094_v55 = vld [vmem:[#allocation9 + $0x10] sm:$0xff]  ;;  %5818 = vst [vmem:[#allocation56_spill] sm:$0xff] %v5089_v50 }
 0x7d9   :  { %3381 = vmatprep.subr.bf16.mxu0 %v5655_v0  ;;  %5824 = vst [vmem:[#allocation62_spill] sm:$0xff] %v5107_v49 }
 0x7dc   :  { %3382 = vmatpush3.bf16.msra.mxu0 %v4244_v56  ;;  %v1098_v56 = vld [vmem:[#allocation9 + $0x30] sm:$0xff] }
 0x7dd   :  { %3383 = vmatprep.subr.bf16.mxu0 %v5655_v0 }
 0x7e0   :  { %3384 = vmatpush3.bf16.msra.mxu0 %v4245_v57  ;;  %v5014_v57 = vpack.c.bf16 %v1098_v56, %v1094_v55  ;;  %v1159_v55 = vld [vmem:[#allocation9 + $0x218] sm:$0xff] }
 0x7e1   :  { %3548 = vmatprep.subr.bf16.mxu0 %v4963_v60  ;;  %v1163_v56 = vld [vmem:[#allocation9 + $0x238] sm:$0xff] }
 0x7e2   :  { %5794 = vst [vmem:[#allocation32_spill] sm:$0xff] %v5014_v57 }
 0x896   :  { %v925_v62 = vpop.f32.mrb[16].mxu0 }
 0x897   :  { %v3367_v63 = vpop.f32.mrb[17].mxu0  ;;  %v926_v6 = vadd.f32 %v3054_v61, %v925_v62  ;;  %v1102_v62 = vld [vmem:[#allocation9 + $0x50] sm:$0xff] }
 0x898   :  { %v928_v3 = vpop.f32.mrb[18].mxu0  ;;  %v1106_v63 = vld [vmem:[#allocation9 + $0x70] sm:$0xff] }
 0x899   :  { %v929_v7 = vadd.f32 %v3054_v61, %v928_v3  ;;  %v3368_v8 = vpop.f32.mrb[19].mxu0  ;;  %v5020_v61 = vpack.c.bf16 %v1107_v59, %v1103_v58  ;;  %v5022_v1 = vpack.c.bf16 %v1106_v63, %v1102_v62  ;;  %v1115_v3 = vld [vmem:[#allocation9 + $0xb8] sm:$0xff]  ;;  %v5062_v58 = vpack.c.bf16 %v1163_v56, %v1159_v55  ;;  %v1158_v59 = vld [vmem:[#allocation9 + $0x210] sm:$0xff] }
 0x89a   :  { %v5026_v4 = vpack.c.bf16 %v1115_v3, %v1111_v2  ;;  %v1119_v8 = vld [vmem:[#allocation9 + $0xd8] sm:$0xff]  ;;  %v1162_v62 = vld [vmem:[#allocation9 + $0x230] sm:$0xff] }
 0x89b   :  { %v932_v10 = vpack.c.bf16 %v929_v7, %v926_v6  ;;  %5795 = vst [vmem:[#allocation33_spill] sm:$0xff] %v5020_v61  ;;  %5796 = vst [vmem:[#allocation34_spill] sm:$0xff] %v5022_v1  ;;  %v1114_v6 = vld [vmem:[#allocation9 + $0xb0] sm:$0xff]  ;;  %v5065_v63 = vpack.c.bf16 %v1162_v62, %v1158_v59  ;;  %v1167_v2 = vld [vmem:[#allocation9 + $0x258] sm:$0xff] }
 0x89c   :  { %5797 = vst [vmem:[#allocation35_spill] sm:$0xff] %v5026_v4  ;;  %v5028_v7 = vpack.c.bf16 %v1114_v6, %v1110_v5  ;;  %5809 = vst [vmem:[#allocation47_spill] sm:$0xff] %v5062_v58  ;;  %v1171_v3 = vld [vmem:[#allocation9 + $0x278] sm:$0xff]  ;;  %v1166_v6 = vld [vmem:[#allocation9 + $0x250] sm:$0xff] }
 0x89d   :  { %3386 = vmatmul.mubr.bf16.vlgmr.msra.gmra.mrb[20].mxu0 %v932_v10  ;;  %v1123_v10 = vld [vmem:[#allocation9 + $0xf8] sm:$0xff]  ;;  %5810 = vst [vmem:[#allocation48_spill] sm:$0xff] %v5065_v63  ;;  %v5068_v5 = vpack.c.bf16 %v1171_v3, %v1167_v2  ;;  %v1198_v62 = vld [vmem:[#allocation9 + $0x350] sm:$0xff] }
 0x89e   :  { %3550 = vmatpush1.bf16.msra.mxu0 %v4966_v9  ;;  %1420 = vmatprep.mubr.f32.mxu0 %v5655_v0  ;;  %5798 = vst [vmem:[#allocation36_spill] sm:$0xff] %v5028_v7  ;;  %v5032_v12 = vpack.c.bf16 %v1123_v10, %v1119_v8  ;;  %v1170_v8 = vld [vmem:[#allocation9 + $0x270] sm:$0xff]  ;;  %v1199_v55 = vld [vmem:[#allocation9 + $0x358] sm:$0xff] }
 0x89f   :  { %3552 = vmatprep.subr.bf16.mxu0 %v4968_v11  ;;  %5811 = vst [vmem:[#allocation49_spill] sm:$0xff] %v5068_v5  ;;  %v5071_v10 = vpack.c.bf16 %v1170_v8, %v1166_v6  ;;  %v1203_v56 = vld [vmem:[#allocation9 + $0x378] sm:$0xff]  ;;  %v1202_v2 = vld [vmem:[#allocation9 + $0x370] sm:$0xff] }
 0x8a0   :  { %5799 = vst [vmem:[#allocation37_spill] sm:$0xff] %v5032_v12  ;;  %v5092_v59 = vpack.c.bf16 %v1203_v56, %v1199_v55  ;;  %v5095_v3 = vpack.c.bf16 %v1202_v2, %v1198_v62  ;;  %v1207_v6 = vld [vmem:[#allocation9 + $0x398] sm:$0xff]  ;;  %v5109_v55 = vpack.c.bf16 %v1225_v36, %v1221_v32  ;;  %v1220_v56 = vld [vmem:[#allocation10] sm:$0xff]  ;;  %v1229_v2 = vld [vmem:[#allocation10 + $0x48] sm:$0xff]  ;;  %v5121_v32 = vpack.c.bf16 %v1232_v26, %v1228_v19 }
 0x8a1   :  { %5812 = vst [vmem:[#allocation50_spill] sm:$0xff] %v5071_v10  ;;  %v1211_v8 = vld [vmem:[#allocation9 + $0x3b8] sm:$0xff]  ;;  %v1224_v62 = vld [vmem:[#allocation10 + $0x20] sm:$0xff]  ;;  %v5123_v36 = vpack.c.bf16 %v1241_v42, %v1237_v27 }
 0x8a2   :  { %3554 = vmatpush1.bf16.msra.mxu0 %v4971_v16  ;;  %5819 = vst [vmem:[#allocation57_spill] sm:$0xff] %v5092_v59  ;;  %5820 = vst [vmem:[#allocation58_spill] sm:$0xff] %v5095_v3  ;;  %v5098_v13 = vpack.c.bf16 %v1211_v8, %v1207_v6  ;;  %v1233_v6 = vld [vmem:[#allocation10 + $0x68] sm:$0xff]  ;;  %v5113_v8 = vpack.c.bf16 %v1224_v62, %v1220_v56  ;;  %v1240_v56 = vld [vmem:[#allocation10 + $0xa0] sm:$0xff] }
 0x8a3   :  { %3556 = vmatprep.subr.bf16.mxu0 %v4975_v17  ;;  %5825 = vst [vmem:[#allocation63_spill] sm:$0xff] %v5109_v55  ;;  %v5115_v14 = vpack.c.bf16 %v1233_v6, %v1229_v2  ;;  %5828 = vst [vmem:[#allocation66_spill] sm:$0xff] %v5121_v32  ;;  %v1245_v62 = vld [vmem:[#allocation10 + $0xc8] sm:$0xff]  ;;  %v5127_v6 = vpack.c.bf16 %v1240_v56, %v1236_v45  ;;  %v1252_v27 = vld [vmem:[#allocation10 + $0x100] sm:$0xff] }
 0x8a4   :  { %5821 = vst [vmem:[#allocation59_spill] sm:$0xff] %v5098_v13  ;;  %5826 = vst [vmem:[#allocation64_spill] sm:$0xff] %v5113_v8  ;;  %v1249_v2 = vld [vmem:[#allocation10 + $0xe8] sm:$0xff]  ;;  %v1256_v42 = vld [vmem:[#allocation10 + $0x120] sm:$0xff] }
 0x8a5   :  { %5827 = vst [vmem:[#allocation65_spill] sm:$0xff] %v5115_v14  ;;  %5829 = vst [vmem:[#allocation67_spill] sm:$0xff] %v5123_v36  ;;  %v5139_v45 = vpack.c.bf16 %v1256_v42, %v1252_v27  ;;  %v1276_v27 = vld [vmem:[#allocation10 + $0x1c0] sm:$0xff] }
 0x8a6   :  { %3558 = vmatpush1.bf16.msra.mxu0 %v4978_v22  ;;  %5830 = vst [vmem:[#allocation68_spill] sm:$0xff] %v5127_v6  ;;  %v1280_v42 = vld [vmem:[#allocation10 + $0x1e0] sm:$0xff] }
 0x8a7   :  { %3560 = vmatprep.subr.bf16.mxu0 %v4981_v23  ;;  %5834 = vst [vmem:[#allocation72_spill] sm:$0xff] %v5139_v45 }
 0x8aa   :  { %3562 = vmatpush1.bf16.msra.mxu0 %v4984_v28 }
 0x8ab   :  { %3564 = vmatprep.subr.bf16.mxu0 %v4987_v29 }
 0x8ae   :  { %3566 = vmatpush1.bf16.msra.mxu0 %v4990_v34 }
 0x8af   :  { %3568 = vmatprep.subr.bf16.mxu0 %v4993_v35 }
 0x8b2   :  { %3570 = vmatpush1.bf16.msra.mxu0 %v4996_v40 }
 0x8b3   :  { %3572 = vmatprep.subr.bf16.mxu0 %v4999_v41 }
 0x8b6   :  { %3574 = vmatpush1.bf16.msra.mxu0 %v5002_v46 }
 0x8b7   :  { %3576 = vmatprep.subr.bf16.mxu0 %v5005_v47  ;;  %v1284_v47 = vld [vmem:[#allocation12] sm:$0xf] }
 0x8ba   :  { %3578 = vmatpush1.bf16.msra.mxu0 %v5008_v52 }
 0x8bb   :  { %3644 = vmatprep.subr.bf16.mxu0 %v5011_v53 }
 0x8bd   :  { %1421 = vmatmul.mubr.f32.vlgmr.msra.gmra.mrb[2].mxu0 %v5655_v0 }
 0x8be   :  { %3646 = vmatpush1.bf16.msra.mxu0 %v5014_v57  ;;  %1562 = vmatprep.mubr.f32.mxu0 %v5655_v0 }
 0x8bf   :  { %3648 = vmatprep.subr.bf16.mxu0 %v5020_v61  ;;  %v1570_v61 = vlaneseq }
 0x8c1   :  { %v1571_v57 = vshrl.u32 %v1570_v61, 7 }
 0x8c2   :  { %3650 = vmatpush1.bf16.msra.mxu0 %v5022_v1 }
 0x8c3   :  { %3652 = vmatprep.subr.bf16.mxu0 %v5026_v4  ;;  %v1572_v53 = vsub.s32 0, %v1571_v57  ;;  %v1576_v52 = vsub.s32 1, %v1571_v57 }
 0x8c5   :  { %v5286_v46 = vrot.slane %v1284_v47, %v1572_v53 }
 0x8c6   :  { %3654 = vmatpush1.bf16.msra.mxu0 %v5028_v7 }
 0x8c7   :  { %3656 = vmatprep.subr.bf16.mxu0 %v5032_v12  ;;  %5875 = vst [vmem:[#allocation112_spill] sm:$0xff] %v5286_v46 }
 0x8ca   :  { %3658 = vmatpush1.bf16.msra.mxu0 %v5034_v15  ;;  %v1216_v15 = vld [vmem:[#allocation9 + $0x3e0] sm:$0xff] }
 0x8cb   :  { %3660 = vmatprep.subr.bf16.mxu0 %v5038_v20  ;;  %v1212_v20 = vld [vmem:[#allocation9 + $0x3c0] sm:$0xff] }
 0x8ce   :  { %3662 = vmatpush1.bf16.msra.mxu0 %v5041_v25  ;;  %v1208_v25 = vld [vmem:[#allocation9 + $0x3a0] sm:$0xff] }
 0x8cf   :  { %3664 = vmatprep.subr.bf16.mxu0 %v5044_v30  ;;  %v1204_v30 = vld [vmem:[#allocation9 + $0x380] sm:$0xff] }
 0x8d2   :  { %3666 = vmatpush1.bf16.msra.mxu0 %v5047_v33  ;;  %v1200_v33 = vld [vmem:[#allocation9 + $0x360] sm:$0xff] }
 0x8d3   :  { %3668 = vmatprep.subr.bf16.mxu0 %v5050_v38  ;;  %v1196_v38 = vld [vmem:[#allocation9 + $0x340] sm:$0xff] }
 0x8d6   :  { %3670 = vmatpush1.bf16.msra.mxu0 %v5053_v43  ;;  %v1192_v43 = vld [vmem:[#allocation9 + $0x320] sm:$0xff] }
 0x8d7   :  { %3672 = vmatprep.subr.bf16.mxu0 %v5056_v48  ;;  %v1188_v48 = vld [vmem:[#allocation9 + $0x300] sm:$0xff] }
 0x8da   :  { %3674 = vmatpush1.bf16.msra.mxu0 %v5059_v51  ;;  %v1184_v51 = vld [vmem:[#allocation9 + $0x2e0] sm:$0xff] }
 0x8db   :  { %3676 = vmatprep.subr.bf16.mxu0 %v5062_v58  ;;  %v1180_v58 = vld [vmem:[#allocation9 + $0x2c0] sm:$0xff] }
 0x8de   :  { %3678 = vmatpush1.bf16.msra.mxu0 %v5065_v63  ;;  %v1176_v63 = vld [vmem:[#allocation9 + $0x2a0] sm:$0xff] }
 0x8df   :  { %3680 = vmatprep.subr.bf16.mxu0 %v5068_v5  ;;  %v1172_v5 = vld [vmem:[#allocation9 + $0x280] sm:$0xff] }
 0x8e2   :  { %3682 = vmatpush1.bf16.msra.mxu0 %v5071_v10  ;;  %v1168_v10 = vld [vmem:[#allocation9 + $0x260] sm:$0xff] }
 0x8e3   :  { %3684 = vmatprep.subr.bf16.mxu0 %v5074_v18  ;;  %v1097_v18 = vld [vmem:[#allocation9 + $0x28] sm:$0xff] }
 0x8e6   :  { %3686 = vmatpush1.bf16.msra.mxu0 %v5077_v24  ;;  %v1093_v24 = vld [vmem:[#allocation9 + $0x8] sm:$0xff] }
 0x8e7   :  { %3688 = vmatprep.subr.bf16.mxu0 %v5080_v31  ;;  %v1281_v31 = vld [vmem:[#allocation10 + $0x1e8] sm:$0xff] }
 0x8ea   :  { %3690 = vmatpush1.bf16.msra.mxu0 %v5083_v37  ;;  %v1277_v37 = vld [vmem:[#allocation10 + $0x1c8] sm:$0xff] }
 0x8eb   :  { %3692 = vmatprep.subr.bf16.mxu0 %v5086_v44  ;;  %v1273_v44 = vld [vmem:[#allocation10 + $0x1a8] sm:$0xff] }
 0x8ee   :  { %3694 = vmatpush1.bf16.msra.mxu0 %v5089_v50  ;;  %v1269_v50 = vld [vmem:[#allocation10 + $0x188] sm:$0xff] }
 0x8ef   :  { %3696 = vmatprep.subr.bf16.mxu0 %v5092_v59  ;;  %v1265_v59 = vld [vmem:[#allocation10 + $0x168] sm:$0xff] }
 0x8f2   :  { %3698 = vmatpush1.bf16.msra.mxu0 %v5095_v3  ;;  %v1261_v3 = vld [vmem:[#allocation10 + $0x148] sm:$0xff] }
 0x8f3   :  { %3700 = vmatprep.subr.bf16.mxu0 %v5098_v13  ;;  %v1257_v13 = vld [vmem:[#allocation10 + $0x128] sm:$0xff]  ;;  %v5141_v56 = vpack.c.bf16 %v1265_v59, %v1261_v3  ;;  %v5153_v3 = vpack.c.bf16 %v1281_v31, %v1277_v37 }
 0x8f5   :  { %5835 = vst [vmem:[#allocation73_spill] sm:$0xff] %v5141_v56  ;;  %5839 = vst [vmem:[#allocation77_spill] sm:$0xff] %v5153_v3 }
 0x8f6   :  { %3702 = vmatpush1.bf16.msra.mxu0 %v5101_v21  ;;  %v1253_v21 = vld [vmem:[#allocation10 + $0x108] sm:$0xff] }
 0x8f7   :  { %3704 = vmatprep.subr.bf16.mxu0 %v5104_v39  ;;  %v1244_v39 = vld [vmem:[#allocation10 + $0xc0] sm:$0xff]  ;;  %v5135_v26 = vpack.c.bf16 %v1257_v13, %v1253_v21  ;;  %v5147_v13 = vpack.c.bf16 %v1273_v44, %v1269_v50  ;;  %v5157_v44 = vpack.c.bf16 %v1280_v42, %v1276_v27  ;;  %v5159_v50 = vpack.c.bf16 %v1097_v18, %v1093_v24  ;;  %v1101_v24 = vld [vmem:[#allocation9 + $0x48] sm:$0xff] }
 0x8f8   :  { %v1268_v21 = vld [vmem:[#allocation10 + $0x180] sm:$0xff]  ;;  %v1105_v27 = vld [vmem:[#allocation9 + $0x68] sm:$0xff] }
 0x8f9   :  { %5833 = vst [vmem:[#allocation71_spill] sm:$0xff] %v5135_v26  ;;  %5837 = vst [vmem:[#allocation75_spill] sm:$0xff] %v5147_v13  ;;  %v1096_v18 = vld [vmem:[#allocation9 + $0x20] sm:$0xff] }
 0x8fa   :  { %3706 = vmatpush1.bf16.msra.mxu0 %v5107_v49  ;;  %v5129_v49 = vpack.c.bf16 %v1249_v2, %v1245_v62  ;;  %v1260_v62 = vld [vmem:[#allocation10 + $0x140] sm:$0xff]  ;;  %5840 = vst [vmem:[#allocation78_spill] sm:$0xff] %v5157_v44  ;;  %5841 = vst [vmem:[#allocation79_spill] sm:$0xff] %v5159_v50 }
 0x8fb   :  { %3714 = vmatprep.subr.bf16.mxu0 %v5109_v55  ;;  %v1264_v2 = vld [vmem:[#allocation10 + $0x160] sm:$0xff] }
 0x8fc   :  { %5831 = vst [vmem:[#allocation69_spill] sm:$0xff] %v5129_v49 }
 0x8fd   :  { %1563 = vmatmul.mubr.f32.vlgmr.msra.gmra.mrb[2].mxu0 %v5655_v0 }
 0x8fe   :  { %3716 = vmatpush1.bf16.msra.mxu0 %v5113_v8  ;;  %1840 = vmatprep.mubr.f32.mxu0 %v5655_v0  ;;  %v1248_v0 = vld [vmem:[#allocation10 + $0xe0] sm:$0xff] }
 0x8ff   :  { %3718 = vmatprep.subr.bf16.mxu0 %v5115_v14  ;;  %v5133_v19 = vpack.c.bf16 %v1248_v0, %v1244_v39  ;;  %v5145_v0 = vpack.c.bf16 %v1264_v2, %v1260_v62  ;;  %v1272_v39 = vld [vmem:[#allocation10 + $0x1a0] sm:$0xff] }
 0x900   :  { %v5151_v59 = vpack.c.bf16 %v1272_v39, %v1268_v21  ;;  %v5842_v39 = vmov 0.0  }
 0x901   :  { %5832 = vst [vmem:[#allocation70_spill] sm:$0xff] %v5133_v19  ;;  %5836 = vst [vmem:[#allocation74_spill] sm:$0xff] %v5145_v0 }
 0x902   :  { %3720 = vmatpush1.bf16.msra.mxu0 %v5121_v32  ;;  %5838 = vst [vmem:[#allocation76_spill] sm:$0xff] %v5151_v59 }
 0x903   :  { %3722 = vmatprep.subr.bf16.mxu0 %v5123_v36 }
 0x906   :  { %3724 = vmatpush1.bf16.msra.mxu0 %v5127_v6 }
 0x907   :  { %3726 = vmatprep.subr.bf16.mxu0 %v5129_v49 }
 0x90a   :  { %3728 = vmatpush1.bf16.msra.mxu0 %v5133_v19 }
 0x90b   :  { %3730 = vmatprep.subr.bf16.mxu0 %v5135_v26 }
 0x90e   :  { %3732 = vmatpush1.bf16.msra.mxu0 %v5139_v45 }
 0x90f   :  { %3734 = vmatprep.subr.bf16.mxu0 %v5141_v56 }
 0x912   :  { %3736 = vmatpush1.bf16.msra.mxu0 %v5145_v0 }
 0x913   :  { %3738 = vmatprep.subr.bf16.mxu0 %v5147_v13 }
 0x916   :  { %3740 = vmatpush1.bf16.msra.mxu0 %v5151_v59 }
 0x917   :  { %3742 = vmatprep.subr.bf16.mxu0 %v5153_v3 }
 0x91a   :  { %3744 = vmatpush1.bf16.msra.mxu0 %v5157_v44 }
 0x91b   :  { %3778 = vmatprep.subr.bf16.mxu0 %v5159_v50 }
 0x970   :  { %v1032_v62 = vpop.f32.mrb[20].mxu0 }
 0x971   :  { %v3387_v2 = vpop.f32.mrb[21].mxu0 }
 0x972   :  { %v1035_v31 = vpop.f32.mrb[22].mxu0  ;;  %v1100_v2 = vld [vmem:[#allocation9 + $0x40] sm:$0xff] }
 0x973   :  { %v1039_v37 = vpack.c.bf16 %v1035_v31, %v1032_v62  ;;  %v3388_v21 = vpop.f32.mrb[23].mxu0  ;;  %v5185_v62 = vpack.c.bf16 %v1105_v27, %v1101_v24  ;;  %v1104_v31 = vld [vmem:[#allocation9 + $0x60] sm:$0xff]  ;;  %v1117_v24 = vld [vmem:[#allocation9 + $0xc8] sm:$0xff] }
 0x974   :  { %v1113_v21 = vld [vmem:[#allocation9 + $0xa8] sm:$0xff] }
 0x975   :  { %3390 = vmatpush3.bf16.msra.mxu1 %v1039_v37  ;;  %5844 = vst [vmem:[#allocation81_spill] sm:$0xff] %v5185_v62  ;;  %v1109_v37 = vld [vmem:[#allocation9 + $0x88] sm:$0xff] }
 0x976   :  { %3516 = vmatprep.subr.bf16.mxu1 %v5109_v55  ;;  %v1121_v27 = vld [vmem:[#allocation9 + $0xe8] sm:$0xff]  ;;  %v1164_v55 = vld [vmem:[#allocation9 + $0x240] sm:$0xff] }
 0x978   :  { %3392 = vmatmul.mubr.msk.bf16.vlgmr.msra.gmra.mrb[16].mxu1 %vm416_vm1, %v4910_v54  ;;  %v1092_v54 = vld [vmem:[#allocation9] sm:$0xff] }
 0x979   :  { %3518 = vmatpush1.bf16.msra.mxu1 %v5113_v8  ;;  %1349 = vmatprep.mubr.f32.mxu1 %v5842_v39  ;;  %v5182_v42 = vpack.c.bf16 %v1096_v18, %v1092_v54  ;;  %v5193_v54 = vpack.c.bf16 %v1113_v21, %v1109_v37  ;;  %v1108_v18 = vld [vmem:[#allocation9 + $0x80] sm:$0xff] }
 0x97a   :  { %3520 = vmatprep.subr.bf16.mxu1 %v5115_v14  ;;  %v1156_v14 = vld [vmem:[#allocation9 + $0x200] sm:$0xff] }
 0x97b   :  { %5843 = vst [vmem:[#allocation80_spill] sm:$0xff] %v5182_v42  ;;  %5846 = vst [vmem:[#allocation83_spill] sm:$0xff] %v5193_v54  ;;  %v1160_v8 = vld [vmem:[#allocation9 + $0x220] sm:$0xff] }
 0x97d   :  { %3522 = vmatpush1.bf16.msra.mxu1 %v5121_v32  ;;  %v1152_v32 = vld [vmem:[#allocation9 + $0x1e0] sm:$0xff] }
 0x97e   :  { %3524 = vmatprep.subr.bf16.mxu1 %v5123_v36  ;;  %v1148_v36 = vld [vmem:[#allocation9 + $0x1c0] sm:$0xff] }
 0x981   :  { %3526 = vmatpush1.bf16.msra.mxu1 %v5127_v6  ;;  %v1144_v6 = vld [vmem:[#allocation9 + $0x1a0] sm:$0xff] }
 0x982   :  { %3528 = vmatprep.subr.bf16.mxu1 %v5129_v49  ;;  %v1140_v49 = vld [vmem:[#allocation9 + $0x180] sm:$0xff] }
 0x985   :  { %3530 = vmatpush1.bf16.msra.mxu1 %v5133_v19  ;;  %v1136_v19 = vld [vmem:[#allocation9 + $0x160] sm:$0xff] }
 0x986   :  { %3532 = vmatprep.subr.bf16.mxu1 %v5135_v26  ;;  %v1132_v26 = vld [vmem:[#allocation9 + $0x140] sm:$0xff] }
 0x989   :  { %3534 = vmatpush1.bf16.msra.mxu1 %v5139_v45  ;;  %v1128_v45 = vld [vmem:[#allocation9 + $0x120] sm:$0xff] }
 0x98a   :  { %3536 = vmatprep.subr.bf16.mxu1 %v5141_v56  ;;  %v1124_v56 = vld [vmem:[#allocation9 + $0x100] sm:$0xff] }
 0x98d   :  { %3538 = vmatpush1.bf16.msra.mxu1 %v5145_v0  ;;  %v1129_v0 = vld [vmem:[#allocation9 + $0x128] sm:$0xff] }
 0x98e   :  { %3540 = vmatprep.subr.bf16.mxu1 %v5147_v13  ;;  %v1125_v13 = vld [vmem:[#allocation9 + $0x108] sm:$0xff] }
 0x98f   :  { %v5205_v21 = vpack.c.bf16 %v1129_v0, %v1125_v13  ;;  %v5214_v0 = vpack.c.bf16 %v1136_v19, %v1132_v26  ;;  %v1157_v19 = vld [vmem:[#allocation9 + $0x208] sm:$0xff] }
 0x990   :  { %v1161_v26 = vld [vmem:[#allocation9 + $0x228] sm:$0xff] }
 0x991   :  { %3542 = vmatpush1.bf16.msra.mxu1 %v5151_v59  ;;  %v5199_v59 = vpack.c.bf16 %v1121_v27, %v1117_v24  ;;  %5850 = vst [vmem:[#allocation87_spill] sm:$0xff] %v5205_v21  ;;  %v5208_v24 = vpack.c.bf16 %v1128_v45, %v1124_v56  ;;  %5853 = vst [vmem:[#allocation90_spill] sm:$0xff] %v5214_v0  ;;  %v1149_v45 = vld [vmem:[#allocation9 + $0x1c8] sm:$0xff] }
 0x992   :  { %3544 = vmatprep.subr.bf16.mxu1 %v5153_v3  ;;  %v5189_v3 = vpack.c.bf16 %v1104_v31, %v1100_v2  ;;  %v1116_v2 = vld [vmem:[#allocation9 + $0xc0] sm:$0xff]  ;;  %v1153_v56 = vld [vmem:[#allocation9 + $0x1e8] sm:$0xff] }
 0x993   :  { %5848 = vst [vmem:[#allocation85_spill] sm:$0xff] %v5199_v59  ;;  %v1120_v31 = vld [vmem:[#allocation9 + $0xe0] sm:$0xff]  ;;  %5851 = vst [vmem:[#allocation88_spill] sm:$0xff] %v5208_v24 }
 0x994   :  { %5845 = vst [vmem:[#allocation82_spill] sm:$0xff] %v5189_v3  ;;  %v5202_v37 = vpack.c.bf16 %v1120_v31, %v1116_v2  ;;  %v1141_v2 = vld [vmem:[#allocation9 + $0x188] sm:$0xff] }
 0x995   :  { %3546 = vmatpush1.bf16.msra.mxu1 %v5157_v44  ;;  %v1145_v31 = vld [vmem:[#allocation9 + $0x1a8] sm:$0xff] }
 0x996   :  { %3580 = vmatprep.subr.bf16.mxu1 %v5159_v50  ;;  %v1112_v50 = vld [vmem:[#allocation9 + $0xa0] sm:$0xff]  ;;  %5849 = vst [vmem:[#allocation86_spill] sm:$0xff] %v5202_v37  ;;  %v5217_v13 = vpack.c.bf16 %v1145_v31, %v1141_v2  ;;  %v5226_v2 = vpack.c.bf16 %v1152_v32, %v1148_v36  ;;  %v5229_v31 = vpack.c.bf16 %v1161_v26, %v1157_v19  ;;  %v1173_v32 = vld [vmem:[#allocation9 + $0x288] sm:$0xff] }
 0x997   :  { %v5196_v44 = vpack.c.bf16 %v1112_v50, %v1108_v18  ;;  %v1133_v50 = vld [vmem:[#allocation9 + $0x148] sm:$0xff]  ;;  %v5238_v19 = vpack.c.bf16 %v1168_v10, %v1164_v55 }
 0x998   :  { %1350 = vmatmul.mubr.f32.vlgmr.msra.gmra.mrb[20].mxu1 %v5842_v39  ;;  %v1137_v18 = vld [vmem:[#allocation9 + $0x168] sm:$0xff]  ;;  %5854 = vst [vmem:[#allocation91_spill] sm:$0xff] %v5217_v13  ;;  %5857 = vst [vmem:[#allocation94_spill] sm:$0xff] %v5226_v2 }
 0x999   :  { %3582 = vmatpush1.bf16.msra.mxu1 %v5182_v42  ;;  %1491 = vmatprep.mubr.f32.mxu1 %v5842_v39  ;;  %5847 = vst [vmem:[#allocation84_spill] sm:$0xff] %v5196_v44  ;;  %v5211_v27 = vpack.c.bf16 %v1137_v18, %v1133_v50  ;;  %v5220_v50 = vpack.c.bf16 %v1144_v6, %v1140_v49  ;;  %5858 = vst [vmem:[#allocation95_spill] sm:$0xff] %v5229_v31  ;;  %v1165_v49 = vld [vmem:[#allocation9 + $0x248] sm:$0xff] }
 0x99a   :  { %3584 = vmatprep.subr.bf16.mxu1 %v5185_v62  ;;  %v5223_v18 = vpack.c.bf16 %v1153_v56, %v1149_v45  ;;  %v1169_v6 = vld [vmem:[#allocation9 + $0x268] sm:$0xff]  ;;  %v5232_v45 = vpack.c.bf16 %v1160_v8, %v1156_v14  ;;  %5861 = vst [vmem:[#allocation98_spill] sm:$0xff] %v5238_v19 }
 0x99b   :  { %5852 = vst [vmem:[#allocation89_spill] sm:$0xff] %v5211_v27  ;;  %5855 = vst [vmem:[#allocation92_spill] sm:$0xff] %v5220_v50  ;;  %v5235_v56 = vpack.c.bf16 %v1169_v6, %v1165_v49  ;;  %v1177_v36 = vld [vmem:[#allocation9 + $0x2a8] sm:$0xff]  ;;  %v5244_v49 = vpack.c.bf16 %v1176_v63, %v1172_v5 }
 0x99c   :  { %5856 = vst [vmem:[#allocation93_spill] sm:$0xff] %v5223_v18  ;;  %5859 = vst [vmem:[#allocation96_spill] sm:$0xff] %v5232_v45  ;;  %v5241_v26 = vpack.c.bf16 %v1177_v36, %v1173_v32  ;;  %v1181_v8 = vld [vmem:[#allocation9 + $0x2c8] sm:$0xff]  ;;  %v5250_v32 = vpack.c.bf16 %v1184_v51, %v1180_v58 }
 0x99d   :  { %3586 = vmatpush1.bf16.msra.mxu1 %v5189_v3  ;;  %5860 = vst [vmem:[#allocation97_spill] sm:$0xff] %v5235_v56  ;;  %v1185_v14 = vld [vmem:[#allocation9 + $0x2e8] sm:$0xff]  ;;  %5863 = vst [vmem:[#allocation100_spill] sm:$0xff] %v5244_v49 }
 0x99e   :  { %3588 = vmatprep.subr.bf16.mxu1 %v5193_v54  ;;  %5862 = vst [vmem:[#allocation99_spill] sm:$0xff] %v5241_v26  ;;  %v5247_v6 = vpack.c.bf16 %v1185_v14, %v1181_v8  ;;  %v1189_v10 = vld [vmem:[#allocation9 + $0x308] sm:$0xff]  ;;  %5865 = vst [vmem:[#allocation102_spill] sm:$0xff] %v5250_v32  ;;  %v5256_v8 = vpack.c.bf16 %v1192_v43, %v1188_v48 }
 0x99f   :  { %v1193_v55 = vld [vmem:[#allocation9 + $0x328] sm:$0xff] }
 0x9a0   :  { %5864 = vst [vmem:[#allocation101_spill] sm:$0xff] %v5247_v6  ;;  %v5253_v36 = vpack.c.bf16 %v1193_v55, %v1189_v10  ;;  %v1197_v63 = vld [vmem:[#allocation9 + $0x348] sm:$0xff]  ;;  %5867 = vst [vmem:[#allocation104_spill] sm:$0xff] %v5256_v8  ;;  %v5262_v10 = vpack.c.bf16 %v1200_v33, %v1196_v38  ;;  %v5274_v33 = vpack.c.bf16 %v1216_v15, %v1212_v20  ;;  %v5740_v38 = vmov 0.0|0.0  }
 0x9a1   :  { %3590 = vmatpush1.bf16.msra.mxu1 %v5196_v44  ;;  %v1201_v5 = vld [vmem:[#allocation9 + $0x368] sm:$0xff] }
 0x9a2   :  { %3592 = vmatprep.subr.bf16.mxu1 %v5199_v59  ;;  %5866 = vst [vmem:[#allocation103_spill] sm:$0xff] %v5253_v36  ;;  %v5259_v14 = vpack.c.bf16 %v1201_v5, %v1197_v63  ;;  %v1205_v51 = vld [vmem:[#allocation9 + $0x388] sm:$0xff]  ;;  %5869 = vst [vmem:[#allocation106_spill] sm:$0xff] %v5262_v10  ;;  %v5268_v63 = vpack.c.bf16 %v1208_v25, %v1204_v30 }
 0x9a3   :  { %v1209_v58 = vld [vmem:[#allocation9 + $0x3a8] sm:$0xff]  ;;  %5873 = vst [vmem:[#allocation110_spill] sm:$0xff] %v5274_v33 }
 0x9a4   :  { %5868 = vst [vmem:[#allocation105_spill] sm:$0xff] %v5259_v14  ;;  %v5265_v55 = vpack.c.bf16 %v1209_v58, %v1205_v51  ;;  %v1213_v43 = vld [vmem:[#allocation9 + $0x3c8] sm:$0xff]  ;;  %5871 = vst [vmem:[#allocation108_spill] sm:$0xff] %v5268_v63  ;;  %v3064_v51 = vld [vmem:[#allocation7 + $0x4] ss:$0 sm:$0xff] }
 0x9a5   :  { %3594 = vmatpush1.bf16.msra.mxu1 %v5202_v37  ;;  %v1217_v48 = vld [vmem:[#allocation9 + $0x3e8] sm:$0xff] }
 0x9a6   :  { %3596 = vmatprep.subr.bf16.mxu1 %v5205_v21  ;;  %5870 = vst [vmem:[#allocation107_spill] sm:$0xff] %v5265_v55  ;;  %v5271_v5 = vpack.c.bf16 %v1217_v48, %v1213_v43 }
 0x9a8   :  { %5872 = vst [vmem:[#allocation109_spill] sm:$0xff] %v5271_v5 }
 0x9a9   :  { %3598 = vmatpush1.bf16.msra.mxu1 %v5208_v24 }
 0x9aa   :  { %3600 = vmatprep.subr.bf16.mxu1 %v5211_v27 }
 0x9ad   :  { %3602 = vmatpush1.bf16.msra.mxu1 %v5214_v0 }
 0x9ae   :  { %3604 = vmatprep.subr.bf16.mxu1 %v5217_v13 }
 0x9b1   :  { %3606 = vmatpush1.bf16.msra.mxu1 %v5220_v50 }
 0x9b2   :  { %3608 = vmatprep.subr.bf16.mxu1 %v5223_v18 }
 0x9b5   :  { %3610 = vmatpush1.bf16.msra.mxu1 %v5226_v2 }
 0x9b6   :  { %3612 = vmatprep.subr.bf16.mxu1 %v5229_v31 }
 0x9b9   :  { %3614 = vmatpush1.bf16.msra.mxu1 %v5232_v45 }
 0x9ba   :  { %3616 = vmatprep.subr.bf16.mxu1 %v5235_v56 }
 0x9bd   :  { %3618 = vmatpush1.bf16.msra.mxu1 %v5238_v19 }
 0x9be   :  { %3620 = vmatprep.subr.bf16.mxu1 %v5241_v26 }
 0x9c1   :  { %3622 = vmatpush1.bf16.msra.mxu1 %v5244_v49 }
 0x9c2   :  { %3624 = vmatprep.subr.bf16.mxu1 %v5247_v6 }
 0x9c5   :  { %3626 = vmatpush1.bf16.msra.mxu1 %v5250_v32 }
 0x9c6   :  { %3628 = vmatprep.subr.bf16.mxu1 %v5253_v36 }
 0x9c9   :  { %3630 = vmatpush1.bf16.msra.mxu1 %v5256_v8 }
 0x9ca   :  { %3632 = vmatprep.subr.bf16.mxu1 %v5259_v14 }
 0x9cd   :  { %3634 = vmatpush1.bf16.msra.mxu1 %v5262_v10 }
 0x9ce   :  { %3636 = vmatprep.subr.bf16.mxu1 %v5265_v55 }
 0x9d0   :  { %v1564_v25 = vpop.f32.mrb[2].mxu0 }
 0x9d1   :  { %3638 = vmatpush1.bf16.msra.mxu1 %v5268_v63  ;;  %v1566_v30 = vpop.f32.mrb[3].mxu0 }
 0x9d2   :  { %3640 = vmatprep.subr.bf16.mxu1 %v5271_v5 }
 0x9d5   :  { %3642 = vmatpush1.bf16.msra.mxu1 %v5274_v33 }
 0x9d6   :  { %3707 = vmatprep.subr.bf16.mxu1 %v5740_v38 }
 0x9d8   :  { %1492 = vmatmul.mubr.f32.vlgmr.msra.gmra.mrb[20].mxu1 %v5842_v39 }
 0x9d9   :  { %3399 = vmatprep.mubr.msk.f32.mxu1 %vm4580_vm0, %v5842_v39 }
 0xa4b   :  { %v1082_v58 = vpop.f32.mrb[16].mxu1 }
 0xa4c   :  { %v1083_v43 = vadd.f32 %v3064_v51, %v1082_v58  ;;  %v3393_v48 = vpop.f32.mrb[17].mxu1  ;;  %v5288_v58 = vrot.slane %v1284_v47, %v1576_v52 }
 0xa4d   :  { %v1085_v15 = vpop.f32.mrb[18].mxu1  ;;  %v1584_v48 = vsub.s32 3, %v1571_v57 }
 0xa4e   :  { %v1089_v20 = vmax.f32 %v1083_v43, 0.0  ;;  %v1086_v12 = vadd.f32 %v3064_v51, %v1085_v15  ;;  %v3394_v7 = vpop.f32.mrb[19].mxu1 }
 0xa4f   :  { %v5292_v15 = vrot.slane %v1284_v47, %v1584_v48 }
 0xa50   :  { %v1090_v4 = vmax.f32 %v1086_v12, 0.0 }
 0xa51   :  { %v1593_v61 = vadd.f32 %v5292_v15, %v1566_v30 }
 0xa52   :  { %v5282_v1 = vpack.c.bf16 %v1090_v4, %v1089_v20 }
 0xa53   :  { %v3068_v52 = vmul.f32 -1.442695, %v1593_v61 }
 0xa54   :  { %5874 = vst [vmem:[#allocation111_spill] sm:$0xff] %v5282_v1  ;;  %3709 = vmatpush3.bf16.xpose.msra.mxu1 %v5282_v1 }
 0xa55   :  { %3710 = vmatprep.subr.bf16.mxu1 %v5740_v38  ;;  %v1580_v38 = vsub.s32 2, %v1571_v57 }
 0xa57   :  { %v5295_v53 = vrot.slane %v1284_v47, %v1580_v38 }
 0xa59   :  { %v1592_v41 = vadd.f32 %v5295_v53, %v1564_v25 }
 0xaab   :  { %v1493_v43 = vpop.f32.mrb[20].mxu1 }
 0xaac   :  { %v1590_v7 = vadd.f32 %v5286_v46, %v1493_v43  ;;  %v1495_v12 = vpop.f32.mrb[21].mxu1 }
 0xaad   :  { %v1591_v4 = vadd.f32 %v5288_v58, %v1495_v12 }
 0xaae   :  { %v3066_v51 = vmul.f32 -1.442695, %v1590_v7 }
 0xaaf   :  { %v3067_v20 = vmul.f32 -1.442695, %v1591_v4 }
 0xab0   :  { %4246 = vpow2.f32 %v3066_v51 }
 0xab1   :  { %4248 = vpow2.f32 %v3067_v20 }
 0xab2   :  { %4250 = vpow2.f32 %v3068_v52 }
 0xab3   :  { %4252 = vtanh.f32 %v1592_v41 }
 0xaba   :  { %v4247_v40 = vpop.eup %4246 }
 0xabb   :  { %v4249_v35 = vpop.eup %4248  ;;  %v1597_v43 = vadd.f32 1.0, %v4247_v40  ;;  %v5344_v40 = vld [vmem:[%s5639_s6] sm:$0xff] }
 0xabc   :  { %v1603_v12 = vadd.f32 1.0, %v4249_v35  ;;  %v4251_v48 = vpop.eup %4250  ;;  %v5876_v35 = vmov 0.0|0.0   ;;  %5877 = vst [vmem:[#allocation113_spill] sm:$0xff] %v5344_v40  ;;  %vm1688_vm2 = vcmp.gt.f32.partialorder %v5344_v40, 0.0 }
 0xabd   :  { %4254 = vrcp.f32 %v1597_v43  ;;  %v4253_v7 = vpop.eup %4252  ;;  %v1610_v51 = vadd.f32 1.0, %v4251_v48 }
 0xabe   :  { %4256 = vrcp.f32 %v1603_v12 }
 0xabf   :  { %4258 = vrcp.f32 %v1610_v51 }
 0xac7   :  { %v4255_v57 = vpop.eup %4254 }
 0xac8   :  { %v4257_v4 = vpop.eup %4256  ;;  %v1614_v20 = vmul.f32 %v4255_v57, %v4253_v7 }
 0xac9   :  { %v1613_v30 = vmul.f32 0.0, %v4257_v4  ;;  %v4259_v38 = vpop.eup %4258 }
 0xacb   :  { %v5298_v47 = vadd.f32 %v1614_v20, %v1613_v30 }
 0xacd   :  { %4260 = vtanh.f32 %v5298_v47 }
 0xad7   :  { %v4261_v25 = vpop.eup %4260 }
 0xad8   :  { %v5301_v61 = vmul.f32 %v4261_v25, %v4259_v38 }
 0xada   :  { %3400 = vmatmul.mubr.f32.vlgmr.msra.gmra.mrb[22].mxu1 %v5301_v61  ;;  %1841 = vmatmul.mubr.f32.vlgmr.msra.gmra.mrb[24].mxu0 %v5301_v61 }
 0xadb   :  { %3712 = vmatpush3.bf16.msra.mxu1 %v5282_v1  ;;  %3406 = vmatprep.mubr.msk.f32.mxu1 %vm4580_vm0, %v5842_v39 }
 0xadc   :  { %3746 = vmatprep.subr.bf16.mxu1 %v4963_v60  ;;  %3780 = vmatpush1.bf16.msra.mxu0 %v5182_v42 }
 0xadd   :  { %3782 = vmatprep.subr.bf16.mxu0 %v5185_v62 }
 0xae0   :  { %3784 = vmatpush1.bf16.msra.mxu0 %v5189_v3 }
 0xae1   :  { %3786 = vmatprep.subr.bf16.mxu0 %v5193_v54  ;;  %v5916_v54 = vld [vmem:[#allocation63_spill] sm:$0xff] }
 0xae4   :  { %3788 = vmatpush1.bf16.msra.mxu0 %v5196_v44 }
 0xae5   :  { %3790 = vmatprep.subr.bf16.mxu0 %v5199_v59 }
 0xae8   :  { %3792 = vmatpush1.bf16.msra.mxu0 %v5202_v37  ;;  %v5915_v37 = vld [vmem:[#allocation62_spill] sm:$0xff] }
 0xae9   :  { %3794 = vmatprep.subr.bf16.mxu0 %v5205_v21  ;;  %v5914_v21 = vld [vmem:[#allocation61_spill] sm:$0xff] }
 0xaec   :  { %3796 = vmatpush1.bf16.msra.mxu0 %v5208_v24  ;;  %v5913_v24 = vld [vmem:[#allocation60_spill] sm:$0xff] }
 0xaed   :  { %3798 = vmatprep.subr.bf16.mxu0 %v5211_v27  ;;  %v5912_v27 = vld [vmem:[#allocation59_spill] sm:$0xff] }
 0xaf0   :  { %3800 = vmatpush1.bf16.msra.mxu0 %v5214_v0  ;;  %v5911_v0 = vld [vmem:[#allocation58_spill] sm:$0xff] }
 0xaf1   :  { %3802 = vmatprep.subr.bf16.mxu0 %v5217_v13  ;;  %v5910_v13 = vld [vmem:[#allocation57_spill] sm:$0xff] }
 0xaf4   :  { %3804 = vmatpush1.bf16.msra.mxu0 %v5220_v50  ;;  %v5909_v50 = vld [vmem:[#allocation56_spill] sm:$0xff] }
 0xaf5   :  { %3806 = vmatprep.subr.bf16.mxu0 %v5223_v18  ;;  %v5908_v18 = vld [vmem:[#allocation55_spill] sm:$0xff] }
 0xaf8   :  { %3808 = vmatpush1.bf16.msra.mxu0 %v5226_v2  ;;  %v5907_v2 = vld [vmem:[#allocation54_spill] sm:$0xff] }
 0xaf9   :  { %3810 = vmatprep.subr.bf16.mxu0 %v5229_v31  ;;  %v5906_v31 = vld [vmem:[#allocation53_spill] sm:$0xff] }
 0xafc   :  { %3812 = vmatpush1.bf16.msra.mxu0 %v5232_v45  ;;  %v5905_v45 = vld [vmem:[#allocation52_spill] sm:$0xff] }
 0xafd   :  { %3814 = vmatprep.subr.bf16.mxu0 %v5235_v56  ;;  %v5904_v56 = vld [vmem:[#allocation51_spill] sm:$0xff] }
 0xb00   :  { %3816 = vmatpush1.bf16.msra.mxu0 %v5238_v19  ;;  %v5903_v19 = vld [vmem:[#allocation50_spill] sm:$0xff] }
 0xb01   :  { %3818 = vmatprep.subr.bf16.mxu0 %v5241_v26  ;;  %v5902_v26 = vld [vmem:[#allocation49_spill] sm:$0xff] }
 0xb04   :  { %3820 = vmatpush1.bf16.msra.mxu0 %v5244_v49  ;;  %v5901_v49 = vld [vmem:[#allocation48_spill] sm:$0xff] }
 0xb05   :  { %3822 = vmatprep.subr.bf16.mxu0 %v5247_v6  ;;  %v5900_v6 = vld [vmem:[#allocation47_spill] sm:$0xff] }
 0xb08   :  { %3824 = vmatpush1.bf16.msra.mxu0 %v5250_v32  ;;  %v5899_v32 = vld [vmem:[#allocation46_spill] sm:$0xff] }
 0xb09   :  { %3826 = vmatprep.subr.bf16.mxu0 %v5253_v36  ;;  %v5898_v36 = vld [vmem:[#allocation45_spill] sm:$0xff] }
 0xb0c   :  { %3828 = vmatpush1.bf16.msra.mxu0 %v5256_v8  ;;  %v5897_v8 = vld [vmem:[#allocation44_spill] sm:$0xff] }
 0xb0d   :  { %3830 = vmatprep.subr.bf16.mxu0 %v5259_v14  ;;  %v5896_v14 = vld [vmem:[#allocation43_spill] sm:$0xff] }
 0xb10   :  { %3832 = vmatpush1.bf16.msra.mxu0 %v5262_v10  ;;  %v5895_v10 = vld [vmem:[#allocation42_spill] sm:$0xff] }
 0xb11   :  { %3834 = vmatprep.subr.bf16.mxu0 %v5265_v55  ;;  %v5894_v55 = vld [vmem:[#allocation41_spill] sm:$0xff] }
 0xb14   :  { %3836 = vmatpush1.bf16.msra.mxu0 %v5268_v63  ;;  %v5893_v63 = vld [vmem:[#allocation40_spill] sm:$0xff] }
 0xb15   :  { %3838 = vmatprep.subr.bf16.mxu0 %v5271_v5  ;;  %v5892_v5 = vld [vmem:[#allocation39_spill] sm:$0xff] }
 0xb18   :  { %3840 = vmatpush1.bf16.msra.mxu0 %v5274_v33  ;;  %v5891_v33 = vld [vmem:[#allocation38_spill] sm:$0xff] }
 0xb19   :  { %3905 = vmatprep.subr.bf16.mxu0 %v5876_v35 }
 0xbad   :  { %v1684_v41 = vpop.f32.mrb[22].mxu1 }
 0xbae   :  { %v1689_v52 = vsel %vm1688_vm2, %v1684_v41, -1e+30  ;;  %v3401_v43 = vpop.f32.mrb[23].mxu1 }
 0xbaf   :  { %v1690_v12 = vsel %vm416_vm1, %v1689_v52, -inf  ;;  %v5879_v43 = vld [vmem:[#allocation26_spill] sm:$0xff] }
 0xbb0   :  { %1691 = vmax.xlane.f32.xlu0 %v1690_v12  ;;  %v5880_v12 = vld [vmem:[#allocation27_spill] sm:$0xff] }
 0xc3d   :  { %v1692_v48 = vpop.xlane.xlu0 %1691 }
 0xc3e   :  { %v1693_v7 = vsub.f32 %v1689_v52, %v1692_v48  ;;  %v5878_v52 = vld [vmem:[#allocation25_spill] sm:$0xff]  ;;  %v5881_v48 = vld [vmem:[#allocation28_spill] sm:$0xff] }
 0xc40   :  { %v1694_v57 = vmul.f32 1.442695, %v1693_v7  ;;  %v5882_v7 = vld [vmem:[#allocation29_spill] sm:$0xff] }
 0xc42   :  { %4262 = vpow2.f32 %v1694_v57  ;;  %v5883_v57 = vld [vmem:[#allocation30_spill] sm:$0xff] }
 0xc4c   :  { %v4263_v4 = vpop.eup %4262 }
 0xc4d   :  { %v1696_v51 = vsel %vm1688_vm2, %v4263_v4, 0.0  ;;  %v5884_v4 = vld [vmem:[#allocation31_spill] sm:$0xff] }
 0xc4e   :  { %v1697_v20 = vsel %vm416_vm1, %v1696_v51, 0.0 }
 0xc4f   :  { %1698 = vadd.xlane.f32.xlu0 %v1697_v20  ;;  %v5886_v20 = vld [vmem:[#allocation33_spill] sm:$0xff] }
 0xcdc   :  { %v1699_v30 = vpop.xlane.xlu0 %1698 }
 0xcdd   :  { %v1700_v38 = vmax.f32 %v1699_v30, 1e-20  ;;  %v5887_v30 = vld [vmem:[#allocation34_spill] sm:$0xff] }
 0xcdf   :  { %4264 = vrcp.f32 %v1700_v38  ;;  %v5888_v38 = vld [vmem:[#allocation35_spill] sm:$0xff] }
 0xce9   :  { %v4265_v25 = vpop.eup %4264 }
 0xcea   :  { %v1702_v41 = vmul.f32 %v4265_v25, %v1696_v51  ;;  %v5885_v51 = vld [vmem:[#allocation32_spill] sm:$0xff] }
 0xceb   :  { %v5889_v25 = vld [vmem:[#allocation36_spill] sm:$0xff] }
 0xcec   :  { %3407 = vmatmul.mubr.msk.f32.vlgmr.msra.gmra.mrb[24].mxu1 %vm416_vm1, %v1702_v41  ;;  %v5890_v41 = vld [vmem:[#allocation37_spill] sm:$0xff] }
 0xced   :  { %3748 = vmatpush1.bf16.msra.mxu1 %v4966_v9  ;;  %1911 = vmatprep.mubr.f32.mxu1 %v5842_v39 }
 0xcee   :  { %3750 = vmatprep.subr.bf16.mxu1 %v4968_v11 }
 0xcf1   :  { %3752 = vmatpush1.bf16.msra.mxu1 %v4971_v16 }
 0xcf2   :  { %3754 = vmatprep.subr.bf16.mxu1 %v4975_v17 }
 0xcf5   :  { %3756 = vmatpush1.bf16.msra.mxu1 %v4978_v22 }
 0xcf6   :  { %3758 = vmatprep.subr.bf16.mxu1 %v4981_v23 }
 0xcf9   :  { %3760 = vmatpush1.bf16.msra.mxu1 %v4984_v28 }
 0xcfa   :  { %3762 = vmatprep.subr.bf16.mxu1 %v4987_v29 }
 0xcfd   :  { %3764 = vmatpush1.bf16.msra.mxu1 %v4990_v34 }
 0xcfe   :  { %3766 = vmatprep.subr.bf16.mxu1 %v5878_v52 }
 0xd01   :  { %3768 = vmatpush1.bf16.msra.mxu1 %v5879_v43 }
 0xd02   :  { %3770 = vmatprep.subr.bf16.mxu1 %v5880_v12 }
 0xd05   :  { %3772 = vmatpush1.bf16.msra.mxu1 %v5881_v48 }
 0xd06   :  { %3774 = vmatprep.subr.bf16.mxu1 %v5882_v7 }
 0xd09   :  { %3776 = vmatpush1.bf16.msra.mxu1 %v5883_v57 }
 0xd0a   :  { %3842 = vmatprep.subr.bf16.mxu1 %v5884_v4 }
 0xd0c   :  { %1912 = vmatmul.mubr.f32.vlgmr.msra.gmra.mrb[26].mxu1 %v5301_v61 }
 0xd0d   :  { %3844 = vmatpush1.bf16.msra.mxu1 %v5885_v51 }
 0xd0e   :  { %3846 = vmatprep.subr.bf16.mxu1 %v5886_v20 }
 0xd11   :  { %3848 = vmatpush1.bf16.msra.mxu1 %v5887_v30 }
 0xd12   :  { %3850 = vmatprep.subr.bf16.mxu1 %v5888_v38 }
 0xd15   :  { %3852 = vmatpush1.bf16.msra.mxu1 %v5889_v25 }
 0xd16   :  { %3854 = vmatprep.subr.bf16.mxu1 %v5890_v41 }
 0xd19   :  { %3856 = vmatpush1.bf16.msra.mxu1 %v5891_v33 }
 0xd1a   :  { %3858 = vmatprep.subr.bf16.mxu1 %v5892_v5 }
 0xd1d   :  { %3860 = vmatpush1.bf16.msra.mxu1 %v5893_v63 }
 0xd1e   :  { %3862 = vmatprep.subr.bf16.mxu1 %v5894_v55 }
 0xd21   :  { %3864 = vmatpush1.bf16.msra.mxu1 %v5895_v10 }
 0xd22   :  { %3866 = vmatprep.subr.bf16.mxu1 %v5896_v14 }
 0xd25   :  { %3868 = vmatpush1.bf16.msra.mxu1 %v5897_v8 }
 0xd26   :  { %3870 = vmatprep.subr.bf16.mxu1 %v5898_v36 }
 0xd29   :  { %3872 = vmatpush1.bf16.msra.mxu1 %v5899_v32 }
 0xd2a   :  { %3874 = vmatprep.subr.bf16.mxu1 %v5900_v6 }
 0xd2d   :  { %3876 = vmatpush1.bf16.msra.mxu1 %v5901_v49 }
 0xd2e   :  { %3878 = vmatprep.subr.bf16.mxu1 %v5902_v26 }
 0xd31   :  { %3880 = vmatpush1.bf16.msra.mxu1 %v5903_v19 }
 0xd32   :  { %3882 = vmatprep.subr.bf16.mxu1 %v5904_v56 }
 0xd35   :  { %3884 = vmatpush1.bf16.msra.mxu1 %v5905_v45 }
 0xd36   :  { %3886 = vmatprep.subr.bf16.mxu1 %v5906_v31 }
 0xd39   :  { %3888 = vmatpush1.bf16.msra.mxu1 %v5907_v2 }
 0xd3a   :  { %3890 = vmatprep.subr.bf16.mxu1 %v5908_v18 }
 0xd3d   :  { %3892 = vmatpush1.bf16.msra.mxu1 %v5909_v50 }
 0xd3e   :  { %3894 = vmatprep.subr.bf16.mxu1 %v5910_v13 }
 0xd41   :  { %3896 = vmatpush1.bf16.msra.mxu1 %v5911_v0 }
 0xd42   :  { %3898 = vmatprep.subr.bf16.mxu1 %v5912_v27 }
 0xd45   :  { %3900 = vmatpush1.bf16.msra.mxu1 %v5913_v24 }
 0xd46   :  { %3902 = vmatprep.subr.bf16.mxu1 %v5914_v21 }
 0xd49   :  { %3904 = vmatpush1.bf16.msra.mxu1 %v5915_v37 }
 0xd4a   :  { %3908 = vmatprep.subr.bf16.mxu1 %v5876_v35 }
 0xdbf   :  { %v1772_v59 = vpop.f32.mrb[24].mxu1 }
 0xdc0   :  { %v3408_v44 = vpop.f32.mrb[25].mxu1  ;;  %1982 = vmatprep.mubr.f32.mxu0 %v1772_v59  ;;  %2053 = vmatprep.mubr.f32.mxu1 %v1772_v59 }
 0xdc1   :  { %1983 = vmatmul.mubr.f32.vlgmr.msra.gmra.mrb[24].mxu0 %v5301_v61  ;;  %2054 = vmatmul.mubr.f32.vlgmr.msra.gmra.mrb[26].mxu1 %v5301_v61 }
 0xdc2   :  { %3907 = vmatpush3.bf16.xpose.msra.mxu0 %v5282_v1  ;;  %3910 = vmatpush3.bf16.msra.mxu1 %v5282_v1 }
 0xdc3   :  { %3413 = vmatprep.mubr.msk.f32.mxu0 %vm4580_vm0, %v5842_v39  ;;  %3944 = vmatprep.subr.bf16.mxu0 %v4963_v60 }
 0xdc4   :  { %3420 = vmatprep.mubr.msk.f32.mxu1 %vm4580_vm0, %v5842_v39  ;;  %3912 = vmatprep.subr.bf16.mxu1 %v5916_v54 }
 0xe94   :  { %v1984_v44 = vpop.f32.mrb[24].mxu0  ;;  %v2055_v59 = vpop.f32.mrb[26].mxu1 }
 0xe95   :  { %v2060_v3 = vadd.f32 %v1984_v44, %v5286_v46  ;;  %v1986_v62 = vpop.f32.mrb[25].mxu0  ;;  %v2057_v61 = vpop.f32.mrb[27].mxu1  ;;  %v2062_v37 = vadd.f32 %v2055_v59, %v5295_v53 }
 0xe96   :  { %v2061_v42 = vadd.f32 %v1986_v62, %v5288_v58  ;;  %v2063_v35 = vadd.f32 %v2057_v61, %v5292_v15 }
 0xe97   :  { %v3070_v40 = vmul.f32 -1.442695, %v2060_v3 }
 0xe98   :  { %v3071_v1 = vmul.f32 -1.442695, %v2061_v42  ;;  %v3072_v60 = vmul.f32 -1.442695, %v2063_v35 }
 0xe99   :  { %4266 = vpow2.f32 %v3070_v40 }
 0xe9a   :  { %4268 = vpow2.f32 %v3071_v1 }
 0xe9b   :  { %4270 = vpow2.f32 %v3072_v60  ;;  %v5951_v60 = vld [vmem:[#allocation92_spill] sm:$0xff] }
 0xe9c   :  { %4272 = vtanh.f32 %v2062_v37 }
 0xea3   :  { %v4267_v21 = vpop.eup %4266 }
 0xea4   :  { %v4269_v24 = vpop.eup %4268  ;;  %v2067_v54 = vadd.f32 1.0, %v4267_v21 }
 0xea5   :  { %v2073_v27 = vadd.f32 1.0, %v4269_v24  ;;  %v4271_v44 = vpop.eup %4270 }
 0xea6   :  { %4274 = vrcp.f32 %v2067_v54  ;;  %v4273_v46 = vpop.eup %4272  ;;  %v2080_v40 = vadd.f32 1.0, %v4271_v44  ;;  %v5952_v54 = vld [vmem:[#allocation93_spill] sm:$0xff]  ;;  %v5953_v44 = vld [vmem:[#allocation94_spill] sm:$0xff] }
 0xea7   :  { %4276 = vrcp.f32 %v2073_v27 }
 0xea8   :  { %4278 = vrcp.f32 %v2080_v40  ;;  %v5957_v40 = vld [vmem:[#allocation98_spill] sm:$0xff] }
 0xeb0   :  { %v4275_v62 = vpop.eup %4274 }
 0xeb1   :  { %v4277_v3 = vpop.eup %4276  ;;  %v2084_v42 = vmul.f32 %v4275_v62, %v4273_v46  ;;  %v5954_v62 = vld [vmem:[#allocation95_spill] sm:$0xff] }
 0xeb2   :  { %v2083_v1 = vmul.f32 %v4277_v3, %v5298_v47  ;;  %v4279_v35 = vpop.eup %4278  ;;  %v5937_v47 = vld [vmem:[#allocation78_spill] sm:$0xff]  ;;  %v5955_v3 = vld [vmem:[#allocation96_spill] sm:$0xff] }
 0xeb4   :  { %v5419_v61 = vadd.f32 %v2084_v42, %v2083_v1  ;;  %v5956_v42 = vld [vmem:[#allocation97_spill] sm:$0xff]  ;;  %v5958_v1 = vld [vmem:[#allocation99_spill] sm:$0xff] }
 0xeb6   :  { %4280 = vtanh.f32 %v5419_v61 }
 0xec0   :  { %v4281_v21 = vpop.eup %4280 }
 0xec1   :  { %v5422_v59 = vmul.f32 %v4281_v21, %v4279_v35  ;;  %v5959_v35 = vld [vmem:[#allocation100_spill] sm:$0xff]  ;;  %v5960_v21 = vld [vmem:[#allocation101_spill] sm:$0xff] }
 0xec3   :  { %3414 = vmatmul.mubr.f32.vlgmr.msra.gmra.mrb[26].mxu0 %v5422_v59 }
 0xec4   :  { %3946 = vmatpush1.bf16.msra.mxu0 %v4966_v9  ;;  %2380 = vmatprep.mubr.f32.mxu0 %v5842_v39  ;;  %v5917_v9 = vld [vmem:[#allocation59_spill] sm:$0xff] }
 0xec5   :  { %3948 = vmatprep.subr.bf16.mxu0 %v4968_v11  ;;  %v5918_v11 = vld [vmem:[#allocation60_spill] sm:$0xff] }
 0xec8   :  { %3950 = vmatpush1.bf16.msra.mxu0 %v4971_v16  ;;  %v5919_v16 = vld [vmem:[#allocation61_spill] sm:$0xff] }
 0xec9   :  { %3952 = vmatprep.subr.bf16.mxu0 %v4975_v17  ;;  %v5920_v17 = vld [vmem:[#allocation62_spill] sm:$0xff] }
 0xecc   :  { %3954 = vmatpush1.bf16.msra.mxu0 %v4978_v22  ;;  %v5921_v22 = vmov 0.0|0.0  }
 0xecd   :  { %3956 = vmatprep.subr.bf16.mxu0 %v4981_v23 }
 0xed0   :  { %3958 = vmatpush1.bf16.msra.mxu0 %v4984_v28  ;;  %v2716_v28 = vld [vmem:[#allocation13 + $0x10] sm:$0xff] }
 0xed1   :  { %3960 = vmatprep.subr.bf16.mxu0 %v4987_v29 }
 0xed4   :  { %3962 = vmatpush1.bf16.msra.mxu0 %v4990_v34 }
 0xed5   :  { %3964 = vmatprep.subr.bf16.mxu0 %v5878_v52  ;;  %v5938_v52 = vld [vmem:[#allocation79_spill] sm:$0xff] }
 0xed8   :  { %3966 = vmatpush1.bf16.msra.mxu0 %v5879_v43  ;;  %v5939_v43 = vld [vmem:[#allocation80_spill] sm:$0xff] }
 0xed9   :  { %3968 = vmatprep.subr.bf16.mxu0 %v5880_v12  ;;  %v5940_v12 = vld [vmem:[#allocation81_spill] sm:$0xff] }
 0xedc   :  { %3970 = vmatpush1.bf16.msra.mxu0 %v5881_v48  ;;  %v5941_v48 = vld [vmem:[#allocation82_spill] sm:$0xff] }
 0xedd   :  { %3972 = vmatprep.subr.bf16.mxu0 %v5882_v7  ;;  %v5942_v7 = vld [vmem:[#allocation83_spill] sm:$0xff] }
 0xee0   :  { %3974 = vmatpush1.bf16.msra.mxu0 %v5883_v57  ;;  %v5943_v57 = vld [vmem:[#allocation84_spill] sm:$0xff] }
 0xee1   :  { %4040 = vmatprep.subr.bf16.mxu0 %v5884_v4  ;;  %v5944_v4 = vld [vmem:[#allocation85_spill] sm:$0xff] }
 0xee3   :  { %2381 = vmatmul.mubr.f32.vlgmr.msra.gmra.mrb[28].mxu0 %v5422_v59 }
 0xee4   :  { %4042 = vmatpush1.bf16.msra.mxu0 %v5885_v51  ;;  %v5945_v51 = vld [vmem:[#allocation86_spill] sm:$0xff] }
 0xee5   :  { %4044 = vmatprep.subr.bf16.mxu0 %v5886_v20  ;;  %v5946_v20 = vld [vmem:[#allocation87_spill] sm:$0xff] }
 0xee8   :  { %4046 = vmatpush1.bf16.msra.mxu0 %v5887_v30  ;;  %v5947_v30 = vld [vmem:[#allocation88_spill] sm:$0xff] }
 0xee9   :  { %4048 = vmatprep.subr.bf16.mxu0 %v5888_v38  ;;  %v5948_v38 = vld [vmem:[#allocation89_spill] sm:$0xff] }
 0xeec   :  { %4050 = vmatpush1.bf16.msra.mxu0 %v5889_v25  ;;  %v5949_v25 = vld [vmem:[#allocation90_spill] sm:$0xff] }
 0xeed   :  { %4052 = vmatprep.subr.bf16.mxu0 %v5890_v41  ;;  %v5950_v41 = vld [vmem:[#allocation91_spill] sm:$0xff] }
 0xef0   :  { %4054 = vmatpush1.bf16.msra.mxu0 %v5891_v33  ;;  %v5936_v33 = vld [vmem:[#allocation77_spill] sm:$0xff] }
 0xef1   :  { %4056 = vmatprep.subr.bf16.mxu0 %v5892_v5  ;;  %v5935_v5 = vld [vmem:[#allocation76_spill] sm:$0xff] }
 0xef4   :  { %4058 = vmatpush1.bf16.msra.mxu0 %v5893_v63  ;;  %v5934_v63 = vld [vmem:[#allocation75_spill] sm:$0xff] }
 0xef5   :  { %4060 = vmatprep.subr.bf16.mxu0 %v5894_v55  ;;  %v5933_v55 = vld [vmem:[#allocation74_spill] sm:$0xff] }
 0xef8   :  { %4062 = vmatpush1.bf16.msra.mxu0 %v5895_v10  ;;  %v5932_v10 = vld [vmem:[#allocation73_spill] sm:$0xff] }
 0xef9   :  { %4064 = vmatprep.subr.bf16.mxu0 %v5896_v14  ;;  %v5931_v14 = vld [vmem:[#allocation72_spill] sm:$0xff] }
 0xefc   :  { %4066 = vmatpush1.bf16.msra.mxu0 %v5897_v8  ;;  %v5930_v8 = vld [vmem:[#allocation71_spill] sm:$0xff] }
 0xefd   :  { %4068 = vmatprep.subr.bf16.mxu0 %v5898_v36  ;;  %v5929_v36 = vld [vmem:[#allocation70_spill] sm:$0xff] }
 0xf00   :  { %4070 = vmatpush1.bf16.msra.mxu0 %v5899_v32  ;;  %v5928_v32 = vld [vmem:[#allocation69_spill] sm:$0xff] }
 0xf01   :  { %4072 = vmatprep.subr.bf16.mxu0 %v5900_v6  ;;  %v5927_v6 = vld [vmem:[#allocation68_spill] sm:$0xff] }
 0xf04   :  { %4074 = vmatpush1.bf16.msra.mxu0 %v5901_v49  ;;  %v5926_v49 = vld [vmem:[#allocation67_spill] sm:$0xff] }
 0xf05   :  { %4076 = vmatprep.subr.bf16.mxu0 %v5902_v26  ;;  %v5925_v26 = vld [vmem:[#allocation66_spill] sm:$0xff] }
 0xf08   :  { %4078 = vmatpush1.bf16.msra.mxu0 %v5903_v19  ;;  %v5924_v19 = vld [vmem:[#allocation65_spill] sm:$0xff] }
 0xf09   :  { %4080 = vmatprep.subr.bf16.mxu0 %v5904_v56  ;;  %v5923_v56 = vld [vmem:[#allocation64_spill] sm:$0xff] }
 0xf0c   :  { %4082 = vmatpush1.bf16.msra.mxu0 %v5905_v45 }
 0xf0d   :  { %4084 = vmatprep.subr.bf16.mxu0 %v5906_v31 }
 0xf10   :  { %4086 = vmatpush1.bf16.msra.mxu0 %v5907_v2 }
 0xf11   :  { %4088 = vmatprep.subr.bf16.mxu0 %v5908_v18 }
 0xf14   :  { %4090 = vmatpush1.bf16.msra.mxu0 %v5909_v50 }
 0xf15   :  { %4092 = vmatprep.subr.bf16.mxu0 %v5910_v13 }
 0xf18   :  { %4094 = vmatpush1.bf16.msra.mxu0 %v5911_v0 }
 0xf19   :  { %4096 = vmatprep.subr.bf16.mxu0 %v5917_v9  ;;  %v5961_v9 = vld [vmem:[#allocation102_spill] sm:$0xff] }
 0xf1c   :  { %4098 = vmatpush1.bf16.msra.mxu0 %v5918_v11  ;;  %v5962_v11 = vld [vmem:[#allocation103_spill] sm:$0xff] }
 0xf1d   :  { %4100 = vmatprep.subr.bf16.mxu0 %v5919_v16  ;;  %v5963_v16 = vld [vmem:[#allocation104_spill] sm:$0xff] }
 0xf20   :  { %4102 = vmatpush1.bf16.msra.mxu0 %v5920_v17  ;;  %v5964_v17 = vld [vmem:[#allocation105_spill] sm:$0xff] }
 0xf21   :  { %4106 = vmatprep.subr.bf16.mxu0 %v5921_v22 }
 0xf96   :  { %v2154_v23 = vpop.f32.mrb[26].mxu0 }
 0xf97   :  { %v2158_v29 = vsel %vm1688_vm2, %v2154_v23, -1e+30  ;;  %v3415_v34 = vpop.f32.mrb[27].mxu0  ;;  %v5965_v23 = vld [vmem:[#allocation106_spill] sm:$0xff] }
 0xf98   :  { %v2159_v46 = vsel %vm416_vm1, %v2158_v29, -inf  ;;  %v5967_v34 = vld [vmem:[#allocation108_spill] sm:$0xff] }
 0xf99   :  { %2160 = vmax.xlane.f32.xlu1 %v2159_v46  ;;  %v5968_v46 = vld [vmem:[#allocation109_spill] sm:$0xff] }
0x1026   :  { %v2161_v37 = vpop.xlane.xlu1 %2160 }
0x1027   :  { %v2162_v24 = vsub.f32 %v2158_v29, %v2161_v37  ;;  %v5966_v29 = vld [vmem:[#allocation107_spill] sm:$0xff]  ;;  %v5969_v37 = vld [vmem:[#allocation110_spill] sm:$0xff] }
0x1029   :  { %v2163_v27 = vmul.f32 1.442695, %v2162_v24 }
0x102b   :  { %4282 = vpow2.f32 %v2163_v27 }
0x1035   :  { %v4283_v0 = vpop.eup %4282 }
0x1036   :  { %v2165_v13 = vsel %vm1688_vm2, %v4283_v0, 0.0  ;;  %v5970_v0 = vld [vmem:[#allocation111_spill] sm:$0xff] }
0x1037   :  { %v2166_v50 = vsel %vm416_vm1, %v2165_v13, 0.0 }
0x1038   :  { %2167 = vadd.xlane.f32.xlu1 %v2166_v50 }
0x10c5   :  { %v2168_v18 = vpop.xlane.xlu1 %2167 }
0x10c6   :  { %v2169_v2 = vmax.f32 %v2168_v18, 1e-20  ;;  %v5971_v18 = vld [vmem:[#allocation112_spill] sm:$0xff] }
0x10c8   :  { %4284 = vrcp.f32 %v2169_v2 }
0x10d2   :  { %v4285_v31 = vpop.eup %4284 }
0x10d3   :  { %v2171_v45 = vmul.f32 %v4285_v31, %v2165_v13 }
0x10d5   :  { %3421 = vmatmul.mubr.msk.f32.vlgmr.msra.gmra.mrb[28].mxu1 %vm416_vm1, %v2171_v45 }
0x10d6   :  { %3914 = vmatpush1.bf16.msra.mxu1 %v5923_v56  ;;  %2309 = vmatprep.mubr.f32.mxu1 %v5842_v39 }
0x10d7   :  { %3916 = vmatprep.subr.bf16.mxu1 %v5924_v19 }
0x10da   :  { %3918 = vmatpush1.bf16.msra.mxu1 %v5925_v26 }
0x10db   :  { %3920 = vmatprep.subr.bf16.mxu1 %v5926_v49 }
0x10de   :  { %3922 = vmatpush1.bf16.msra.mxu1 %v5927_v6 }
0x10df   :  { %3924 = vmatprep.subr.bf16.mxu1 %v5928_v32 }
0x10e2   :  { %3926 = vmatpush1.bf16.msra.mxu1 %v5929_v36 }
0x10e3   :  { %3928 = vmatprep.subr.bf16.mxu1 %v5930_v8 }
0x10e6   :  { %3930 = vmatpush1.bf16.msra.mxu1 %v5931_v14 }
0x10e7   :  { %3932 = vmatprep.subr.bf16.mxu1 %v5932_v10 }
0x10ea   :  { %3934 = vmatpush1.bf16.msra.mxu1 %v5933_v55 }
0x10eb   :  { %3936 = vmatprep.subr.bf16.mxu1 %v5934_v63 }
0x10ee   :  { %3938 = vmatpush1.bf16.msra.mxu1 %v5935_v5 }
0x10ef   :  { %3940 = vmatprep.subr.bf16.mxu1 %v5936_v33 }
0x10f2   :  { %3942 = vmatpush1.bf16.msra.mxu1 %v5937_v47 }
0x10f3   :  { %3976 = vmatprep.subr.bf16.mxu1 %v5938_v52 }
0x10f5   :  { %2310 = vmatmul.mubr.f32.vlgmr.msra.gmra.mrb[30].mxu1 %v5422_v59 }
0x10f6   :  { %3978 = vmatpush1.bf16.msra.mxu1 %v5939_v43 }
0x10f7   :  { %3980 = vmatprep.subr.bf16.mxu1 %v5940_v12 }
0x10fa   :  { %3982 = vmatpush1.bf16.msra.mxu1 %v5941_v48 }
0x10fb   :  { %3984 = vmatprep.subr.bf16.mxu1 %v5942_v7 }
0x10fe   :  { %3986 = vmatpush1.bf16.msra.mxu1 %v5943_v57 }
0x10ff   :  { %3988 = vmatprep.subr.bf16.mxu1 %v5944_v4 }
0x1102   :  { %3990 = vmatpush1.bf16.msra.mxu1 %v5945_v51 }
0x1103   :  { %3992 = vmatprep.subr.bf16.mxu1 %v5946_v20 }
0x1106   :  { %3994 = vmatpush1.bf16.msra.mxu1 %v5947_v30 }
0x1107   :  { %3996 = vmatprep.subr.bf16.mxu1 %v5948_v38 }
0x110a   :  { %3998 = vmatpush1.bf16.msra.mxu1 %v5949_v25  ;;  %v2730_v25 = vld [vmem:[#allocation13 + $0x80] sm:$0xff] }
0x110b   :  { %4000 = vmatprep.subr.bf16.mxu1 %v5950_v41  ;;  %v2731_v41 = vld [vmem:[#allocation13 + $0x88] sm:$0xff] }
0x110e   :  { %4002 = vmatpush1.bf16.msra.mxu1 %v5951_v60  ;;  %v4109_v60 = vpack.c.bf16 %v2731_v41, %v2730_v25  ;;  %v2830_v25 = vld [vmem:[%s5645_s12 + $0x30] sm:$0xff]  ;;  %v2831_v41 = vld [vmem:[%s5645_s12 + $0x38] sm:$0xff] }
0x110f   :  { %4004 = vmatprep.subr.bf16.mxu1 %v5952_v54 }
0x1112   :  { %4006 = vmatpush1.bf16.msra.mxu1 %v5953_v44 }
0x1113   :  { %4008 = vmatprep.subr.bf16.mxu1 %v5954_v62  ;;  %v2714_v62 = vld [vmem:[#allocation13] sm:$0xff] }
0x1116   :  { %4010 = vmatpush1.bf16.msra.mxu1 %v5955_v3  ;;  %v2715_v3 = vld [vmem:[#allocation13 + $0x8] sm:$0xff] }
0x1117   :  { %4012 = vmatprep.subr.bf16.mxu1 %v5956_v42  ;;  %v2732_v42 = vld [vmem:[#allocation13 + $0x90] sm:$0xff] }
0x111a   :  { %4014 = vmatpush1.bf16.msra.mxu1 %v5957_v40  ;;  %v2733_v40 = vld [vmem:[#allocation13 + $0x98] sm:$0xff] }
0x111b   :  { %4016 = vmatprep.subr.bf16.mxu1 %v5958_v1 }
0x111e   :  { %4018 = vmatpush1.bf16.msra.mxu1 %v5959_v35  ;;  %v4111_v35 = vpack.c.bf16 %v2715_v3, %v2714_v62  ;;  %v2834_v3 = vld [vmem:[%s5645_s12 + $0x50] sm:$0xff] }
0x111f   :  { %4020 = vmatprep.subr.bf16.mxu1 %v5960_v21 }
0x1122   :  { %4022 = vmatpush1.bf16.msra.mxu1 %v5961_v9  ;;  %v4113_v9 = vpack.c.bf16 %v2733_v40, %v2732_v42  ;;  %v2835_v42 = vld [vmem:[%s5645_s12 + $0x58] sm:$0xff] }
0x1123   :  { %4024 = vmatprep.subr.bf16.mxu1 %v5962_v11  ;;  %v2717_v11 = vld [vmem:[#allocation13 + $0x18] sm:$0xff]  ;;  %v4157_v40 = vpack.c.bf16 %v2835_v42, %v2834_v3 }
0x1126   :  { %4026 = vmatpush1.bf16.msra.mxu1 %v5963_v16  ;;  %v2734_v16 = vld [vmem:[#allocation13 + $0xa0] sm:$0xff] }
0x1127   :  { %4028 = vmatprep.subr.bf16.mxu1 %v5964_v17  ;;  %v2735_v17 = vld [vmem:[#allocation13 + $0xa8] sm:$0xff] }
0x112a   :  { %4030 = vmatpush1.bf16.msra.mxu1 %v5965_v23  ;;  %v4115_v23 = vpack.c.bf16 %v2717_v11, %v2716_v28  ;;  %v2838_v11 = vld [vmem:[%s5645_s12 + $0x70] sm:$0xff] }
0x112b   :  { %4032 = vmatprep.subr.bf16.mxu1 %v5966_v29  ;;  %v4117_v29 = vpack.c.bf16 %v2735_v17, %v2734_v16  ;;  %v2918_v16 = vld [vmem:[%s5647_s14] sm:$0xff]  ;;  %v2919_v17 = vld [vmem:[%s5647_s14 + $0x8] sm:$0xff] }
0x112e   :  { %4034 = vmatpush1.bf16.msra.mxu1 %v5967_v34  ;;  %v2718_v34 = vld [vmem:[#allocation13 + $0x20] sm:$0xff] }
0x112f   :  { %4036 = vmatprep.subr.bf16.mxu1 %v5968_v46  ;;  %v2719_v46 = vld [vmem:[#allocation13 + $0x28] sm:$0xff] }
0x1132   :  { %4038 = vmatpush1.bf16.msra.mxu1 %v5969_v37  ;;  %v2736_v37 = vld [vmem:[#allocation13 + $0xb0] sm:$0xff] }
0x1133   :  { %4103 = vmatprep.subr.bf16.mxu1 %v5921_v22 }
0x11a8   :  { %v2241_v24 = vpop.f32.mrb[28].mxu1 }
0x11a9   :  { %v3422_v27 = vpop.f32.mrb[29].mxu1  ;;  %2451 = vmatprep.mubr.f32.mxu1 %v2241_v24  ;;  %2522 = vmatprep.mubr.f32.mxu0 %v2241_v24  ;;  %v2737_v24 = vld [vmem:[#allocation13 + $0xb8] sm:$0xff] }
0x11aa   :  { %2452 = vmatmul.mubr.f32.vlgmr.msra.gmra.mrb[30].mxu1 %v5422_v59  ;;  %2523 = vmatmul.mubr.f32.vlgmr.msra.gmra.mrb[28].mxu0 %v5422_v59  ;;  %v4119_v27 = vpack.c.bf16 %v2719_v46, %v2718_v34  ;;  %v3078_v34 = vld [vmem:[#allocation15] ss:$0 sm:$0xff] }
0x11ab   :  { %4105 = vmatpush3.bf16.xpose.msra.mxu1 %v5970_v0  ;;  %4108 = vmatpush3.bf16.msra.mxu0 %v5970_v0  ;;  %v4121_v0 = vpack.c.bf16 %v2737_v24, %v2736_v37 }
0x11ac   :  { %3427 = vmatprep.mubr.msk.f32.mxu1 %vm4580_vm0, %v5842_v39  ;;  %3434 = vmatprep.mubr.msk.f32.mxu0 %vm4580_vm0, %v5842_v39 }
0x11ad   :  { %4141 = vmatprep.subr.bf16.mxu1 %v5921_v22  ;;  %4110 = vmatprep.subr.bf16.mxu0 %v4109_v60  ;;  %v4151_v60 = vpack.c.bf16 %v2831_v41, %v2830_v25 }
0x127d   :  { %v2453_v13 = vpop.f32.mrb[30].mxu1  ;;  %v2524_v50 = vpop.f32.mrb[28].mxu0 }
0x127e   :  { %v2529_v2 = vadd.f32 %v2453_v13, %v5971_v18  ;;  %v2455_v31 = vpop.f32.mrb[31].mxu1  ;;  %v2526_v45 = vpop.f32.mrb[29].mxu0  ;;  %v2531_v6 = vadd.f32 %v2524_v50, %v5295_v53  ;;  %v2720_v13 = vld [vmem:[#allocation13 + $0x30] sm:$0xff]  ;;  %v2721_v50 = vld [vmem:[#allocation13 + $0x38] sm:$0xff]  ;;  %v2738_v18 = vld [vmem:[#allocation13 + $0xc0] sm:$0xff] }
0x127f   :  { %v2530_v59 = vadd.f32 %v2455_v31, %v5288_v58  ;;  %v2532_v26 = vadd.f32 %v2526_v45, %v5292_v15  ;;  %v4123_v31 = vpack.c.bf16 %v2721_v50, %v2720_v13  ;;  %v2921_v13 = vld [vmem:[%s5647_s14 + $0x18] sm:$0xff] }
0x1280   :  { %v3074_v56 = vmul.f32 -1.442695, %v2529_v2  ;;  %v2739_v2 = vld [vmem:[#allocation13 + $0xc8] sm:$0xff] }
0x1281   :  { %v3075_v19 = vmul.f32 -1.442695, %v2530_v59  ;;  %v3076_v49 = vmul.f32 -1.442695, %v2532_v26  ;;  %v4125_v45 = vpack.c.bf16 %v2739_v2, %v2738_v18  ;;  %v2722_v59 = vld [vmem:[#allocation13 + $0x40] sm:$0xff]  ;;  %v2741_v26 = vld [vmem:[#allocation13 + $0xd8] sm:$0xff] }
0x1282   :  { %4286 = vpow2.f32 %v3074_v56  ;;  %v2723_v56 = vld [vmem:[#allocation13 + $0x48] sm:$0xff]  ;;  %v3079_v18 = vld [vmem:[#allocation16] ss:$0 sm:$0xff] }
0x1283   :  { %4288 = vpow2.f32 %v3075_v19  ;;  %v2740_v19 = vld [vmem:[#allocation13 + $0xd0] sm:$0xff] }
0x1284   :  { %4290 = vpow2.f32 %v3076_v49  ;;  %v4127_v49 = vpack.c.bf16 %v2723_v56, %v2722_v59  ;;  %v3080_v59 = vld [vmem:[#allocation18] ss:$0 sm:$0xff] }
0x1285   :  { %4292 = vtanh.f32 %v2531_v6  ;;  %v4129_v6 = vpack.c.bf16 %v2741_v26, %v2740_v19 }
0x128c   :  { %v4287_v32 = vpop.eup %4286 }
0x128d   :  { %v4289_v36 = vpop.eup %4288  ;;  %v2536_v8 = vadd.f32 1.0, %v4287_v32  ;;  %v2724_v32 = vld [vmem:[#allocation13 + $0x50] sm:$0xff] }
0x128e   :  { %v2542_v14 = vadd.f32 1.0, %v4289_v36  ;;  %v4291_v10 = vpop.eup %4290  ;;  %v2725_v36 = vld [vmem:[#allocation13 + $0x58] sm:$0xff] }
0x128f   :  { %4294 = vrcp.f32 %v2536_v8  ;;  %v4293_v55 = vpop.eup %4292  ;;  %v2549_v33 = vadd.f32 1.0, %v4291_v10  ;;  %v2742_v8 = vld [vmem:[#allocation13 + $0xe0] sm:$0xff]  ;;  %v4131_v10 = vpack.c.bf16 %v2725_v36, %v2724_v32 }
0x1290   :  { %4296 = vrcp.f32 %v2542_v14  ;;  %v2743_v14 = vld [vmem:[#allocation13 + $0xe8] sm:$0xff] }
0x1291   :  { %4298 = vrcp.f32 %v2549_v33  ;;  %v2745_v33 = vld [vmem:[#allocation13 + $0xf8] sm:$0xff] }
0x1299   :  { %v4295_v58 = vpop.eup %4294 }
0x129a   :  { %v4297_v63 = vpop.eup %4296  ;;  %v2553_v5 = vmul.f32 %v4295_v58, %v4293_v55  ;;  %v4133_v55 = vpack.c.bf16 %v2743_v14, %v2742_v8  ;;  %v2726_v58 = vld [vmem:[#allocation13 + $0x60] sm:$0xff] }
0x129b   :  { %v2552_v47 = vmul.f32 %v4297_v63, %v5419_v61  ;;  %v4299_v53 = vpop.eup %4298  ;;  %v2727_v63 = vld [vmem:[#allocation13 + $0x68] sm:$0xff] }
0x129d   :  { %v2554_v15 = vadd.f32 %v2553_v5, %v2552_v47  ;;  %v2744_v5 = vld [vmem:[#allocation13 + $0xf0] sm:$0xff]  ;;  %v4135_v47 = vpack.c.bf16 %v2727_v63, %v2726_v58 }
0x129f   :  { %4300 = vtanh.f32 %v2554_v15  ;;  %v4137_v15 = vpack.c.bf16 %v2745_v33, %v2744_v5 }
0x12a9   :  { %v4301_v52 = vpop.eup %4300 }
0x12aa   :  { %v5546_v43 = vmul.f32 %v4301_v52, %v4299_v53  ;;  %v2728_v53 = vld [vmem:[#allocation13 + $0x70] sm:$0xff]  ;;  %v2729_v52 = vld [vmem:[#allocation13 + $0x78] sm:$0xff] }
0x12ac   :  { %3428 = vmatmul.mubr.f32.vlgmr.msra.gmra.mrb[32].mxu1 %v5546_v43 }
0x12ad   :  { %3469 = vmatprep.mubr.msk.f32.mxu1 %vm4580_vm0, %v5842_v39 }
0x137f   :  { %v2623_v12 = vpop.f32.mrb[32].mxu1 }
0x1380   :  { %v2627_v48 = vsel %vm1688_vm2, %v2623_v12, -1e+30  ;;  %v3429_v7 = vpop.f32.mrb[33].mxu1  ;;  %v4139_v12 = vpack.c.bf16 %v2729_v52, %v2728_v53 }
0x1381   :  { %v2628_v57 = vsel %vm416_vm1, %v2627_v48, -inf  ;;  %v2825_v7 = vld [vmem:[%s5645_s12 + $0x8] sm:$0xff] }
0x1382   :  { %2629 = vmax.xlane.f32.xlu0 %v2628_v57  ;;  %v2826_v57 = vld [vmem:[%s5645_s12 + $0x10] sm:$0xff] }
0x140f   :  { %v2630_v61 = vpop.xlane.xlu0 %2629 }
0x1410   :  { %v2631_v4 = vsub.f32 %v2627_v48, %v2630_v61  ;;  %v2824_v48 = vld [vmem:[%s5645_s12] sm:$0xff] }
0x1411   :  { %v4142_v61 = vpack.c.bf16 %v2825_v7, %v2824_v48 }
0x1412   :  { %v2632_v51 = vmul.f32 1.442695, %v2631_v4  ;;  %v2827_v4 = vld [vmem:[%s5645_s12 + $0x18] sm:$0xff] }
0x1413   :  { %4143 = vmatpush3.bf16.msra.mxu1 %v4142_v61 }
0x1414   :  { %4302 = vpow2.f32 %v2632_v51  ;;  %v4145_v51 = vpack.c.bf16 %v2827_v4, %v2826_v57  ;;  %4144 = vmatprep.subr.bf16.mxu1 %v5921_v22 }
0x1417   :  { %4146 = vmatpush3.bf16.msra.mxu1 %v4145_v51 }
0x1418   :  { %4147 = vmatprep.subr.bf16.mxu1 %v5921_v22 }
0x141e   :  { %v4303_v20 = vpop.eup %4302 }
0x141f   :  { %v2634_v30 = vsel %vm1688_vm2, %v4303_v20, 0.0  ;;  %v2828_v20 = vld [vmem:[%s5645_s12 + $0x20] sm:$0xff] }
0x1420   :  { %v2635_v38 = vsel %vm416_vm1, %v2634_v30, 0.0 }
0x1421   :  { %2636 = vadd.xlane.f32.xlu1 %v2635_v38 }
0x14ae   :  { %v2637_v54 = vpop.xlane.xlu1 %2636 }
0x14af   :  { %v2638_v44 = vmax.f32 %v2637_v54, 1e-20  ;;  %v2832_v54 = vld [vmem:[%s5645_s12 + $0x40] sm:$0xff] }
0x14b1   :  { %4304 = vrcp.f32 %v2638_v44  ;;  %v2833_v44 = vld [vmem:[%s5645_s12 + $0x48] sm:$0xff] }
0x14b2   :  { %v4154_v62 = vpack.c.bf16 %v2833_v44, %v2832_v54 }
0x14bb   :  { %v4305_v1 = vpop.eup %4304 }
0x14bc   :  { %v2640_v21 = vmul.f32 %v4305_v1, %v2634_v30  ;;  %v2829_v30 = vld [vmem:[%s5645_s12 + $0x28] sm:$0xff] }
0x14bd   :  { %v4148_v38 = vpack.c.bf16 %v2829_v30, %v2828_v20 }
0x14be   :  { %3435 = vmatmul.mubr.msk.f32.vlgmr.msra.gmra.mrb[30].mxu0 %vm416_vm1, %v2640_v21  ;;  %v2836_v21 = vld [vmem:[%s5645_s12 + $0x60] sm:$0xff] }
0x14bf   :  { %4112 = vmatpush3.bf16.msra.mxu0 %v4111_v35  ;;  %4149 = vmatpush3.bf16.msra.mxu1 %v4148_v38 }
0x14c0   :  { %4114 = vmatprep.subr.bf16.mxu0 %v4113_v9  ;;  %4150 = vmatprep.subr.bf16.mxu1 %v5921_v22  ;;  %v2837_v9 = vld [vmem:[%s5645_s12 + $0x68] sm:$0xff] }
0x14c1   :  { %v4160_v28 = vpack.c.bf16 %v2837_v9, %v2836_v21 }
0x14c3   :  { %4116 = vmatpush3.bf16.msra.mxu0 %v4115_v23  ;;  %4152 = vmatpush3.bf16.msra.mxu1 %v4151_v60  ;;  %v4166_v23 = vpack.c.bf16 %v2919_v17, %v2918_v16 }
0x14c4   :  { %4118 = vmatprep.subr.bf16.mxu0 %v4117_v29  ;;  %4153 = vmatprep.subr.bf16.mxu1 %v5921_v22 }
0x14c7   :  { %4120 = vmatpush3.bf16.msra.mxu0 %v4119_v27  ;;  %4155 = vmatpush3.bf16.msra.mxu1 %v4154_v62 }
0x14c8   :  { %4122 = vmatprep.subr.bf16.mxu0 %v4121_v0  ;;  %4156 = vmatprep.subr.bf16.mxu1 %v5921_v22  ;;  %v2920_v0 = vld [vmem:[%s5647_s14 + $0x10] sm:$0xff] }
0x14c9   :  { %v4169_v50 = vpack.c.bf16 %v2921_v13, %v2920_v0 }
0x14cb   :  { %4124 = vmatpush3.bf16.msra.mxu0 %v4123_v31  ;;  %4158 = vmatpush3.bf16.msra.mxu1 %v4157_v40 }
0x14cc   :  { %4126 = vmatprep.subr.bf16.mxu0 %v4125_v45  ;;  %4159 = vmatprep.subr.bf16.mxu1 %v5921_v22 }
0x14cf   :  { %4128 = vmatpush3.bf16.msra.mxu0 %v4127_v49  ;;  %4161 = vmatpush3.bf16.msra.mxu1 %v4160_v28 }
0x14d0   :  { %4130 = vmatprep.subr.bf16.mxu0 %v4129_v6  ;;  %4162 = vmatprep.subr.bf16.mxu1 %v5921_v22 }
0x14d3   :  { %4132 = vmatpush3.bf16.msra.mxu0 %v4131_v10 }
0x14d4   :  { %4134 = vmatprep.subr.bf16.mxu0 %v4133_v55 }
0x14d7   :  { %4136 = vmatpush3.bf16.msra.mxu0 %v4135_v47 }
0x14d8   :  { %4138 = vmatprep.subr.bf16.mxu0 %v4137_v15 }
0x14db   :  { %4140 = vmatpush3.bf16.msra.mxu0 %v4139_v12 }
0x14dc   :  { %4165 = vmatprep.subr.bf16.mxu0 %v5921_v22 }
0x1591   :  { %v2710_v1 = vpop.f32.mrb[30].mxu0 }
0x1592   :  { %v3436_v35 = vpop.f32.mrb[31].mxu0  ;;  %2817 = vmatprep.mubr.f32.mxu0 %v2710_v1 }
0x1593   :  { %2818 = vmatmul.mubr.f32.vlgmr.msra.gmra.mrb[32].mxu0 %v5546_v43 }
0x1594   :  { %3480 = vmatprep.mubr.msk.f32.mxu0 %vm4580_vm0, %v5842_v39  ;;  %v2839_v39 = vld [vmem:[%s5645_s12 + $0x78] sm:$0xff]  ;;  %4167 = vmatpush3.bf16.msra.mxu0 %v4166_v23 }
0x1595   :  { %v4163_v43 = vpack.c.bf16 %v2839_v39, %v2838_v11  ;;  %4168 = vmatprep.subr.bf16.mxu0 %v5921_v22 }
0x1597   :  { %4164 = vmatpush3.bf16.msra.mxu1 %v4163_v43 }
0x1598   :  { %4170 = vmatpush3.bf16.msra.mxu0 %v4169_v50 }
0x1666   :  { %v3205_v29 = vpop.f32.mrb[32].mxu0 }
0x1667   :  { %v3206_v46 = vpop.f32.mrb[33].mxu0 }
0x1668   :  { %v3207_v37 = vadd.f32 %v3206_v46, %v3205_v29 }
0x166a   :  { %v2820_v24 = vadd.f32 %v3207_v37, %v3078_v34 }
0x166c   :  { %v2823_v27 = vmax.f32 %v2820_v24, 0.0 }
0x166e   :  { %3470 = vmatmul.mubr.f32.vlgmr.msra.gmra.mrb[34].mxu1 %v2823_v27 }
0x1741   :  { %v2913_v2 = vpop.f32.mrb[34].mxu1 }
0x1742   :  { %v2914_v22 = vadd.f32 %v3079_v18, %v2913_v2  ;;  %v3471_v31 = vpop.f32.mrb[35].mxu1 }
0x1744   :  { %v2917_v45 = vmax.f32 %v2914_v22, 0.0 }
0x1746   :  { %3481 = vmatmul.mubr.msk.f32.vlgmr.msra.gmra.mrb[34].mxu0 %vm2929_vm3, %v2917_v45 }
0x1819   :  { %v2999_v56 = vpop.f32.mrb[34].mxu0 }
0x181a   :  { %v3000_v19 = vadd.f32 %v3080_v59, %v2999_v56  ;;  %v3482_v26 = vpop.f32.mrb[35].mxu0 }
0x181c   :  { %3003 = vst [vmem:[%s5649_s16] sm:$0xff] %v3000_v19 }
0x181d   :  { %3008 = vsyncpa [#allocation3], 1 }
0x181e   :  { %3009 = vsyncpa [#allocation5], 1 }
0x181f   :  { %3010 = vsyncpa [#allocation8], 1 }
0x1820   :  { %3011 = vsyncpa [#allocation11], 1 }
0x1821   :  { %3012 = vsyncpa [#allocation14], 1 }
0x1822   :  { %3013 = vsyncpa [#allocation17], 1 }

</bundles_post_ra>
